<compile_context>
chip_gen: v7x
topology: tpu7x:2x2x1
jax: 0.10.0
libtpu: 0.0.40
codegen_flags: <defaults>
</compile_context>

<pallas_src>
import functools

import jax
import jax.numpy as jnp
from jax.experimental import pallas as pl
from jax.experimental.pallas import tpu as pltpu


# ----------------------------------------------------------------------------
# Kernel: the whole forward (projection, attention, softmax, LSTM recurrence)
# runs in VMEM for one batch tile. Shapes are tiny so every weight is a single
# full block; the T-step recurrence is unrolled at trace time (T static, small).
# ----------------------------------------------------------------------------
def encoder_kernel(global_batch,      # static python int: true (global) batch size
                   x_ref,             # (Bt, T, n, E)  original layout (no transpose)
                   wn_ref,            # (1, E)   news_linear weight
                   bn_ref,            # (1, 1)   news_linear bias        [SMEM]
                   w1h_ref,           # (H, T)   attn1 weight, h half (pre-T, bf16)
                   w1c_ref,           # (H, T)   attn1 weight, c half (pre-T, bf16)
                   b1_ref,            # (1, T)   attn1 bias
                   w2t_ref,           # (T, T)   attn2 weight transposed: [t_in, t_out]
                   b2_ref,            # (1, T)   attn2 bias
                   w3_ref,            # (1, T)   attn3 weight
                   b3_ref,            # (1, 1)   attn3 bias              [SMEM]
                   wlx_ref,           # (n, 4H)  LSTM input weights, [i,f,o,g] cols (bf16)
                   wlh_ref,           # (H, 4H)  LSTM hidden weights, [i,f,o,g] cols (bf16)
                   bl_ref,            # (1, 4H)  b_ih + b_hh, [i,f,o,g] order
                   out_ref):          # (Bt, T*H) lane-dense output slab
    B, T, n, E = x_ref.shape
    H = w1h_ref.shape[0]

    # ---- loop-invariant loads: issued once, reused across the unrolled loop ----
    x = x_ref[...].astype(jnp.float32)
    wn = wn_ref[...]
    bn = bn_ref[0, 0]                  # SMEM scalar
    w1h = w1h_ref[...]                 # bf16
    w1c = w1c_ref[...]                 # bf16
    b1 = b1_ref[...]
    w2t = w2t_ref[...]
    b2 = b2_ref[...]
    w3 = w3_ref[...]
    b3 = b3_ref[0, 0]                  # SMEM scalar
    wlx = wlx_ref[...]                 # bf16
    wlh = wlh_ref[...]                 # bf16
    bl = bl_ref[...]

    # news_linear(x).squeeze(-1):  inp[b, t, j] = sum_e x[b, t, j, e] * wn[e] + bn
    inp = jnp.sum(x * wn, axis=-1) + bn                                    # (B, T, n)

    # attn2(inp.permute(0, 2, 1)) is loop-invariant. One matmul for all rows:
    #   z2[b, j, s] = sum_t inp[b, t, j] * w2t[t, s] + b2[s]
    inp_t = jnp.transpose(inp, (0, 2, 1)).reshape(B * n, T)                # (B*n, T)
    z2 = (jnp.dot(inp_t, w2t, preferred_element_type=jnp.float32)
          + b2).reshape(B, n, T)                                           # (B, n, T)

    h = jnp.zeros((B, H), jnp.float32)
    c = jnp.zeros((B, H), jnp.float32)
    hs = []

    # T is small (8): static unroll of the recurrence.
    # TODO(synk): for large T (>32) switch to lax.fori_loop with (h, c) carry and a
    # dynamic out store to bound vreg live ranges.
    for t in range(T):
        # bf16 operands for the MXU (f32 accumulation); cast of h hoisted so it
        # feeds both the z1 half and the gates half.
        h_bf = h.astype(jnp.bfloat16)
        c_bf = c.astype(jnp.bfloat16)

        # attn1 over cat(h, c) without a lane concat: two partial products.
        z1 = (jnp.dot(h_bf, w1h, preferred_element_type=jnp.float32)
              + jnp.dot(c_bf, w1c, preferred_element_type=jnp.float32)
              + b1)                                                        # (B, T)
        # h-half of the LSTM gates only depends on h: push it now so it
        # pipelines with the z1 pushes and overlaps the attention math.
        gates_h = jnp.dot(h_bf, wlh, preferred_element_type=jnp.float32)   # (B, 4H)

        a = jnp.tanh(z1[:, None, :] + z2)                                  # (B, n, T)
        logits = jnp.sum(a * w3, axis=-1) + b3                             # (B, n)

        if global_batch > 1:
            # |logits| <= ||w3||_1 + |b3| (tanh in [-1, 1]) so exp cannot
            # overflow: skip the max-subtraction (one XLU reduce/step saved).
            e = jnp.exp(logits)
            denom = jnp.sum(e, axis=-1, keepdims=True)
            attn = e * pl.reciprocal(denom, approx=True)                   # softmax over n
        else:
            # PyTorch branch: init_variable(batch, input_size) + 1
            attn = jnp.ones((B, n), jnp.float32)

        wx = attn * inp[:, t, :]                                           # (B, n)

        # Input half of the LSTM gates; gate column order is [i, f, o, g].
        gates = (jnp.dot(wx.astype(jnp.bfloat16), wlx,
                         preferred_element_type=jnp.float32)
                 + gates_h + bl)                                           # (B, 4H)

        sig = jax.nn.sigmoid(gates[:, :3 * H])        # one EUP dispatch for i, f, o
        i_g = sig[:, 0:H]
        f_g = sig[:, H:2 * H]
        o_g = sig[:, 2 * H:3 * H]
        g_g = jnp.tanh(gates[:, 3 * H:])              # one EUP dispatch for g
        c = f_g * c + i_g * g_g
        h = o_g * jnp.tanh(c)
        hs.append(h)

    # Single lane-dense (Bt, T*H) = (8, 128) store instead of T masked (Bt, H) stores.
    out_ref[...] = jnp.concatenate(hs, axis=1).astype(out_ref.dtype)


# ----------------------------------------------------------------------------
# Wrapper: parameter plumbing (weight transposes / gate reorder / bf16 cast /
# bias folding), batch padding to a full sublane tile, and pallas_call with a
# parallel batch grid. Only a final cheap slice + reshape on the output.
# ----------------------------------------------------------------------------
def encoder_forward(x, p, btile=8):
    B, T, n, E = x.shape
    H = p["w_hh"].shape[1]

    # Pad batch to a multiple of the sublane height (8): full vreg occupancy,
    # and amortizes the fixed per-call overhead. Padded rows are sliced off.
    Bp = max(btile, ((B + btile - 1) // btile) * btile)
    if Bp != B:
        x = jnp.pad(x, ((0, Bp - B), (0, 0), (0, 0), (0, 0)))

    wn = p["news_w"].reshape(1, E)
    bn = p["news_b"].reshape(1, 1)
    # attn1 input is cat(h, c): split weight into h / c halves (no in-kernel concat).
    w1h = p["attn1_w"][:, :H].T.astype(jnp.bfloat16)           # (H, T)
    w1c = p["attn1_w"][:, H:].T.astype(jnp.bfloat16)           # (H, T)
    b1 = p["attn1_b"].reshape(1, T)
    w2t = p["attn2_w"].T                                       # (T_in, T_out)
    b2 = p["attn2_b"].reshape(1, T)
    w3 = p["attn3_w"].reshape(1, T)
    b3 = p["attn3_b"].reshape(1, 1)

    # LSTM weights: PyTorch gate order is [i, f, g, o]; reorder to [i, f, o, g]
    # so the kernel applies sigmoid once to the first 3H columns.
    def reorder(w):
        return jnp.concatenate([w[:2 * H], w[3 * H:4 * H], w[2 * H:3 * H]], axis=0)

    wlx = reorder(p["w_ih"]).T.astype(jnp.bfloat16)            # (n, 4H)
    wlh = reorder(p["w_hh"]).T.astype(jnp.bfloat16)            # (H, 4H)
    bl = (reorder(p["b_ih"].reshape(4 * H, 1))
          + reorder(p["b_hh"].reshape(4 * H, 1))).reshape(1, 4 * H)

    smem = pltpu.MemorySpace.SMEM
    const2d = lambda shape: pl.BlockSpec(shape, lambda b: (0, 0))

    out_flat = pl.pallas_call(
        functools.partial(encoder_kernel, B),
        out_shape=jax.ShapeDtypeStruct((Bp, T * H), jnp.float32),
        grid=(Bp // btile,),
        in_specs=[
            pl.BlockSpec((btile, T, n, E), lambda b: (b, 0, 0, 0)),   # x
            const2d((1, E)),                                          # wn
            pl.BlockSpec((1, 1), lambda b: (0, 0), memory_space=smem),  # bn (scalar)
            const2d((H, T)),                                          # w1h
            const2d((H, T)),                                          # w1c
            const2d((1, T)),                                          # b1
            const2d((T, T)),                                          # w2t
            const2d((1, T)),                                          # b2
            const2d((1, T)),                                          # w3
            pl.BlockSpec((1, 1), lambda b: (0, 0), memory_space=smem),  # b3 (scalar)
            const2d((n, 4 * H)),                                      # wlx
            const2d((H, 4 * H)),                                      # wlh
            const2d((1, 4 * H)),                                      # bl
        ],
        out_specs=pl.BlockSpec((btile, T * H), lambda b: (b, 0)),
        compiler_params=pltpu.CompilerParams(
            dimension_semantics=("parallel",)),   # batch tiles split across TCs (v7x)
    )(x, wn, bn, w1h, w1c, b1, w2t, b2, w3, b3, wlx, wlh, bl)

    # input_encoded in the PyTorch (batch, T, hidden) convention; slice + reshape.
    return out_flat[:B].reshape(B, T, H)


# ----------------------------------------------------------------------------
# Pure-JAX reference (mirrors the PyTorch forward exactly) for validation.
# ----------------------------------------------------------------------------
def encoder_ref(x, p):
    B, T, n, E = x.shape
    H = p["w_hh"].shape[1]
    inp = jnp.einsum("btne,oe->btno", x, p["news_w"])[..., 0] + p["news_b"][0]   # (B,T,n)
    z2 = jnp.einsum("bnt,st->bns", jnp.transpose(inp, (0, 2, 1)), p["attn2_w"]) + p["attn2_b"]
    h = jnp.zeros((B, H), jnp.float32)
    c = jnp.zeros((B, H), jnp.float32)
    outs = []
    for t in range(T):
        hr = jnp.broadcast_to(h[:, None, :], (B, n, H))
        cr = jnp.broadcast_to(c[:, None, :], (B, n, H))
        hc = jnp.concatenate([hr, cr], axis=-1)
        z1 = jnp.einsum("bnk,sk->bns", hc, p["attn1_w"]) + p["attn1_b"]
        z3 = jnp.einsum("bns,os->bno", jnp.tanh(z1 + z2), p["attn3_w"]) + p["attn3_b"]
        if B > 1:
            attn = jax.nn.softmax(z3[:, :, 0], axis=1)
        else:
            attn = jnp.ones((B, n), jnp.float32)
        wx = attn * inp[:, t, :]
        gates = wx @ p["w_ih"].T + p["b_ih"] + h @ p["w_hh"].T + p["b_hh"]
        i_g = jax.nn.sigmoid(gates[:, 0:H])
        f_g = jax.nn.sigmoid(gates[:, H:2 * H])
        g_g = jnp.tanh(gates[:, 2 * H:3 * H])
        o_g = jax.nn.sigmoid(gates[:, 3 * H:4 * H])
        c = f_g * c + i_g * g_g
        h = o_g * jnp.tanh(c)
        outs.append(h)
    return jnp.stack(outs, axis=1)


if __name__ == "__main__":
    # Small shapes consistent with the module's forward.
    B, T, N_IN, H, E = 2, 8, 8, 16, 8   # batch, time steps, input_size, hidden, embedding_dim

    key = jax.random.PRNGKey(0)
    ks = jax.random.split(key, 13)
    s = 0.1

    params = {
        "news_w":  s * jax.random.normal(ks[0], (1, E), jnp.float32),
        "news_b":  s * jax.random.normal(ks[1], (1,), jnp.float32),
        "attn1_w": s * jax.random.normal(ks[2], (T, 2 * H), jnp.float32),
        "attn1_b": s * jax.random.normal(ks[3], (T,), jnp.float32),
        "attn2_w": s * jax.random.normal(ks[4], (T, T), jnp.float32),
        "attn2_b": s * jax.random.normal(ks[5], (T,), jnp.float32),
        "attn3_w": s * jax.random.normal(ks[6], (1, T), jnp.float32),
        "attn3_b": s * jax.random.normal(ks[7], (1,), jnp.float32),
        "w_ih":    s * jax.random.normal(ks[8], (4 * H, N_IN), jnp.float32),
        "w_hh":    s * jax.random.normal(ks[9], (4 * H, H), jnp.float32),
        "b_ih":    s * jax.random.normal(ks[10], (4 * H,), jnp.float32),
        "b_hh":    s * jax.random.normal(ks[11], (4 * H,), jnp.float32),
    }
    x = jax.random.normal(ks[12], (B, T, N_IN, E), jnp.float32)

    fwd = jax.jit(encoder_forward)
    out = jax.block_until_ready(fwd(x, params))
    ref = jax.block_until_ready(encoder_ref(x, params))

    assert out.shape == (B, T, H)
    # Tolerance accounts for bf16 MXU operands (f32 accumulation) and the
    # approx-reciprocal softmax normalization; observed error is ~1e-4 scale.
    assert bool(jnp.allclose(out, ref, atol=2e-3, rtol=2e-3)), "mismatch vs reference"
    print("KERNEL_OK")
</pallas_src>

<mosaic_0001>
module attributes {stable_mosaic.version = 11 : i64} {
  func.func @encoder_kernel(%arg0: i32, %arg1: memref<8x8x8x8xf32, #tpu.memory_space<vmem>>, %arg2: memref<1x8xf32, #tpu.memory_space<vmem>>, %arg3: memref<1x1xf32, #tpu.memory_space<smem>>, %arg4: memref<16x8xbf16, #tpu.memory_space<vmem>>, %arg5: memref<16x8xbf16, #tpu.memory_space<vmem>>, %arg6: memref<1x8xf32, #tpu.memory_space<vmem>>, %arg7: memref<8x8xf32, #tpu.memory_space<vmem>>, %arg8: memref<1x8xf32, #tpu.memory_space<vmem>>, %arg9: memref<1x8xf32, #tpu.memory_space<vmem>>, %arg10: memref<1x1xf32, #tpu.memory_space<smem>>, %arg11: memref<8x64xbf16, #tpu.memory_space<vmem>>, %arg12: memref<16x64xbf16, #tpu.memory_space<vmem>>, %arg13: memref<1x64xf32, #tpu.memory_space<vmem>>, %arg14: memref<8x128xf32, #tpu.memory_space<vmem>>) attributes {dimension_semantics = [#tpu.dimension_semantics<parallel>], iteration_bounds = array<i64: 1>, scalar_prefetch = 0 : i64, scratch_operands = 0 : i64, tpu.core_type = #tpu.core_type<tc>, window_params = [{transform_indices = @transform_0, window_bounds = array<i64: 8, 8, 8, 8>}, {pipeline_mode = #tpu.pipeline_mode<synchronous>, transform_indices = @transform_1, window_bounds = array<i64: 1, 8>}, {transform_indices = @transform_2, window_bounds = array<i64: 1, 1>}, {pipeline_mode = #tpu.pipeline_mode<synchronous>, transform_indices = @transform_3, window_bounds = array<i64: 16, 8>}, {pipeline_mode = #tpu.pipeline_mode<synchronous>, transform_indices = @transform_4, window_bounds = array<i64: 16, 8>}, {pipeline_mode = #tpu.pipeline_mode<synchronous>, transform_indices = @transform_5, window_bounds = array<i64: 1, 8>}, {pipeline_mode = #tpu.pipeline_mode<synchronous>, transform_indices = @transform_6, window_bounds = array<i64: 8, 8>}, {pipeline_mode = #tpu.pipeline_mode<synchronous>, transform_indices = @transform_7, window_bounds = array<i64: 1, 8>}, {pipeline_mode = #tpu.pipeline_mode<synchronous>, transform_indices = @transform_8, window_bounds = array<i64: 1, 8>}, {transform_indices = @transform_9, window_bounds = array<i64: 1, 1>}, {pipeline_mode = #tpu.pipeline_mode<synchronous>, transform_indices = @transform_10, window_bounds = array<i64: 8, 64>}, {pipeline_mode = #tpu.pipeline_mode<synchronous>, transform_indices = @transform_11, window_bounds = array<i64: 16, 64>}, {pipeline_mode = #tpu.pipeline_mode<synchronous>, transform_indices = @transform_12, window_bounds = array<i64: 1, 64>}, {transform_indices = @transform_13, window_bounds = array<i64: 8, 128>}]} {
    %c0 = arith.constant 0 : index
    %c0_0 = arith.constant 0 : index
    %c0_1 = arith.constant 0 : index
    %c0_2 = arith.constant 0 : index
    %0 = vector.load %arg1[%c0, %c0_0, %c0_1, %c0_2] : memref<8x8x8x8xf32, #tpu.memory_space<vmem>>, vector<8x8x8x8xf32>
    %c0_3 = arith.constant 0 : index
    %c0_4 = arith.constant 0 : index
    %1 = vector.load %arg2[%c0_3, %c0_4] : memref<1x8xf32, #tpu.memory_space<vmem>>, vector<1x8xf32>
    %c0_5 = arith.constant 0 : index
    %c0_6 = arith.constant 0 : index
    %2 = memref.load %arg3[%c0_5, %c0_6] : memref<1x1xf32, #tpu.memory_space<smem>>
    %c0_7 = arith.constant 0 : index
    %c0_8 = arith.constant 0 : index
    %3 = vector.load %arg4[%c0_7, %c0_8] : memref<16x8xbf16, #tpu.memory_space<vmem>>, vector<16x8xbf16>
    %c0_9 = arith.constant 0 : index
    %c0_10 = arith.constant 0 : index
    %4 = vector.load %arg5[%c0_9, %c0_10] : memref<16x8xbf16, #tpu.memory_space<vmem>>, vector<16x8xbf16>
    %c0_11 = arith.constant 0 : index
    %c0_12 = arith.constant 0 : index
    %5 = vector.load %arg6[%c0_11, %c0_12] : memref<1x8xf32, #tpu.memory_space<vmem>>, vector<1x8xf32>
    %c0_13 = arith.constant 0 : index
    %c0_14 = arith.constant 0 : index
    %6 = vector.load %arg7[%c0_13, %c0_14] : memref<8x8xf32, #tpu.memory_space<vmem>>, vector<8x8xf32>
    %c0_15 = arith.constant 0 : index
    %c0_16 = arith.constant 0 : index
    %7 = vector.load %arg8[%c0_15, %c0_16] : memref<1x8xf32, #tpu.memory_space<vmem>>, vector<1x8xf32>
    %c0_17 = arith.constant 0 : index
    %c0_18 = arith.constant 0 : index
    %8 = vector.load %arg9[%c0_17, %c0_18] : memref<1x8xf32, #tpu.memory_space<vmem>>, vector<1x8xf32>
    %c0_19 = arith.constant 0 : index
    %c0_20 = arith.constant 0 : index
    %9 = memref.load %arg10[%c0_19, %c0_20] : memref<1x1xf32, #tpu.memory_space<smem>>
    %c0_21 = arith.constant 0 : index
    %c0_22 = arith.constant 0 : index
    %10 = vector.load %arg11[%c0_21, %c0_22] : memref<8x64xbf16, #tpu.memory_space<vmem>>, vector<8x64xbf16>
    %c0_23 = arith.constant 0 : index
    %c0_24 = arith.constant 0 : index
    %11 = vector.load %arg12[%c0_23, %c0_24] : memref<16x64xbf16, #tpu.memory_space<vmem>>, vector<16x64xbf16>
    %c0_25 = arith.constant 0 : index
    %c0_26 = arith.constant 0 : index
    %12 = vector.load %arg13[%c0_25, %c0_26] : memref<1x64xf32, #tpu.memory_space<vmem>>, vector<1x64xf32>
    %13 = vector.shape_cast %1 : vector<1x8xf32> to vector<1x1x1x8xf32>
    %14 = vector.broadcast %13 : vector<1x1x1x8xf32> to vector<8x8x8x8xf32>
    %15 = arith.mulf %0, %14 : vector<8x8x8x8xf32>
    %cst = arith.constant dense<0.000000e+00> : vector<8x8x8xf32>
    %16 = vector.multi_reduction <add>, %15, %cst [3] : vector<8x8x8x8xf32> to vector<8x8x8xf32>
    %17 = vector.broadcast %2 : f32 to vector<8x8x8xf32>
    %18 = arith.addf %16, %17 : vector<8x8x8xf32>
    %19 = tpu.transpose %18, [0, 2, 1] : vector<8x8x8xf32> -> vector<8x8x8xf32>
    %20 = vector.shape_cast %19 : vector<8x8x8xf32> to vector<64x8xf32>
    %cst_27 = arith.constant dense<0.000000e+00> : vector<64x8xf32>
    %21 = tpu.matmul %20, %6, %cst_27 {dimension_numbers = #tpu.dot_dimension_numbers<[1], [0], [0], [1], [0, 0, 1, 1], [], []>} : vector<64x8xf32>, vector<8x8xf32>, vector<64x8xf32> -> vector<64x8xf32>
    %22 = vector.broadcast %7 : vector<1x8xf32> to vector<64x8xf32>
    %23 = arith.addf %21, %22 : vector<64x8xf32>
    %24 = vector.shape_cast %23 : vector<64x8xf32> to vector<8x8x8xf32>
    %cst_28 = arith.constant 0.000000e+00 : f32
    %25 = vector.broadcast %cst_28 : f32 to vector<8x16xf32>
    %cst_29 = arith.constant 0.000000e+00 : f32
    %26 = vector.broadcast %cst_29 : f32 to vector<8x16xf32>
    %27 = arith.truncf %25 : vector<8x16xf32> to vector<8x16xbf16>
    %28 = arith.truncf %26 : vector<8x16xf32> to vector<8x16xbf16>
    %cst_30 = arith.constant dense<0.000000e+00> : vector<8x8xf32>
    %29 = tpu.matmul %27, %3, %cst_30 {dimension_numbers = #tpu.dot_dimension_numbers<[1], [0], [0], [1], [0, 0, 1, 1], [], []>} : vector<8x16xbf16>, vector<16x8xbf16>, vector<8x8xf32> -> vector<8x8xf32>
    %cst_31 = arith.constant dense<0.000000e+00> : vector<8x8xf32>
    %30 = tpu.matmul %28, %4, %cst_31 {dimension_numbers = #tpu.dot_dimension_numbers<[1], [0], [0], [1], [0, 0, 1, 1], [], []>} : vector<8x16xbf16>, vector<16x8xbf16>, vector<8x8xf32> -> vector<8x8xf32>
    %31 = arith.addf %29, %30 : vector<8x8xf32>
    %32 = vector.broadcast %5 : vector<1x8xf32> to vector<8x8xf32>
    %33 = arith.addf %31, %32 : vector<8x8xf32>
    %cst_32 = arith.constant dense<0.000000e+00> : vector<8x64xf32>
    %34 = tpu.matmul %27, %11, %cst_32 {dimension_numbers = #tpu.dot_dimension_numbers<[1], [0], [0], [1], [0, 0, 1, 1], [], []>} : vector<8x16xbf16>, vector<16x64xbf16>, vector<8x64xf32> -> vector<8x64xf32>
    %35 = vector.shape_cast %33 : vector<8x8xf32> to vector<8x1x8xf32>
    %36 = vector.broadcast %35 : vector<8x1x8xf32> to vector<8x8x8xf32>
    %37 = arith.addf %36, %24 : vector<8x8x8xf32>
    %38 = math.tanh %37 : vector<8x8x8xf32>
    %39 = vector.shape_cast %8 : vector<1x8xf32> to vector<1x1x8xf32>
    %40 = vector.broadcast %39 : vector<1x1x8xf32> to vector<8x8x8xf32>
    %41 = arith.mulf %38, %40 : vector<8x8x8xf32>
    %cst_33 = arith.constant dense<0.000000e+00> : vector<8x8xf32>
    %42 = vector.multi_reduction <add>, %41, %cst_33 [2] : vector<8x8x8xf32> to vector<8x8xf32>
    %43 = vector.broadcast %9 : f32 to vector<8x8xf32>
    %44 = arith.addf %42, %43 : vector<8x8xf32>
    %45 = math.exp %44 : vector<8x8xf32>
    %cst_34 = arith.constant dense<0.000000e+00> : vector<8xf32>
    %46 = vector.multi_reduction <add>, %45, %cst_34 [1] : vector<8x8xf32> to vector<8xf32>
    %47 = vector.shape_cast %46 : vector<8xf32> to vector<8x1xf32>
    %48 = tpu.reciprocal %47 {approx = true} : vector<8x1xf32> -> vector<8x1xf32>
    %49 = vector.broadcast %48 : vector<8x1xf32> to vector<8x8xf32>
    %50 = arith.mulf %45, %49 : vector<8x8xf32>
    %51 = vector.extract_strided_slice %18 {offsets = [0, 0, 0], sizes = [8, 1, 8], strides = [1, 1, 1]} : vector<8x8x8xf32> to vector<8x1x8xf32>
    %52 = vector.shape_cast %51 : vector<8x1x8xf32> to vector<8x8xf32>
    %53 = arith.mulf %50, %52 : vector<8x8xf32>
    %54 = arith.truncf %53 : vector<8x8xf32> to vector<8x8xbf16>
    %cst_35 = arith.constant dense<0.000000e+00> : vector<8x64xf32>
    %55 = tpu.matmul %54, %10, %cst_35 {dimension_numbers = #tpu.dot_dimension_numbers<[1], [0], [0], [1], [0, 0, 1, 1], [], []>} : vector<8x8xbf16>, vector<8x64xbf16>, vector<8x64xf32> -> vector<8x64xf32>
    %56 = arith.addf %55, %34 : vector<8x64xf32>
    %57 = vector.broadcast %12 : vector<1x64xf32> to vector<8x64xf32>
    %58 = arith.addf %56, %57 : vector<8x64xf32>
    %59 = vector.extract_strided_slice %58 {offsets = [0, 0], sizes = [8, 48], strides = [1, 1]} : vector<8x64xf32> to vector<8x48xf32>
    %60 = arith.negf %59 : vector<8x48xf32>
    %61 = math.exp %60 : vector<8x48xf32>
    %cst_36 = arith.constant 1.000000e+00 : f32
    %62 = vector.broadcast %cst_36 : f32 to vector<8x48xf32>
    %63 = arith.addf %62, %61 : vector<8x48xf32>
    %64 = arith.divf %62, %63 : vector<8x48xf32>
    %65 = vector.extract_strided_slice %64 {offsets = [0, 0], sizes = [8, 16], strides = [1, 1]} : vector<8x48xf32> to vector<8x16xf32>
    %66 = vector.extract_strided_slice %64 {offsets = [0, 16], sizes = [8, 16], strides = [1, 1]} : vector<8x48xf32> to vector<8x16xf32>
    %67 = vector.extract_strided_slice %64 {offsets = [0, 32], sizes = [8, 16], strides = [1, 1]} : vector<8x48xf32> to vector<8x16xf32>
    %68 = vector.extract_strided_slice %58 {offsets = [0, 48], sizes = [8, 16], strides = [1, 1]} : vector<8x64xf32> to vector<8x16xf32>
    %69 = math.tanh %68 : vector<8x16xf32>
    %70 = arith.mulf %66, %26 : vector<8x16xf32>
    %71 = arith.mulf %65, %69 : vector<8x16xf32>
    %72 = arith.addf %70, %71 : vector<8x16xf32>
    %73 = math.tanh %72 : vector<8x16xf32>
    %74 = arith.mulf %67, %73 : vector<8x16xf32>
    %75 = arith.truncf %74 : vector<8x16xf32> to vector<8x16xbf16>
    %76 = arith.truncf %72 : vector<8x16xf32> to vector<8x16xbf16>
    %cst_37 = arith.constant dense<0.000000e+00> : vector<8x8xf32>
    %77 = tpu.matmul %75, %3, %cst_37 {dimension_numbers = #tpu.dot_dimension_numbers<[1], [0], [0], [1], [0, 0, 1, 1], [], []>} : vector<8x16xbf16>, vector<16x8xbf16>, vector<8x8xf32> -> vector<8x8xf32>
    %cst_38 = arith.constant dense<0.000000e+00> : vector<8x8xf32>
    %78 = tpu.matmul %76, %4, %cst_38 {dimension_numbers = #tpu.dot_dimension_numbers<[1], [0], [0], [1], [0, 0, 1, 1], [], []>} : vector<8x16xbf16>, vector<16x8xbf16>, vector<8x8xf32> -> vector<8x8xf32>
    %79 = arith.addf %77, %78 : vector<8x8xf32>
    %80 = vector.broadcast %5 : vector<1x8xf32> to vector<8x8xf32>
    %81 = arith.addf %79, %80 : vector<8x8xf32>
    %cst_39 = arith.constant dense<0.000000e+00> : vector<8x64xf32>
    %82 = tpu.matmul %75, %11, %cst_39 {dimension_numbers = #tpu.dot_dimension_numbers<[1], [0], [0], [1], [0, 0, 1, 1], [], []>} : vector<8x16xbf16>, vector<16x64xbf16>, vector<8x64xf32> -> vector<8x64xf32>
    %83 = vector.shape_cast %81 : vector<8x8xf32> to vector<8x1x8xf32>
    %84 = vector.broadcast %83 : vector<8x1x8xf32> to vector<8x8x8xf32>
    %85 = arith.addf %84, %24 : vector<8x8x8xf32>
    %86 = math.tanh %85 : vector<8x8x8xf32>
    %87 = vector.shape_cast %8 : vector<1x8xf32> to vector<1x1x8xf32>
    %88 = vector.broadcast %87 : vector<1x1x8xf32> to vector<8x8x8xf32>
    %89 = arith.mulf %86, %88 : vector<8x8x8xf32>
    %cst_40 = arith.constant dense<0.000000e+00> : vector<8x8xf32>
    %90 = vector.multi_reduction <add>, %89, %cst_40 [2] : vector<8x8x8xf32> to vector<8x8xf32>
    %91 = vector.broadcast %9 : f32 to vector<8x8xf32>
    %92 = arith.addf %90, %91 : vector<8x8xf32>
    %93 = math.exp %92 : vector<8x8xf32>
    %cst_41 = arith.constant dense<0.000000e+00> : vector<8xf32>
    %94 = vector.multi_reduction <add>, %93, %cst_41 [1] : vector<8x8xf32> to vector<8xf32>
    %95 = vector.shape_cast %94 : vector<8xf32> to vector<8x1xf32>
    %96 = tpu.reciprocal %95 {approx = true} : vector<8x1xf32> -> vector<8x1xf32>
    %97 = vector.broadcast %96 : vector<8x1xf32> to vector<8x8xf32>
    %98 = arith.mulf %93, %97 : vector<8x8xf32>
    %99 = vector.extract_strided_slice %18 {offsets = [0, 1, 0], sizes = [8, 1, 8], strides = [1, 1, 1]} : vector<8x8x8xf32> to vector<8x1x8xf32>
    %100 = vector.shape_cast %99 : vector<8x1x8xf32> to vector<8x8xf32>
    %101 = arith.mulf %98, %100 : vector<8x8xf32>
    %102 = arith.truncf %101 : vector<8x8xf32> to vector<8x8xbf16>
    %cst_42 = arith.constant dense<0.000000e+00> : vector<8x64xf32>
    %103 = tpu.matmul %102, %10, %cst_42 {dimension_numbers = #tpu.dot_dimension_numbers<[1], [0], [0], [1], [0, 0, 1, 1], [], []>} : vector<8x8xbf16>, vector<8x64xbf16>, vector<8x64xf32> -> vector<8x64xf32>
    %104 = arith.addf %103, %82 : vector<8x64xf32>
    %105 = vector.broadcast %12 : vector<1x64xf32> to vector<8x64xf32>
    %106 = arith.addf %104, %105 : vector<8x64xf32>
    %107 = vector.extract_strided_slice %106 {offsets = [0, 0], sizes = [8, 48], strides = [1, 1]} : vector<8x64xf32> to vector<8x48xf32>
    %108 = arith.negf %107 : vector<8x48xf32>
    %109 = math.exp %108 : vector<8x48xf32>
    %cst_43 = arith.constant 1.000000e+00 : f32
    %110 = vector.broadcast %cst_43 : f32 to vector<8x48xf32>
    %111 = arith.addf %110, %109 : vector<8x48xf32>
    %112 = arith.divf %110, %111 : vector<8x48xf32>
    %113 = vector.extract_strided_slice %112 {offsets = [0, 0], sizes = [8, 16], strides = [1, 1]} : vector<8x48xf32> to vector<8x16xf32>
    %114 = vector.extract_strided_slice %112 {offsets = [0, 16], sizes = [8, 16], strides = [1, 1]} : vector<8x48xf32> to vector<8x16xf32>
    %115 = vector.extract_strided_slice %112 {offsets = [0, 32], sizes = [8, 16], strides = [1, 1]} : vector<8x48xf32> to vector<8x16xf32>
    %116 = vector.extract_strided_slice %106 {offsets = [0, 48], sizes = [8, 16], strides = [1, 1]} : vector<8x64xf32> to vector<8x16xf32>
    %117 = math.tanh %116 : vector<8x16xf32>
    %118 = arith.mulf %114, %72 : vector<8x16xf32>
    %119 = arith.mulf %113, %117 : vector<8x16xf32>
    %120 = arith.addf %118, %119 : vector<8x16xf32>
    %121 = math.tanh %120 : vector<8x16xf32>
    %122 = arith.mulf %115, %121 : vector<8x16xf32>
    %123 = arith.truncf %122 : vector<8x16xf32> to vector<8x16xbf16>
    %124 = arith.truncf %120 : vector<8x16xf32> to vector<8x16xbf16>
    %cst_44 = arith.constant dense<0.000000e+00> : vector<8x8xf32>
    %125 = tpu.matmul %123, %3, %cst_44 {dimension_numbers = #tpu.dot_dimension_numbers<[1], [0], [0], [1], [0, 0, 1, 1], [], []>} : vector<8x16xbf16>, vector<16x8xbf16>, vector<8x8xf32> -> vector<8x8xf32>
    %cst_45 = arith.constant dense<0.000000e+00> : vector<8x8xf32>
    %126 = tpu.matmul %124, %4, %cst_45 {dimension_numbers = #tpu.dot_dimension_numbers<[1], [0], [0], [1], [0, 0, 1, 1], [], []>} : vector<8x16xbf16>, vector<16x8xbf16>, vector<8x8xf32> -> vector<8x8xf32>
    %127 = arith.addf %125, %126 : vector<8x8xf32>
    %128 = vector.broadcast %5 : vector<1x8xf32> to vector<8x8xf32>
    %129 = arith.addf %127, %128 : vector<8x8xf32>
    %cst_46 = arith.constant dense<0.000000e+00> : vector<8x64xf32>
    %130 = tpu.matmul %123, %11, %cst_46 {dimension_numbers = #tpu.dot_dimension_numbers<[1], [0], [0], [1], [0, 0, 1, 1], [], []>} : vector<8x16xbf16>, vector<16x64xbf16>, vector<8x64xf32> -> vector<8x64xf32>
    %131 = vector.shape_cast %129 : vector<8x8xf32> to vector<8x1x8xf32>
    %132 = vector.broadcast %131 : vector<8x1x8xf32> to vector<8x8x8xf32>
    %133 = arith.addf %132, %24 : vector<8x8x8xf32>
    %134 = math.tanh %133 : vector<8x8x8xf32>
    %135 = vector.shape_cast %8 : vector<1x8xf32> to vector<1x1x8xf32>
    %136 = vector.broadcast %135 : vector<1x1x8xf32> to vector<8x8x8xf32>
    %137 = arith.mulf %134, %136 : vector<8x8x8xf32>
    %cst_47 = arith.constant dense<0.000000e+00> : vector<8x8xf32>
    %138 = vector.multi_reduction <add>, %137, %cst_47 [2] : vector<8x8x8xf32> to vector<8x8xf32>
    %139 = vector.broadcast %9 : f32 to vector<8x8xf32>
    %140 = arith.addf %138, %139 : vector<8x8xf32>
    %141 = math.exp %140 : vector<8x8xf32>
    %cst_48 = arith.constant dense<0.000000e+00> : vector<8xf32>
    %142 = vector.multi_reduction <add>, %141, %cst_48 [1] : vector<8x8xf32> to vector<8xf32>
    %143 = vector.shape_cast %142 : vector<8xf32> to vector<8x1xf32>
    %144 = tpu.reciprocal %143 {approx = true} : vector<8x1xf32> -> vector<8x1xf32>
    %145 = vector.broadcast %144 : vector<8x1xf32> to vector<8x8xf32>
    %146 = arith.mulf %141, %145 : vector<8x8xf32>
    %147 = vector.extract_strided_slice %18 {offsets = [0, 2, 0], sizes = [8, 1, 8], strides = [1, 1, 1]} : vector<8x8x8xf32> to vector<8x1x8xf32>
    %148 = vector.shape_cast %147 : vector<8x1x8xf32> to vector<8x8xf32>
    %149 = arith.mulf %146, %148 : vector<8x8xf32>
    %150 = arith.truncf %149 : vector<8x8xf32> to vector<8x8xbf16>
    %cst_49 = arith.constant dense<0.000000e+00> : vector<8x64xf32>
    %151 = tpu.matmul %150, %10, %cst_49 {dimension_numbers = #tpu.dot_dimension_numbers<[1], [0], [0], [1], [0, 0, 1, 1], [], []>} : vector<8x8xbf16>, vector<8x64xbf16>, vector<8x64xf32> -> vector<8x64xf32>
    %152 = arith.addf %151, %130 : vector<8x64xf32>
    %153 = vector.broadcast %12 : vector<1x64xf32> to vector<8x64xf32>
    %154 = arith.addf %152, %153 : vector<8x64xf32>
    %155 = vector.extract_strided_slice %154 {offsets = [0, 0], sizes = [8, 48], strides = [1, 1]} : vector<8x64xf32> to vector<8x48xf32>
    %156 = arith.negf %155 : vector<8x48xf32>
    %157 = math.exp %156 : vector<8x48xf32>
    %cst_50 = arith.constant 1.000000e+00 : f32
    %158 = vector.broadcast %cst_50 : f32 to vector<8x48xf32>
    %159 = arith.addf %158, %157 : vector<8x48xf32>
    %160 = arith.divf %158, %159 : vector<8x48xf32>
    %161 = vector.extract_strided_slice %160 {offsets = [0, 0], sizes = [8, 16], strides = [1, 1]} : vector<8x48xf32> to vector<8x16xf32>
    %162 = vector.extract_strided_slice %160 {offsets = [0, 16], sizes = [8, 16], strides = [1, 1]} : vector<8x48xf32> to vector<8x16xf32>
    %163 = vector.extract_strided_slice %160 {offsets = [0, 32], sizes = [8, 16], strides = [1, 1]} : vector<8x48xf32> to vector<8x16xf32>
    %164 = vector.extract_strided_slice %154 {offsets = [0, 48], sizes = [8, 16], strides = [1, 1]} : vector<8x64xf32> to vector<8x16xf32>
    %165 = math.tanh %164 : vector<8x16xf32>
    %166 = arith.mulf %162, %120 : vector<8x16xf32>
    %167 = arith.mulf %161, %165 : vector<8x16xf32>
    %168 = arith.addf %166, %167 : vector<8x16xf32>
    %169 = math.tanh %168 : vector<8x16xf32>
    %170 = arith.mulf %163, %169 : vector<8x16xf32>
    %171 = arith.truncf %170 : vector<8x16xf32> to vector<8x16xbf16>
    %172 = arith.truncf %168 : vector<8x16xf32> to vector<8x16xbf16>
    %cst_51 = arith.constant dense<0.000000e+00> : vector<8x8xf32>
    %173 = tpu.matmul %171, %3, %cst_51 {dimension_numbers = #tpu.dot_dimension_numbers<[1], [0], [0], [1], [0, 0, 1, 1], [], []>} : vector<8x16xbf16>, vector<16x8xbf16>, vector<8x8xf32> -> vector<8x8xf32>
    %cst_52 = arith.constant dense<0.000000e+00> : vector<8x8xf32>
    %174 = tpu.matmul %172, %4, %cst_52 {dimension_numbers = #tpu.dot_dimension_numbers<[1], [0], [0], [1], [0, 0, 1, 1], [], []>} : vector<8x16xbf16>, vector<16x8xbf16>, vector<8x8xf32> -> vector<8x8xf32>
    %175 = arith.addf %173, %174 : vector<8x8xf32>
    %176 = vector.broadcast %5 : vector<1x8xf32> to vector<8x8xf32>
    %177 = arith.addf %175, %176 : vector<8x8xf32>
    %cst_53 = arith.constant dense<0.000000e+00> : vector<8x64xf32>
    %178 = tpu.matmul %171, %11, %cst_53 {dimension_numbers = #tpu.dot_dimension_numbers<[1], [0], [0], [1], [0, 0, 1, 1], [], []>} : vector<8x16xbf16>, vector<16x64xbf16>, vector<8x64xf32> -> vector<8x64xf32>
    %179 = vector.shape_cast %177 : vector<8x8xf32> to vector<8x1x8xf32>
    %180 = vector.broadcast %179 : vector<8x1x8xf32> to vector<8x8x8xf32>
    %181 = arith.addf %180, %24 : vector<8x8x8xf32>
    %182 = math.tanh %181 : vector<8x8x8xf32>
    %183 = vector.shape_cast %8 : vector<1x8xf32> to vector<1x1x8xf32>
    %184 = vector.broadcast %183 : vector<1x1x8xf32> to vector<8x8x8xf32>
    %185 = arith.mulf %182, %184 : vector<8x8x8xf32>
    %cst_54 = arith.constant dense<0.000000e+00> : vector<8x8xf32>
    %186 = vector.multi_reduction <add>, %185, %cst_54 [2] : vector<8x8x8xf32> to vector<8x8xf32>
    %187 = vector.broadcast %9 : f32 to vector<8x8xf32>
    %188 = arith.addf %186, %187 : vector<8x8xf32>
    %189 = math.exp %188 : vector<8x8xf32>
    %cst_55 = arith.constant dense<0.000000e+00> : vector<8xf32>
    %190 = vector.multi_reduction <add>, %189, %cst_55 [1] : vector<8x8xf32> to vector<8xf32>
    %191 = vector.shape_cast %190 : vector<8xf32> to vector<8x1xf32>
    %192 = tpu.reciprocal %191 {approx = true} : vector<8x1xf32> -> vector<8x1xf32>
    %193 = vector.broadcast %192 : vector<8x1xf32> to vector<8x8xf32>
    %194 = arith.mulf %189, %193 : vector<8x8xf32>
    %195 = vector.extract_strided_slice %18 {offsets = [0, 3, 0], sizes = [8, 1, 8], strides = [1, 1, 1]} : vector<8x8x8xf32> to vector<8x1x8xf32>
    %196 = vector.shape_cast %195 : vector<8x1x8xf32> to vector<8x8xf32>
    %197 = arith.mulf %194, %196 : vector<8x8xf32>
    %198 = arith.truncf %197 : vector<8x8xf32> to vector<8x8xbf16>
    %cst_56 = arith.constant dense<0.000000e+00> : vector<8x64xf32>
    %199 = tpu.matmul %198, %10, %cst_56 {dimension_numbers = #tpu.dot_dimension_numbers<[1], [0], [0], [1], [0, 0, 1, 1], [], []>} : vector<8x8xbf16>, vector<8x64xbf16>, vector<8x64xf32> -> vector<8x64xf32>
    %200 = arith.addf %199, %178 : vector<8x64xf32>
    %201 = vector.broadcast %12 : vector<1x64xf32> to vector<8x64xf32>
    %202 = arith.addf %200, %201 : vector<8x64xf32>
    %203 = vector.extract_strided_slice %202 {offsets = [0, 0], sizes = [8, 48], strides = [1, 1]} : vector<8x64xf32> to vector<8x48xf32>
    %204 = arith.negf %203 : vector<8x48xf32>
    %205 = math.exp %204 : vector<8x48xf32>
    %cst_57 = arith.constant 1.000000e+00 : f32
    %206 = vector.broadcast %cst_57 : f32 to vector<8x48xf32>
    %207 = arith.addf %206, %205 : vector<8x48xf32>
    %208 = arith.divf %206, %207 : vector<8x48xf32>
    %209 = vector.extract_strided_slice %208 {offsets = [0, 0], sizes = [8, 16], strides = [1, 1]} : vector<8x48xf32> to vector<8x16xf32>
    %210 = vector.extract_strided_slice %208 {offsets = [0, 16], sizes = [8, 16], strides = [1, 1]} : vector<8x48xf32> to vector<8x16xf32>
    %211 = vector.extract_strided_slice %208 {offsets = [0, 32], sizes = [8, 16], strides = [1, 1]} : vector<8x48xf32> to vector<8x16xf32>
    %212 = vector.extract_strided_slice %202 {offsets = [0, 48], sizes = [8, 16], strides = [1, 1]} : vector<8x64xf32> to vector<8x16xf32>
    %213 = math.tanh %212 : vector<8x16xf32>
    %214 = arith.mulf %210, %168 : vector<8x16xf32>
    %215 = arith.mulf %209, %213 : vector<8x16xf32>
    %216 = arith.addf %214, %215 : vector<8x16xf32>
    %217 = math.tanh %216 : vector<8x16xf32>
    %218 = arith.mulf %211, %217 : vector<8x16xf32>
    %219 = arith.truncf %218 : vector<8x16xf32> to vector<8x16xbf16>
    %220 = arith.truncf %216 : vector<8x16xf32> to vector<8x16xbf16>
    %cst_58 = arith.constant dense<0.000000e+00> : vector<8x8xf32>
    %221 = tpu.matmul %219, %3, %cst_58 {dimension_numbers = #tpu.dot_dimension_numbers<[1], [0], [0], [1], [0, 0, 1, 1], [], []>} : vector<8x16xbf16>, vector<16x8xbf16>, vector<8x8xf32> -> vector<8x8xf32>
    %cst_59 = arith.constant dense<0.000000e+00> : vector<8x8xf32>
    %222 = tpu.matmul %220, %4, %cst_59 {dimension_numbers = #tpu.dot_dimension_numbers<[1], [0], [0], [1], [0, 0, 1, 1], [], []>} : vector<8x16xbf16>, vector<16x8xbf16>, vector<8x8xf32> -> vector<8x8xf32>
    %223 = arith.addf %221, %222 : vector<8x8xf32>
    %224 = vector.broadcast %5 : vector<1x8xf32> to vector<8x8xf32>
    %225 = arith.addf %223, %224 : vector<8x8xf32>
    %cst_60 = arith.constant dense<0.000000e+00> : vector<8x64xf32>
    %226 = tpu.matmul %219, %11, %cst_60 {dimension_numbers = #tpu.dot_dimension_numbers<[1], [0], [0], [1], [0, 0, 1, 1], [], []>} : vector<8x16xbf16>, vector<16x64xbf16>, vector<8x64xf32> -> vector<8x64xf32>
    %227 = vector.shape_cast %225 : vector<8x8xf32> to vector<8x1x8xf32>
    %228 = vector.broadcast %227 : vector<8x1x8xf32> to vector<8x8x8xf32>
    %229 = arith.addf %228, %24 : vector<8x8x8xf32>
    %230 = math.tanh %229 : vector<8x8x8xf32>
    %231 = vector.shape_cast %8 : vector<1x8xf32> to vector<1x1x8xf32>
    %232 = vector.broadcast %231 : vector<1x1x8xf32> to vector<8x8x8xf32>
    %233 = arith.mulf %230, %232 : vector<8x8x8xf32>
    %cst_61 = arith.constant dense<0.000000e+00> : vector<8x8xf32>
    %234 = vector.multi_reduction <add>, %233, %cst_61 [2] : vector<8x8x8xf32> to vector<8x8xf32>
    %235 = vector.broadcast %9 : f32 to vector<8x8xf32>
    %236 = arith.addf %234, %235 : vector<8x8xf32>
    %237 = math.exp %236 : vector<8x8xf32>
    %cst_62 = arith.constant dense<0.000000e+00> : vector<8xf32>
    %238 = vector.multi_reduction <add>, %237, %cst_62 [1] : vector<8x8xf32> to vector<8xf32>
    %239 = vector.shape_cast %238 : vector<8xf32> to vector<8x1xf32>
    %240 = tpu.reciprocal %239 {approx = true} : vector<8x1xf32> -> vector<8x1xf32>
    %241 = vector.broadcast %240 : vector<8x1xf32> to vector<8x8xf32>
    %242 = arith.mulf %237, %241 : vector<8x8xf32>
    %243 = vector.extract_strided_slice %18 {offsets = [0, 4, 0], sizes = [8, 1, 8], strides = [1, 1, 1]} : vector<8x8x8xf32> to vector<8x1x8xf32>
    %244 = vector.shape_cast %243 : vector<8x1x8xf32> to vector<8x8xf32>
    %245 = arith.mulf %242, %244 : vector<8x8xf32>
    %246 = arith.truncf %245 : vector<8x8xf32> to vector<8x8xbf16>
    %cst_63 = arith.constant dense<0.000000e+00> : vector<8x64xf32>
    %247 = tpu.matmul %246, %10, %cst_63 {dimension_numbers = #tpu.dot_dimension_numbers<[1], [0], [0], [1], [0, 0, 1, 1], [], []>} : vector<8x8xbf16>, vector<8x64xbf16>, vector<8x64xf32> -> vector<8x64xf32>
    %248 = arith.addf %247, %226 : vector<8x64xf32>
    %249 = vector.broadcast %12 : vector<1x64xf32> to vector<8x64xf32>
    %250 = arith.addf %248, %249 : vector<8x64xf32>
    %251 = vector.extract_strided_slice %250 {offsets = [0, 0], sizes = [8, 48], strides = [1, 1]} : vector<8x64xf32> to vector<8x48xf32>
    %252 = arith.negf %251 : vector<8x48xf32>
    %253 = math.exp %252 : vector<8x48xf32>
    %cst_64 = arith.constant 1.000000e+00 : f32
    %254 = vector.broadcast %cst_64 : f32 to vector<8x48xf32>
    %255 = arith.addf %254, %253 : vector<8x48xf32>
    %256 = arith.divf %254, %255 : vector<8x48xf32>
    %257 = vector.extract_strided_slice %256 {offsets = [0, 0], sizes = [8, 16], strides = [1, 1]} : vector<8x48xf32> to vector<8x16xf32>
    %258 = vector.extract_strided_slice %256 {offsets = [0, 16], sizes = [8, 16], strides = [1, 1]} : vector<8x48xf32> to vector<8x16xf32>
    %259 = vector.extract_strided_slice %256 {offsets = [0, 32], sizes = [8, 16], strides = [1, 1]} : vector<8x48xf32> to vector<8x16xf32>
    %260 = vector.extract_strided_slice %250 {offsets = [0, 48], sizes = [8, 16], strides = [1, 1]} : vector<8x64xf32> to vector<8x16xf32>
    %261 = math.tanh %260 : vector<8x16xf32>
    %262 = arith.mulf %258, %216 : vector<8x16xf32>
    %263 = arith.mulf %257, %261 : vector<8x16xf32>
    %264 = arith.addf %262, %263 : vector<8x16xf32>
    %265 = math.tanh %264 : vector<8x16xf32>
    %266 = arith.mulf %259, %265 : vector<8x16xf32>
    %267 = arith.truncf %266 : vector<8x16xf32> to vector<8x16xbf16>
    %268 = arith.truncf %264 : vector<8x16xf32> to vector<8x16xbf16>
    %cst_65 = arith.constant dense<0.000000e+00> : vector<8x8xf32>
    %269 = tpu.matmul %267, %3, %cst_65 {dimension_numbers = #tpu.dot_dimension_numbers<[1], [0], [0], [1], [0, 0, 1, 1], [], []>} : vector<8x16xbf16>, vector<16x8xbf16>, vector<8x8xf32> -> vector<8x8xf32>
    %cst_66 = arith.constant dense<0.000000e+00> : vector<8x8xf32>
    %270 = tpu.matmul %268, %4, %cst_66 {dimension_numbers = #tpu.dot_dimension_numbers<[1], [0], [0], [1], [0, 0, 1, 1], [], []>} : vector<8x16xbf16>, vector<16x8xbf16>, vector<8x8xf32> -> vector<8x8xf32>
    %271 = arith.addf %269, %270 : vector<8x8xf32>
    %272 = vector.broadcast %5 : vector<1x8xf32> to vector<8x8xf32>
    %273 = arith.addf %271, %272 : vector<8x8xf32>
    %cst_67 = arith.constant dense<0.000000e+00> : vector<8x64xf32>
    %274 = tpu.matmul %267, %11, %cst_67 {dimension_numbers = #tpu.dot_dimension_numbers<[1], [0], [0], [1], [0, 0, 1, 1], [], []>} : vector<8x16xbf16>, vector<16x64xbf16>, vector<8x64xf32> -> vector<8x64xf32>
    %275 = vector.shape_cast %273 : vector<8x8xf32> to vector<8x1x8xf32>
    %276 = vector.broadcast %275 : vector<8x1x8xf32> to vector<8x8x8xf32>
    %277 = arith.addf %276, %24 : vector<8x8x8xf32>
    %278 = math.tanh %277 : vector<8x8x8xf32>
    %279 = vector.shape_cast %8 : vector<1x8xf32> to vector<1x1x8xf32>
    %280 = vector.broadcast %279 : vector<1x1x8xf32> to vector<8x8x8xf32>
    %281 = arith.mulf %278, %280 : vector<8x8x8xf32>
    %cst_68 = arith.constant dense<0.000000e+00> : vector<8x8xf32>
    %282 = vector.multi_reduction <add>, %281, %cst_68 [2] : vector<8x8x8xf32> to vector<8x8xf32>
    %283 = vector.broadcast %9 : f32 to vector<8x8xf32>
    %284 = arith.addf %282, %283 : vector<8x8xf32>
    %285 = math.exp %284 : vector<8x8xf32>
    %cst_69 = arith.constant dense<0.000000e+00> : vector<8xf32>
    %286 = vector.multi_reduction <add>, %285, %cst_69 [1] : vector<8x8xf32> to vector<8xf32>
    %287 = vector.shape_cast %286 : vector<8xf32> to vector<8x1xf32>
    %288 = tpu.reciprocal %287 {approx = true} : vector<8x1xf32> -> vector<8x1xf32>
    %289 = vector.broadcast %288 : vector<8x1xf32> to vector<8x8xf32>
    %290 = arith.mulf %285, %289 : vector<8x8xf32>
    %291 = vector.extract_strided_slice %18 {offsets = [0, 5, 0], sizes = [8, 1, 8], strides = [1, 1, 1]} : vector<8x8x8xf32> to vector<8x1x8xf32>
    %292 = vector.shape_cast %291 : vector<8x1x8xf32> to vector<8x8xf32>
    %293 = arith.mulf %290, %292 : vector<8x8xf32>
    %294 = arith.truncf %293 : vector<8x8xf32> to vector<8x8xbf16>
    %cst_70 = arith.constant dense<0.000000e+00> : vector<8x64xf32>
    %295 = tpu.matmul %294, %10, %cst_70 {dimension_numbers = #tpu.dot_dimension_numbers<[1], [0], [0], [1], [0, 0, 1, 1], [], []>} : vector<8x8xbf16>, vector<8x64xbf16>, vector<8x64xf32> -> vector<8x64xf32>
    %296 = arith.addf %295, %274 : vector<8x64xf32>
    %297 = vector.broadcast %12 : vector<1x64xf32> to vector<8x64xf32>
    %298 = arith.addf %296, %297 : vector<8x64xf32>
    %299 = vector.extract_strided_slice %298 {offsets = [0, 0], sizes = [8, 48], strides = [1, 1]} : vector<8x64xf32> to vector<8x48xf32>
    %300 = arith.negf %299 : vector<8x48xf32>
    %301 = math.exp %300 : vector<8x48xf32>
    %cst_71 = arith.constant 1.000000e+00 : f32
    %302 = vector.broadcast %cst_71 : f32 to vector<8x48xf32>
    %303 = arith.addf %302, %301 : vector<8x48xf32>
    %304 = arith.divf %302, %303 : vector<8x48xf32>
    %305 = vector.extract_strided_slice %304 {offsets = [0, 0], sizes = [8, 16], strides = [1, 1]} : vector<8x48xf32> to vector<8x16xf32>
    %306 = vector.extract_strided_slice %304 {offsets = [0, 16], sizes = [8, 16], strides = [1, 1]} : vector<8x48xf32> to vector<8x16xf32>
    %307 = vector.extract_strided_slice %304 {offsets = [0, 32], sizes = [8, 16], strides = [1, 1]} : vector<8x48xf32> to vector<8x16xf32>
    %308 = vector.extract_strided_slice %298 {offsets = [0, 48], sizes = [8, 16], strides = [1, 1]} : vector<8x64xf32> to vector<8x16xf32>
    %309 = math.tanh %308 : vector<8x16xf32>
    %310 = arith.mulf %306, %264 : vector<8x16xf32>
    %311 = arith.mulf %305, %309 : vector<8x16xf32>
    %312 = arith.addf %310, %311 : vector<8x16xf32>
    %313 = math.tanh %312 : vector<8x16xf32>
    %314 = arith.mulf %307, %313 : vector<8x16xf32>
    %315 = arith.truncf %314 : vector<8x16xf32> to vector<8x16xbf16>
    %316 = arith.truncf %312 : vector<8x16xf32> to vector<8x16xbf16>
    %cst_72 = arith.constant dense<0.000000e+00> : vector<8x8xf32>
    %317 = tpu.matmul %315, %3, %cst_72 {dimension_numbers = #tpu.dot_dimension_numbers<[1], [0], [0], [1], [0, 0, 1, 1], [], []>} : vector<8x16xbf16>, vector<16x8xbf16>, vector<8x8xf32> -> vector<8x8xf32>
    %cst_73 = arith.constant dense<0.000000e+00> : vector<8x8xf32>
    %318 = tpu.matmul %316, %4, %cst_73 {dimension_numbers = #tpu.dot_dimension_numbers<[1], [0], [0], [1], [0, 0, 1, 1], [], []>} : vector<8x16xbf16>, vector<16x8xbf16>, vector<8x8xf32> -> vector<8x8xf32>
    %319 = arith.addf %317, %318 : vector<8x8xf32>
    %320 = vector.broadcast %5 : vector<1x8xf32> to vector<8x8xf32>
    %321 = arith.addf %319, %320 : vector<8x8xf32>
    %cst_74 = arith.constant dense<0.000000e+00> : vector<8x64xf32>
    %322 = tpu.matmul %315, %11, %cst_74 {dimension_numbers = #tpu.dot_dimension_numbers<[1], [0], [0], [1], [0, 0, 1, 1], [], []>} : vector<8x16xbf16>, vector<16x64xbf16>, vector<8x64xf32> -> vector<8x64xf32>
    %323 = vector.shape_cast %321 : vector<8x8xf32> to vector<8x1x8xf32>
    %324 = vector.broadcast %323 : vector<8x1x8xf32> to vector<8x8x8xf32>
    %325 = arith.addf %324, %24 : vector<8x8x8xf32>
    %326 = math.tanh %325 : vector<8x8x8xf32>
    %327 = vector.shape_cast %8 : vector<1x8xf32> to vector<1x1x8xf32>
    %328 = vector.broadcast %327 : vector<1x1x8xf32> to vector<8x8x8xf32>
    %329 = arith.mulf %326, %328 : vector<8x8x8xf32>
    %cst_75 = arith.constant dense<0.000000e+00> : vector<8x8xf32>
    %330 = vector.multi_reduction <add>, %329, %cst_75 [2] : vector<8x8x8xf32> to vector<8x8xf32>
    %331 = vector.broadcast %9 : f32 to vector<8x8xf32>
    %332 = arith.addf %330, %331 : vector<8x8xf32>
    %333 = math.exp %332 : vector<8x8xf32>
    %cst_76 = arith.constant dense<0.000000e+00> : vector<8xf32>
    %334 = vector.multi_reduction <add>, %333, %cst_76 [1] : vector<8x8xf32> to vector<8xf32>
    %335 = vector.shape_cast %334 : vector<8xf32> to vector<8x1xf32>
    %336 = tpu.reciprocal %335 {approx = true} : vector<8x1xf32> -> vector<8x1xf32>
    %337 = vector.broadcast %336 : vector<8x1xf32> to vector<8x8xf32>
    %338 = arith.mulf %333, %337 : vector<8x8xf32>
    %339 = vector.extract_strided_slice %18 {offsets = [0, 6, 0], sizes = [8, 1, 8], strides = [1, 1, 1]} : vector<8x8x8xf32> to vector<8x1x8xf32>
    %340 = vector.shape_cast %339 : vector<8x1x8xf32> to vector<8x8xf32>
    %341 = arith.mulf %338, %340 : vector<8x8xf32>
    %342 = arith.truncf %341 : vector<8x8xf32> to vector<8x8xbf16>
    %cst_77 = arith.constant dense<0.000000e+00> : vector<8x64xf32>
    %343 = tpu.matmul %342, %10, %cst_77 {dimension_numbers = #tpu.dot_dimension_numbers<[1], [0], [0], [1], [0, 0, 1, 1], [], []>} : vector<8x8xbf16>, vector<8x64xbf16>, vector<8x64xf32> -> vector<8x64xf32>
    %344 = arith.addf %343, %322 : vector<8x64xf32>
    %345 = vector.broadcast %12 : vector<1x64xf32> to vector<8x64xf32>
    %346 = arith.addf %344, %345 : vector<8x64xf32>
    %347 = vector.extract_strided_slice %346 {offsets = [0, 0], sizes = [8, 48], strides = [1, 1]} : vector<8x64xf32> to vector<8x48xf32>
    %348 = arith.negf %347 : vector<8x48xf32>
    %349 = math.exp %348 : vector<8x48xf32>
    %cst_78 = arith.constant 1.000000e+00 : f32
    %350 = vector.broadcast %cst_78 : f32 to vector<8x48xf32>
    %351 = arith.addf %350, %349 : vector<8x48xf32>
    %352 = arith.divf %350, %351 : vector<8x48xf32>
    %353 = vector.extract_strided_slice %352 {offsets = [0, 0], sizes = [8, 16], strides = [1, 1]} : vector<8x48xf32> to vector<8x16xf32>
    %354 = vector.extract_strided_slice %352 {offsets = [0, 16], sizes = [8, 16], strides = [1, 1]} : vector<8x48xf32> to vector<8x16xf32>
    %355 = vector.extract_strided_slice %352 {offsets = [0, 32], sizes = [8, 16], strides = [1, 1]} : vector<8x48xf32> to vector<8x16xf32>
    %356 = vector.extract_strided_slice %346 {offsets = [0, 48], sizes = [8, 16], strides = [1, 1]} : vector<8x64xf32> to vector<8x16xf32>
    %357 = math.tanh %356 : vector<8x16xf32>
    %358 = arith.mulf %354, %312 : vector<8x16xf32>
    %359 = arith.mulf %353, %357 : vector<8x16xf32>
    %360 = arith.addf %358, %359 : vector<8x16xf32>
    %361 = math.tanh %360 : vector<8x16xf32>
    %362 = arith.mulf %355, %361 : vector<8x16xf32>
    %363 = arith.truncf %362 : vector<8x16xf32> to vector<8x16xbf16>
    %364 = arith.truncf %360 : vector<8x16xf32> to vector<8x16xbf16>
    %cst_79 = arith.constant dense<0.000000e+00> : vector<8x8xf32>
    %365 = tpu.matmul %363, %3, %cst_79 {dimension_numbers = #tpu.dot_dimension_numbers<[1], [0], [0], [1], [0, 0, 1, 1], [], []>} : vector<8x16xbf16>, vector<16x8xbf16>, vector<8x8xf32> -> vector<8x8xf32>
    %cst_80 = arith.constant dense<0.000000e+00> : vector<8x8xf32>
    %366 = tpu.matmul %364, %4, %cst_80 {dimension_numbers = #tpu.dot_dimension_numbers<[1], [0], [0], [1], [0, 0, 1, 1], [], []>} : vector<8x16xbf16>, vector<16x8xbf16>, vector<8x8xf32> -> vector<8x8xf32>
    %367 = arith.addf %365, %366 : vector<8x8xf32>
    %368 = vector.broadcast %5 : vector<1x8xf32> to vector<8x8xf32>
    %369 = arith.addf %367, %368 : vector<8x8xf32>
    %cst_81 = arith.constant dense<0.000000e+00> : vector<8x64xf32>
    %370 = tpu.matmul %363, %11, %cst_81 {dimension_numbers = #tpu.dot_dimension_numbers<[1], [0], [0], [1], [0, 0, 1, 1], [], []>} : vector<8x16xbf16>, vector<16x64xbf16>, vector<8x64xf32> -> vector<8x64xf32>
    %371 = vector.shape_cast %369 : vector<8x8xf32> to vector<8x1x8xf32>
    %372 = vector.broadcast %371 : vector<8x1x8xf32> to vector<8x8x8xf32>
    %373 = arith.addf %372, %24 : vector<8x8x8xf32>
    %374 = math.tanh %373 : vector<8x8x8xf32>
    %375 = vector.shape_cast %8 : vector<1x8xf32> to vector<1x1x8xf32>
    %376 = vector.broadcast %375 : vector<1x1x8xf32> to vector<8x8x8xf32>
    %377 = arith.mulf %374, %376 : vector<8x8x8xf32>
    %cst_82 = arith.constant dense<0.000000e+00> : vector<8x8xf32>
    %378 = vector.multi_reduction <add>, %377, %cst_82 [2] : vector<8x8x8xf32> to vector<8x8xf32>
    %379 = vector.broadcast %9 : f32 to vector<8x8xf32>
    %380 = arith.addf %378, %379 : vector<8x8xf32>
    %381 = math.exp %380 : vector<8x8xf32>
    %cst_83 = arith.constant dense<0.000000e+00> : vector<8xf32>
    %382 = vector.multi_reduction <add>, %381, %cst_83 [1] : vector<8x8xf32> to vector<8xf32>
    %383 = vector.shape_cast %382 : vector<8xf32> to vector<8x1xf32>
    %384 = tpu.reciprocal %383 {approx = true} : vector<8x1xf32> -> vector<8x1xf32>
    %385 = vector.broadcast %384 : vector<8x1xf32> to vector<8x8xf32>
    %386 = arith.mulf %381, %385 : vector<8x8xf32>
    %387 = vector.extract_strided_slice %18 {offsets = [0, 7, 0], sizes = [8, 1, 8], strides = [1, 1, 1]} : vector<8x8x8xf32> to vector<8x1x8xf32>
    %388 = vector.shape_cast %387 : vector<8x1x8xf32> to vector<8x8xf32>
    %389 = arith.mulf %386, %388 : vector<8x8xf32>
    %390 = arith.truncf %389 : vector<8x8xf32> to vector<8x8xbf16>
    %cst_84 = arith.constant dense<0.000000e+00> : vector<8x64xf32>
    %391 = tpu.matmul %390, %10, %cst_84 {dimension_numbers = #tpu.dot_dimension_numbers<[1], [0], [0], [1], [0, 0, 1, 1], [], []>} : vector<8x8xbf16>, vector<8x64xbf16>, vector<8x64xf32> -> vector<8x64xf32>
    %392 = arith.addf %391, %370 : vector<8x64xf32>
    %393 = vector.broadcast %12 : vector<1x64xf32> to vector<8x64xf32>
    %394 = arith.addf %392, %393 : vector<8x64xf32>
    %395 = vector.extract_strided_slice %394 {offsets = [0, 0], sizes = [8, 48], strides = [1, 1]} : vector<8x64xf32> to vector<8x48xf32>
    %396 = arith.negf %395 : vector<8x48xf32>
    %397 = math.exp %396 : vector<8x48xf32>
    %cst_85 = arith.constant 1.000000e+00 : f32
    %398 = vector.broadcast %cst_85 : f32 to vector<8x48xf32>
    %399 = arith.addf %398, %397 : vector<8x48xf32>
    %400 = arith.divf %398, %399 : vector<8x48xf32>
    %401 = vector.extract_strided_slice %400 {offsets = [0, 0], sizes = [8, 16], strides = [1, 1]} : vector<8x48xf32> to vector<8x16xf32>
    %402 = vector.extract_strided_slice %400 {offsets = [0, 16], sizes = [8, 16], strides = [1, 1]} : vector<8x48xf32> to vector<8x16xf32>
    %403 = vector.extract_strided_slice %400 {offsets = [0, 32], sizes = [8, 16], strides = [1, 1]} : vector<8x48xf32> to vector<8x16xf32>
    %404 = vector.extract_strided_slice %394 {offsets = [0, 48], sizes = [8, 16], strides = [1, 1]} : vector<8x64xf32> to vector<8x16xf32>
    %405 = math.tanh %404 : vector<8x16xf32>
    %406 = arith.mulf %402, %360 : vector<8x16xf32>
    %407 = arith.mulf %401, %405 : vector<8x16xf32>
    %408 = arith.addf %406, %407 : vector<8x16xf32>
    %409 = math.tanh %408 : vector<8x16xf32>
    %410 = arith.mulf %403, %409 : vector<8x16xf32>
    %411 = tpu.concatenate %74, %122, %170, %218, %266, %314, %362, %410 in 1 : vector<8x16xf32>, vector<8x16xf32>, vector<8x16xf32>, vector<8x16xf32>, vector<8x16xf32>, vector<8x16xf32>, vector<8x16xf32>, vector<8x16xf32> -> vector<8x128xf32>
    %c0_86 = arith.constant 0 : index
    %c0_87 = arith.constant 0 : index
    %412 = vector.load %arg14[%c0_86, %c0_87] : memref<8x128xf32, #tpu.memory_space<vmem>>, vector<8x128xf32>
    tpu.vector_store %arg14[%c0_86, %c0_87], %411 {strides = array<i32>} : memref<8x128xf32, #tpu.memory_space<vmem>>, vector<8x128xf32>,
    return
  }
  func.func @transform_0(%arg0: i32) -> (i32, i32, i32, i32) {
    %c0_i32 = arith.constant 0 : i32
    %c0_i32_0 = arith.constant 0 : i32
    %c0_i32_1 = arith.constant 0 : i32
    %c0_i32_2 = arith.constant 0 : i32
    return %arg0, %c0_i32, %c0_i32_0, %c0_i32_1 : i32, i32, i32, i32
  }
  func.func @transform_1(%arg0: i32) -> (i32, i32) {
    %c0_i32 = arith.constant 0 : i32
    %c0_i32_0 = arith.constant 0 : i32
    %c0_i32_1 = arith.constant 0 : i32
    return %c0_i32, %c0_i32_0 : i32, i32
  }
  func.func @transform_2(%arg0: i32) -> (i32, i32) {
    %c0_i32 = arith.constant 0 : i32
    %c0_i32_0 = arith.constant 0 : i32
    %c0_i32_1 = arith.constant 0 : i32
    return %c0_i32, %c0_i32_0 : i32, i32
  }
  func.func @transform_3(%arg0: i32) -> (i32, i32) {
    %c0_i32 = arith.constant 0 : i32
    %c0_i32_0 = arith.constant 0 : i32
    %c0_i32_1 = arith.constant 0 : i32
    return %c0_i32, %c0_i32_0 : i32, i32
  }
  func.func @transform_4(%arg0: i32) -> (i32, i32) {
    %c0_i32 = arith.constant 0 : i32
    %c0_i32_0 = arith.constant 0 : i32
    %c0_i32_1 = arith.constant 0 : i32
    return %c0_i32, %c0_i32_0 : i32, i32
  }
  func.func @transform_5(%arg0: i32) -> (i32, i32) {
    %c0_i32 = arith.constant 0 : i32
    %c0_i32_0 = arith.constant 0 : i32
    %c0_i32_1 = arith.constant 0 : i32
    return %c0_i32, %c0_i32_0 : i32, i32
  }
  func.func @transform_6(%arg0: i32) -> (i32, i32) {
    %c0_i32 = arith.constant 0 : i32
    %c0_i32_0 = arith.constant 0 : i32
    %c0_i32_1 = arith.constant 0 : i32
    return %c0_i32, %c0_i32_0 : i32, i32
  }
  func.func @transform_7(%arg0: i32) -> (i32, i32) {
    %c0_i32 = arith.constant 0 : i32
    %c0_i32_0 = arith.constant 0 : i32
    %c0_i32_1 = arith.constant 0 : i32
    return %c0_i32, %c0_i32_0 : i32, i32
  }
  func.func @transform_8(%arg0: i32) -> (i32, i32) {
    %c0_i32 = arith.constant 0 : i32
    %c0_i32_0 = arith.constant 0 : i32
    %c0_i32_1 = arith.constant 0 : i32
    return %c0_i32, %c0_i32_0 : i32, i32
  }
  func.func @transform_9(%arg0: i32) -> (i32, i32) {
    %c0_i32 = arith.constant 0 : i32
    %c0_i32_0 = arith.constant 0 : i32
    %c0_i32_1 = arith.constant 0 : i32
    return %c0_i32, %c0_i32_0 : i32, i32
  }
  func.func @transform_10(%arg0: i32) -> (i32, i32) {
    %c0_i32 = arith.constant 0 : i32
    %c0_i32_0 = arith.constant 0 : i32
    %c0_i32_1 = arith.constant 0 : i32
    return %c0_i32, %c0_i32_0 : i32, i32
  }
  func.func @transform_11(%arg0: i32) -> (i32, i32) {
    %c0_i32 = arith.constant 0 : i32
    %c0_i32_0 = arith.constant 0 : i32
    %c0_i32_1 = arith.constant 0 : i32
    return %c0_i32, %c0_i32_0 : i32, i32
  }
  func.func @transform_12(%arg0: i32) -> (i32, i32) {
    %c0_i32 = arith.constant 0 : i32
    %c0_i32_0 = arith.constant 0 : i32
    %c0_i32_1 = arith.constant 0 : i32
    return %c0_i32, %c0_i32_0 : i32, i32
  }
  func.func @transform_13(%arg0: i32) -> (i32, i32) {
    %c0_i32 = arith.constant 0 : i32
    %c0_i32_0 = arith.constant 0 : i32
    return %arg0, %c0_i32 : i32, i32
  }
}

</mosaic_0001>

<bundles_post_ra>
// kernel: encoder_forward.1
= control target key start
LH: loop header
LB: loop body
LE: loop exit
PB: predicated region body
PF: predicated region fallthrough
CT: control target
= control target key end

     0   :  { %vm196_vm0 = vcmask 64512   ;;  %vm6515_vm1 = vmmov 0   ;;  %vm776_vm2 = vcmask 1041409   ;;  %vm778_vm3 = vcmask 1042434   ;;  %s6518_s30 = smov 80   ;;  %s6519_s14 = smov 16   ;;  %s8694_s0 = inlined_call_operand.vmem [shape: f32[8,8,8,8], index: 0, kind: input, shape index: {}]   ;;  %s8695_s1 = inlined_call_operand.vmem [shape: f32[1,8], index: 1, kind: input, shape index: {}]   ;;  %s8696_s4 = inlined_call_operand.vmem [shape: bf16[16,8], index: 4, kind: input, shape index: {}]   ;;  %s8697_s3 = inlined_call_operand.vmem [shape: bf16[16,8], index: 3, kind: input, shape index: {}]   ;;  %s8698_s2 = inlined_call_operand.<no memory space> [shape: f32[1,1], index: 2, kind: input, shape index: {}]   ;;  %s8699_s6 = inlined_call_operand.vmem [shape: f32[8,8], index: 6, kind: input, shape index: {}]   ;;  %s8700_s5 = inlined_call_operand.vmem [shape: f32[1,8], index: 5, kind: input, shape index: {}]   ;;  %s8701_s7 = inlined_call_operand.vmem [shape: f32[1,8], index: 7, kind: input, shape index: {}]   ;;  %s8702_s8 = inlined_call_operand.vmem [shape: f32[1,8], index: 8, kind: input, shape index: {}]   ;;  %s8703_s9 = inlined_call_operand.<no memory space> [shape: f32[1,1], index: 9, kind: input, shape index: {}]   ;;  %s8704_s11 = inlined_call_operand.vmem [shape: bf16[16,64], index: 11, kind: input, shape index: {}]   ;;  %s8705_s10 = inlined_call_operand.vmem [shape: bf16[8,64], index: 10, kind: input, shape index: {}]   ;;  %s8706_s12 = inlined_call_operand.vmem [shape: f32[1,64], index: 12, kind: input, shape index: {}]   ;;  %s8707_s13 = inlined_call_operand.vmem [shape: f32[8,128], index: 13, kind: output, shape index: {}]  }
   0x1   :  { %v49_v0 = vld [vmem:[%s8694_s0 + $0x10] sm:$0xff]  ;;  %v6601_v1 = vld [vmem:[%s8695_s1] ss:$0 sm:$0xff]  ;;  %v48_v6 = vld [vmem:[%s8694_s0 + $0x8] sm:$0xff]  ;;  %vm780_vm4 = vcmask 1043459   ;;  %vm782_vm5 = vcmask 1044484  }
   0x2   :  { %v47_v2 = vld [vmem:[%s8694_s0] sm:$0xff]  ;;  %v134_v3 = vmul.f32 %v6601_v1, %v49_v0  ;;  %v133_v8 = vmul.f32 %v6601_v1, %v48_v6  ;;  %v50_v9 = vld [vmem:[%s8694_s0 + $0x18] sm:$0xff]  ;;  %v56_v10 = vld [vmem:[%s8694_s0 + $0x48] sm:$0xff]  ;;  %vm784_vm6 = vcmask 1045509   ;;  %vm786_vm7 = vcmask 1046534   ;;  %s6520_s15 = smov 112  }
   0x3   :  { %v132_v4 = vmul.f32 %v6601_v1, %v47_v2  ;;  %v55_v5 = vld [vmem:[%s8694_s0 + $0x40] sm:$0xff]  ;;  %v135_v15 = vmul.f32 %v6601_v1, %v50_v9  ;;  %v141_v16 = vmul.f32 %v6601_v1, %v56_v10  ;;  %v57_v18 = vld [vmem:[%s8694_s0 + $0x50] sm:$0xff]  ;;  %v52_v23 = vld [vmem:[%s8694_s0 + $0x28] sm:$0xff]  ;;  %vm788_vm8 = vcmask 1047559   ;;  %s6521_s16 = smov 96   ;;  %s6523_s22 = smov 32  }
   0x4   :  { %v140_v7 = vmul.f32 %v6601_v1, %v55_v5  ;;  %v203_v11 = vsel %vm196_vm0, %v134_v3, 0.0  ;;  %v200_v14 = vsel %vm196_vm0, %v133_v8, 0.0  ;;  %v51_v17 = vld [vmem:[%s8694_s0 + $0x20] sm:$0xff]  ;;  %v142_v22 = vmul.f32 %v6601_v1, %v57_v18  ;;  %v58_v24 = vld [vmem:[%s8694_s0 + $0x58] sm:$0xff]  ;;  %v88_v31 = vld [vmem:[%s8694_s0 + $0x148] sm:$0xff] }
   0x5   :  { %v197_v12 = vsel %vm196_vm0, %v132_v4, 0.0  ;;  %204 = vadd.xlane.f32.xlu1 %v203_v11  ;;  %v206_v19 = vsel %vm196_vm0, %v135_v15, 0.0  ;;  %v224_v20 = vsel %vm196_vm0, %v141_v16, 0.0  ;;  %v136_v21 = vmul.f32 %v6601_v1, %v51_v17  ;;  %v63_v29 = vld [vmem:[%s8694_s0 + $0x80] sm:$0xff]  ;;  %v77_v33 = vld [vmem:[%s8694_s0 + $0xf0] sm:$0xff]  ;;  %v70_v34 = vld [vmem:[%s8694_s0 + $0xb8] sm:$0xff] }
   0x6   :  { %198 = vadd.xlane.f32.xlu0 %v197_v12  ;;  %v221_v13 = vsel %vm196_vm0, %v140_v7, 0.0  ;;  %v227_v26 = vsel %vm196_vm0, %v142_v22, 0.0  ;;  %v137_v27 = vmul.f32 %v6601_v1, %v52_v23  ;;  %v143_v28 = vmul.f32 %v6601_v1, %v58_v24  ;;  %v59_v30 = vld [vmem:[%s8694_s0 + $0x60] sm:$0xff]  ;;  %v89_v35 = vld [vmem:[%s8694_s0 + $0x150] sm:$0xff]  ;;  %v82_v38 = vld [vmem:[%s8694_s0 + $0x118] sm:$0xff] }
   0x7   :  { %v209_v25 = vsel %vm196_vm0, %v136_v21, 0.0  ;;  %v87_v32 = vld [vmem:[%s8694_s0 + $0x140] sm:$0xff]  ;;  %v148_v36 = vmul.f32 %v6601_v1, %v63_v29  ;;  %v144_v37 = vmul.f32 %v6601_v1, %v59_v30  ;;  %v53_v42 = vld [vmem:[%s8694_s0 + $0x30] sm:$0xff]  ;;  %v64_v43 = vld [vmem:[%s8694_s0 + $0x88] sm:$0xff]  ;;  %v6686_v44 = vmul.f32 %v6601_v1, %v88_v31 }
   0x8   :  { %v83_v39 = vld [vmem:[%s8694_s0 + $0x120] sm:$0xff]  ;;  %v212_v40 = vsel %vm196_vm0, %v137_v27, 0.0  ;;  %v230_v41 = vsel %vm196_vm0, %v143_v28, 0.0  ;;  %v6689_v45 = vmul.f32 %v6601_v1, %v87_v32  ;;  %v78_v46 = vld [vmem:[%s8694_s0 + $0xf8] sm:$0xff]  ;;  %v6695_v47 = vmul.f32 %v6601_v1, %v77_v33  ;;  %v84_v50 = vld [vmem:[%s8694_s0 + $0x128] sm:$0xff] }
   0x9   :  { %222 = vadd.xlane.f32.xlu1 %v221_v13  ;;  %v6698_v48 = vmul.f32 %v6601_v1, %v70_v34  ;;  %v6701_v49 = vmul.f32 %v6601_v1, %v89_v35  ;;  %v90_v51 = vld [vmem:[%s8694_s0 + $0x158] sm:$0xff]  ;;  %v6710_v52 = vmul.f32 %v6601_v1, %v82_v38  ;;  %v6713_v53 = vmul.f32 %v6601_v1, %v83_v39  ;;  %v95_v54 = vld [vmem:[%s8694_s0 + $0x180] sm:$0xff]  ;;  %v85_v56 = vld [vmem:[%s8694_s0 + $0x130] sm:$0xff] }
   0xa   :  { %201 = vadd.xlane.f32.xlu0 %v200_v14  ;;  %v91_v55 = vld [vmem:[%s8694_s0 + $0x160] sm:$0xff]  ;;  %v138_v57 = vmul.f32 %v6601_v1, %v53_v42  ;;  %v149_v58 = vmul.f32 %v6601_v1, %v64_v43  ;;  %v6727_v59 = vmul.f32 %v6601_v1, %v78_v46  ;;  %v96_v60 = vld [vmem:[%s8694_s0 + $0x188] sm:$0xff]  ;;  %v97_v61 = vld [vmem:[%s8694_s0 + $0x190] sm:$0xff]  ;;  %v245_v62 = vsel %vm196_vm0, %v148_v36, 0.0 }
   0xb   :  { %v233_v63 = vsel %vm196_vm0, %v144_v37, 0.0  ;;  %v65_v0 = vld [vmem:[%s8694_s0 + $0x90] sm:$0xff]  ;;  %v6741_v2 = vmul.f32 %v6601_v1, %v84_v50  ;;  %v6744_v3 = vmul.f32 %v6601_v1, %v90_v51  ;;  %v92_v4 = vld [vmem:[%s8694_s0 + $0x168] sm:$0xff]  ;;  %v6753_v6 = vmul.f32 %v6601_v1, %v95_v54  ;;  %v103_v10 = vld [vmem:[%s8694_s0 + $0x1c0] sm:$0xff] }
   0xc   :  { %v60_v5 = vld [vmem:[%s8694_s0 + $0x68] sm:$0xff]  ;;  %v6756_v7 = vmul.f32 %v6601_v1, %v91_v55  ;;  %v6759_v8 = vmul.f32 %v6601_v1, %v85_v56  ;;  %v6768_v11 = vmul.f32 %v6601_v1, %v96_v60  ;;  %v6771_v12 = vmul.f32 %v6601_v1, %v97_v61  ;;  %v93_v13 = vld [vmem:[%s8694_s0 + $0x170] sm:$0xff]  ;;  %v86_v14 = vld [vmem:[%s8694_s0 + $0x138] sm:$0xff] }
   0xd   :  { %207 = vadd.xlane.f32.xlu1 %v206_v19  ;;  %v104_v9 = vld [vmem:[%s8694_s0 + $0x1c8] sm:$0xff]  ;;  %v105_v15 = vld [vmem:[%s8694_s0 + $0x1d0] sm:$0xff]  ;;  %v215_v16 = vsel %vm196_vm0, %v138_v57, 0.0  ;;  %v150_v17 = vmul.f32 %v6601_v1, %v65_v0  ;;  %v6785_v18 = vmul.f32 %v6601_v1, %v92_v4  ;;  %v98_v19 = vld [vmem:[%s8694_s0 + $0x198] sm:$0xff]  ;;  %v248_v21 = vsel %vm196_vm0, %v149_v58, 0.0 }
   0xe   :  { %225 = vadd.xlane.f32.xlu0 %v224_v20  ;;  %v99_v20 = vld [vmem:[%s8694_s0 + $0x1a0] sm:$0xff]  ;;  %v145_v22 = vmul.f32 %v6601_v1, %v60_v5  ;;  %v72_v23 = vld [vmem:[%s8694_s0 + $0xc8] sm:$0xff]  ;;  %v6799_v24 = vmul.f32 %v6601_v1, %v104_v9  ;;  %v6811_v28 = vmul.f32 %v6601_v1, %v93_v13  ;;  %v6814_v29 = vmul.f32 %v6601_v1, %v86_v14  ;;  %v106_v32 = vld [vmem:[%s8694_s0 + $0x1d8] sm:$0xff] }
   0xf   :  { %v71_v27 = vld [vmem:[%s8694_s0 + $0xc0] sm:$0xff]  ;;  %v6817_v30 = vmul.f32 %v6601_v1, %v105_v15  ;;  %v100_v31 = vld [vmem:[%s8694_s0 + $0x1a8] sm:$0xff]  ;;  %v6826_v33 = vmul.f32 %v6601_v1, %v98_v19  ;;  %v6829_v34 = vmul.f32 %v6601_v1, %v99_v20  ;;  %v101_v35 = vld [vmem:[%s8694_s0 + $0x1b0] sm:$0xff]  ;;  %v251_v38 = vsel %vm196_vm0, %v150_v17, 0.0 }
  0x10   :  { %v107_v36 = vld [vmem:[%s8694_s0 + $0x1e0] sm:$0xff]  ;;  %v102_v37 = vld [vmem:[%s8694_s0 + $0x1b8] sm:$0xff]  ;;  %v157_v39 = vmul.f32 %v6601_v1, %v72_v23  ;;  %v109_v42 = vld [vmem:[%s8694_s0 + $0x1f0] sm:$0xff]  ;;  %v236_v43 = vsel %vm196_vm0, %v145_v22, 0.0  ;;  %v156_v46 = vmul.f32 %v6601_v1, %v71_v27  ;;  %v6854_v50 = vmul.f32 %v6601_v1, %v100_v31 }
  0x11   :  { %210 = vadd.xlane.f32.xlu1 %v209_v25  ;;  %v6802_v25 = vmul.f32 %v6601_v1, %v103_v10  ;;  %v6857_v51 = vmul.f32 %v6601_v1, %v106_v32  ;;  %v110_v54 = vld [vmem:[%s8694_s0 + $0x1f8] sm:$0xff]  ;;  %v61_v55 = vld [vmem:[%s8694_s0 + $0x70] sm:$0xff]  ;;  %v6869_v57 = vmul.f32 %v6601_v1, %v101_v35  ;;  %v6872_v58 = vmul.f32 %v6601_v1, %v107_v36  ;;  %v67_v19 = vld [vmem:[%s8694_s0 + $0xa0] sm:$0xff] }
  0x12   :  { %228 = vadd.xlane.f32.xlu0 %v227_v26  ;;  %v94_v26 = vld [vmem:[%s8694_s0 + $0x178] sm:$0xff]  ;;  %v6875_v60 = vmul.f32 %v6601_v1, %v102_v37  ;;  %v272_v0 = vsel %vm196_vm0, %v157_v39, 0.0  ;;  %v269_v4 = vsel %vm196_vm0, %v156_v46, 0.0  ;;  %v146_v5 = vmul.f32 %v6601_v1, %v61_v55  ;;  %v73_v10 = vld [vmem:[%s8694_s0 + $0xd0] sm:$0xff]  ;;  %v68_v27 = vld [vmem:[%s8694_s0 + $0xa8] sm:$0xff] }
  0x13   :  { %v54_v56 = vld [vmem:[%s8694_s0 + $0x38] sm:$0xff]  ;;  %v152_v23 = vmul.f32 %v6601_v1, %v67_v19  ;;  %v153_v36 = vmul.f32 %v6601_v1, %v68_v27  ;;  %v75_v39 = vld [vmem:[%s8694_s0 + $0xe0] sm:$0xff]  ;;  %v80_v55 = vld [vmem:[%s8694_s0 + $0x108] sm:$0xff]  ;;  %vm1756_vm9 = vcmask 1043456   ;;  %vm1244_vm10 = vcmask 130048  }
  0x14   :  { %v139_v9 = vmul.f32 %v6601_v1, %v54_v56  ;;  %v66_v13 = vld [vmem:[%s8694_s0 + $0x98] sm:$0xff]  ;;  %v239_v14 = vsel %vm196_vm0, %v146_v5, 0.0  ;;  %v160_v46 = vmul.f32 %v6601_v1, %v75_v39  ;;  %v165_v5 = vmul.f32 %v6601_v1, %v80_v55 }
  0x15   :  { %213 = vadd.xlane.f32.xlu1 %v212_v40  ;;  %v6843_v40 = vmul.f32 %v6601_v1, %v94_v26  ;;  %v151_v17 = vmul.f32 %v6601_v1, %v66_v13  ;;  %v62_v20 = vld [vmem:[%s8694_s0 + $0x78] sm:$0xff]  ;;  %v257_v32 = vsel %vm196_vm0, %v152_v23, 0.0  ;;  %v323_v23 = vsel %vm196_vm0, %v6701_v49, 0.0 }
  0x16   :  { %231 = vadd.xlane.f32.xlu0 %v230_v41  ;;  %v108_v41 = vld [vmem:[%s8694_s0 + $0x1e8] sm:$0xff]  ;;  %v218_v15 = vsel %vm196_vm0, %v139_v9, 0.0  ;;  %v147_v26 = vmul.f32 %v6601_v1, %v62_v20  ;;  %v74_v31 = vld [vmem:[%s8694_s0 + $0xd8] sm:$0xff]  ;;  %v81_v9 = vld [vmem:[%s8694_s0 + $0x110] sm:$0xff]  ;;  %v320_v20 = vsel %vm196_vm0, %v6686_v44, 0.0  ;;  %v305_v44 = vsel %vm196_vm0, %v6713_v53, 0.0 }
  0x17   :  { %v6878_v61 = vmul.f32 %v6601_v1, %v108_v41  ;;  %v254_v22 = vsel %vm196_vm0, %v151_v17, 0.0  ;;  %v159_v37 = vmul.f32 %v6601_v1, %v74_v31  ;;  %v260_v41 = vsel %vm196_vm0, %v153_v36, 0.0 }
  0x18   :  { %v242_v35 = vsel %vm196_vm0, %v147_v26, 0.0  ;;  %v302_v26 = vsel %vm196_vm0, %v6710_v52, 0.0  ;;  %v341_v49 = vsel %vm196_vm0, %v6753_v6, 0.0  ;;  %v329_v52 = vsel %vm196_vm0, %v6756_v7, 0.0 }
  0x19   :  { %246 = vadd.xlane.f32.xlu1 %v245_v62  ;;  %v6881_v62 = vmul.f32 %v6601_v1, %v109_v42  ;;  %v278_v42 = vsel %vm196_vm0, %v159_v37, 0.0  ;;  %v311_v53 = vsel %vm196_vm0, %v6759_v8, 0.0  ;;  %v368_v6 = vsel %vm196_vm0, %v6799_v24, 0.0 }
  0x1a   :  { %234 = vadd.xlane.f32.xlu0 %v233_v63  ;;  %v6884_v63 = vmul.f32 %v6601_v1, %v110_v54  ;;  %v69_v54 = vld [vmem:[%s8694_s0 + $0xb0] sm:$0xff]  ;;  %v365_v7 = vsel %vm196_vm0, %v6802_v25, 0.0  ;;  %v335_v8 = vsel %vm196_vm0, %v6811_v28, 0.0  ;;  %v353_v24 = vsel %vm196_vm0, %v6829_v34, 0.0 }
  0x1b   :  { %v338_v25 = vsel %vm196_vm0, %v6843_v40, 0.0  ;;  %v356_v28 = vsel %vm196_vm0, %v6854_v50, 0.0  ;;  %v362_v34 = vsel %vm196_vm0, %v6875_v60, 0.0  ;;  %v380_v40 = vsel %vm196_vm0, %v6878_v61, 0.0  ;;  %v6156_v60 = vld [vmem:[%s8696_s4] sm:$0xff]  }
  0x1c   :  { %v383_v50 = vsel %vm196_vm0, %v6881_v62, 0.0  ;;  %v6157_v61 = vld [vmem:[%s8697_s3] sm:$0xff]   ;;  %v7042_v55 = vstv %s8698_s2  ;;  %vm5794_vm11 = vcmask 261120   ;;  %vm5796_vm12 = vcmask 392192  }
  0x1d   :  { %216 = vadd.xlane.f32.xlu1 %v215_v16  ;;  %v158_v16 = vmul.f32 %v6601_v1, %v73_v10  ;;  %v76_v10 = vld [vmem:[%s8694_s0 + $0xe8] sm:$0xff]  ;;  %vm5798_vm13 = vcmask 523264   ;;  %vm5800_vm14 = vcmask 654336   ;;  %vm5802_vm15 = vcmask 785408  }
  0x1e   :  { %249 = vadd.xlane.f32.xlu0 %v248_v21 }
  0x1f   :  { %v275_v21 = vsel %vm196_vm0, %v158_v16, 0.0  ;;  %v161_v16 = vmul.f32 %v6601_v1, %v76_v10 }
  0x21   :  { %252 = vadd.xlane.f32.xlu1 %v251_v38  ;;  %v79_v38 = vld [vmem:[%s8694_s0 + $0x100] sm:$0xff]  ;;  %v284_v19 = vsel %vm196_vm0, %v161_v16, 0.0 }
  0x22   :  { %237 = vadd.xlane.f32.xlu0 %v236_v43  ;;  %v164_v43 = vmul.f32 %v6601_v1, %v79_v38 }
  0x24   :  { %v293_v56 = vsel %vm196_vm0, %v164_v43, 0.0 }
  0x25   :  { %273 = vadd.xlane.f32.xlu1 %v272_v0  ;;  %v281_v0 = vsel %vm196_vm0, %v160_v46, 0.0 }
  0x26   :  { %270 = vadd.xlane.f32.xlu0 %v269_v4  ;;  %v154_v4 = vmul.f32 %v6601_v1, %v69_v54 }
  0x28   :  { %v263_v13 = vsel %vm196_vm0, %v154_v4, 0.0 }
  0x29   :  { %240 = vadd.xlane.f32.xlu1 %v239_v14  ;;  %v296_v14 = vsel %vm196_vm0, %v165_v5, 0.0 }
  0x2a   :  { %219 = vadd.xlane.f32.xlu0 %v218_v15  ;;  %v166_v15 = vmul.f32 %v6601_v1, %v81_v9  ;;  %v266_v1 = vsel %vm196_vm0, %v6698_v48, 0.0  ;;  %v326_v48 = vsel %vm196_vm0, %v6744_v3, 0.0  ;;  %v332_v3 = vsel %vm196_vm0, %v6785_v18, 0.0 }
  0x2b   :  { %v350_v18 = vsel %vm196_vm0, %v6826_v33, 0.0  ;;  %v377_v33 = vsel %vm196_vm0, %v6872_v58, 0.0 }
  0x2c   :  { %v299_v17 = vsel %vm196_vm0, %v166_v15, 0.0 }
  0x2d   :  { %276 = vadd.xlane.f32.xlu1 %v275_v21  ;;  %v317_v21 = vsel %vm196_vm0, %v6689_v45, 0.0  ;;  %v290_v45 = vsel %vm196_vm0, %v6727_v59, 0.0  ;;  %v344_v59 = vsel %vm196_vm0, %v6768_v11, 0.0  ;;  %v314_v11 = vsel %vm196_vm0, %v6814_v29, 0.0 }
  0x2e   :  { %255 = vadd.xlane.f32.xlu0 %v254_v22  ;;  %v287_v22 = vsel %vm196_vm0, %v6695_v47, 0.0  ;;  %v308_v47 = vsel %vm196_vm0, %v6741_v2, 0.0  ;;  %v347_v2 = vsel %vm196_vm0, %v6771_v12, 0.0  ;;  %v371_v12 = vsel %vm196_vm0, %v6817_v30, 0.0 }
  0x2f   :  { %v374_v29 = vsel %vm196_vm0, %v6857_v51, 0.0  ;;  %v359_v30 = vsel %vm196_vm0, %v6869_v57, 0.0  ;;  %v386_v51 = vsel %vm196_vm0, %v6884_v63, 0.0 }
  0x31   :  { %258 = vadd.xlane.f32.xlu1 %v257_v32  ;;  %v8708_v32 = vmov 0.0  }
  0x32   :  { %243 = vadd.xlane.f32.xlu0 %v242_v35  ;;  %5951 = vmatprep.subr.bf16.mxu1 %v8708_v32  ;;  %v8710_v35 = vmov 0  }
  0x33   :  { %5953 = vmatprep.mubr.msk.bf16.mxu1 %vm6515_vm1, %v8708_v32  ;;  %5952 = vmatpush3.bf16.msra.mxu1 %v6156_v60  ;;  %v118_v60 = vld [vmem:[%s8699_s6] sm:$0xff] }
  0x34   :  { %5957 = vmatprep.subr.bf16.mxu1 %v8708_v32  ;;  %5937 = vmatprep.subr.mxu0 %v118_v60 }
  0x35   :  { %261 = vadd.xlane.f32.xlu1 %v260_v41  ;;  %v518_v41 = vlaneseq  ;;  %5938 = vmatpush3.msra.mxu0 %v118_v60 }
  0x36   :  { %279 = vadd.xlane.f32.xlu0 %v278_v42  ;;  %5954 = vmatmul.mubr.bf16.vlgmr.msra.gmra.mrb[0].mxu1 %v8710_v35 }
  0x37   :  { %5958 = vmatpush3.bf16.msra.mxu1 %v6157_v61  ;;  %5959 = vmatprep.mubr.msk.bf16.mxu1 %vm6515_vm1, %v8708_v32  ;;  %v519_v46 = vand.u32 127, %v518_v41  ;;  %v7037_v54 = vshrl.u32 %v518_v41, 7 }
  0x38   :  { %5969 = vmatprep.subr.bf16.mxu1 %v8708_v32  ;;  %5963 = vmatprep.subr.bf16.mxu0 %v8708_v32 }
  0x39   :  { %294 = vadd.xlane.f32.xlu1 %v293_v56  ;;  %v7050_v5 = vsub.s32 %v519_v46, %v7037_v54 }
  0x3a   :  { %282 = vadd.xlane.f32.xlu0 %v281_v0 }
  0x3d   :  { %264 = vadd.xlane.f32.xlu1 %v263_v13 }
  0x3e   :  { %297 = vadd.xlane.f32.xlu0 %v296_v14  ;;  %5960 = vmatmul.mubr.bf16.vlgmr.msra.gmra.mrb[4].mxu1 %v8710_v35 }
  0x3f   :  { %5971 = vmatprep.mubr.msk.bf16.mxu1 %vm6515_vm1, %v8708_v32 }
  0x41   :  { %300 = vadd.xlane.f32.xlu1 %v299_v17 }
  0x42   :  { %285 = vadd.xlane.f32.xlu0 %v284_v19 }
  0x45   :  { %321 = vadd.xlane.f32.xlu1 %v320_v20 }
  0x46   :  { %318 = vadd.xlane.f32.xlu0 %v317_v21 }
  0x49   :  { %288 = vadd.xlane.f32.xlu1 %v287_v22 }
  0x4a   :  { %267 = vadd.xlane.f32.xlu0 %v266_v1 }
  0x4d   :  { %324 = vadd.xlane.f32.xlu1 %v323_v23 }
  0x4e   :  { %303 = vadd.xlane.f32.xlu0 %v302_v26 }
  0x51   :  { %306 = vadd.xlane.f32.xlu1 %v305_v44 }
  0x52   :  { %291 = vadd.xlane.f32.xlu0 %v290_v45 }
  0x55   :  { %309 = vadd.xlane.f32.xlu1 %v308_v47 }
  0x56   :  { %327 = vadd.xlane.f32.xlu0 %v326_v48 }
  0x59   :  { %342 = vadd.xlane.f32.xlu1 %v341_v49 }
  0x5a   :  { %330 = vadd.xlane.f32.xlu0 %v329_v52 }
  0x5d   :  { %312 = vadd.xlane.f32.xlu1 %v311_v53 }
  0x5e   :  { %345 = vadd.xlane.f32.xlu0 %v344_v59 }
  0x61   :  { %348 = vadd.xlane.f32.xlu1 %v347_v2 }
  0x62   :  { %333 = vadd.xlane.f32.xlu0 %v332_v3 }
  0x65   :  { %369 = vadd.xlane.f32.xlu1 %v368_v6 }
  0x66   :  { %366 = vadd.xlane.f32.xlu0 %v365_v7 }
  0x69   :  { %336 = vadd.xlane.f32.xlu1 %v335_v8 }
  0x6a   :  { %315 = vadd.xlane.f32.xlu0 %v314_v11 }
  0x6d   :  { %372 = vadd.xlane.f32.xlu1 %v371_v12 }
  0x6e   :  { %351 = vadd.xlane.f32.xlu0 %v350_v18 }
  0x71   :  { %354 = vadd.xlane.f32.xlu1 %v353_v24 }
  0x72   :  { %339 = vadd.xlane.f32.xlu0 %v338_v25 }
  0x75   :  { %357 = vadd.xlane.f32.xlu1 %v356_v28 }
  0x76   :  { %375 = vadd.xlane.f32.xlu0 %v374_v29 }
  0x79   :  { %360 = vadd.xlane.f32.xlu1 %v359_v30 }
  0x7a   :  { %378 = vadd.xlane.f32.xlu0 %v377_v33 }
  0x7d   :  { %363 = vadd.xlane.f32.xlu1 %v362_v34 }
  0x7e   :  { %381 = vadd.xlane.f32.xlu0 %v380_v40 }
  0x81   :  { %387 = vadd.xlane.f32.xlu1 %v386_v51 }
  0x82   :  { %384 = vadd.xlane.f32.xlu0 %v383_v50 }
  0x92   :  { %v205_v57 = vpop.xlane.xlu1 %204 }
  0x93   :  { %v199_v58 = vpop.xlane.xlu0 %198  ;;  %v7063_v16 = vadd.f32 %v7042_v55, %v205_v57 }
  0x94   :  { %v7053_v9 = vadd.f32 %v7042_v55, %v199_v58 }
  0x95   :  { %8763 = vst [vmem:[#allocation5_spill] sm:$0xff] %v7063_v16  ;;  %v531_v44 = vrot.slane %v7063_v16, %v7050_v5 }
  0x96   :  { %v7016_v27 = vpop.xlane.xlu1 %222  ;;  %v523_v19 = vrot.slane %v7053_v9, %v7050_v5 }
  0x97   :  { %v202_v31 = vpop.xlane.xlu0 %201  ;;  %v7100_v3 = vadd.f32 %v7042_v55, %v7016_v27 }
  0x98   :  { %v7047_v4 = vadd.f32 %v7042_v55, %v202_v31 }
  0x99   :  { %v555_v50 = vrot.slane %v7100_v3, %v7050_v5 }
  0x9a   :  { %v208_v62 = vpop.xlane.xlu1 %207  ;;  %v527_v14 = vrot.slane %v7047_v4, %v7050_v5 }
  0x9b   :  { %v226_v63 = vpop.xlane.xlu0 %225  ;;  %v7060_v15 = vadd.f32 %v7042_v55, %v208_v62 }
  0x9c   :  { %v777_v23 = vsel %vm776_vm2, %v527_v14, %v523_v19  ;;  %v7088_v47 = vadd.f32 %v7042_v55, %v226_v63 }
  0x9d   :  { %8762 = vst [vmem:[#allocation4_spill] sm:$0xff] %v7060_v15  ;;  %v535_v26 = vrot.slane %v7060_v15, %v7050_v5  ;;  %v779_v49 = vsel %vm778_vm3, %v531_v44, %v777_v23  ;;  %v7602_v15 = vsub.s32 5, %v7037_v54 }
  0x9e   :  { %v211_v36 = vpop.xlane.xlu1 %210  ;;  %v559_v18 = vrot.slane %v7088_v47, %v7050_v5 }
  0x9f   :  { %v229_v37 = vpop.xlane.xlu0 %228  ;;  %v7066_v17 = vadd.f32 %v7042_v55, %v211_v36  ;;  %v781_v6 = vsel %vm780_vm4, %v535_v26, %v779_v49 }
  0xa0   :  { %v7094_v52 = vadd.f32 %v7042_v55, %v229_v37  ;;  %v790_v27 = vsel %vm776_vm2, %v559_v18, %v555_v50 }
  0xa1   :  { %8764 = vst [vmem:[#allocation6_spill] sm:$0xff] %v7066_v17  ;;  %v539_v45 = vrot.slane %v7066_v17, %v7050_v5 }
  0xa2   :  { %v214_v38 = vpop.xlane.xlu1 %213  ;;  %8767 = vst [vmem:[#allocation9_spill] sm:$0xff] %v7094_v52  ;;  %v563_v29 = vrot.slane %v7094_v52, %v7050_v5 }
  0xa3   :  { %v232_v39 = vpop.xlane.xlu0 %231  ;;  %v7071_v20 = vadd.f32 %v7042_v55, %v214_v38  ;;  %v783_v12 = vsel %vm782_vm5, %v539_v45, %v781_v6 }
  0xa4   :  { %v7104_v7 = vadd.f32 %v7042_v55, %v232_v39  ;;  %v791_v61 = vsel %vm778_vm3, %v563_v29, %v790_v27 }
  0xa5   :  { %8765 = vst [vmem:[#allocation7_spill] sm:$0xff] %v7071_v20  ;;  %v543_v48 = vrot.slane %v7071_v20, %v7050_v5 }
  0xa6   :  { %v7035_v42 = vpop.xlane.xlu1 %246  ;;  %8768 = vst [vmem:[#allocation10_spill] sm:$0xff] %v7104_v7  ;;  %v567_v51 = vrot.slane %v7104_v7, %v7050_v5 }
  0xa7   :  { %v235_v43 = vpop.xlane.xlu0 %234  ;;  %v785_v28 = vsel %vm784_vm6, %v543_v48, %v783_v12 }
  0xa8   :  { %v7110_v11 = vadd.f32 %v7042_v55, %v235_v43  ;;  %v792_v37 = vsel %vm780_vm4, %v567_v51, %v791_v61 }
  0xaa   :  { %v217_v56 = vpop.xlane.xlu1 %216  ;;  %8770 = vst [vmem:[#allocation12_spill] sm:$0xff] %v7110_v11  ;;  %v571_v58 = vrot.slane %v7110_v11, %v7050_v5 }
  0xab   :  { %v7044_v0 = vpop.xlane.xlu0 %249  ;;  %v7074_v21 = vadd.f32 %v7042_v55, %v217_v56 }
  0xac   :  { %v793_v39 = vsel %vm782_vm5, %v571_v58, %v792_v37  ;;  %v7160_v45 = vadd.f32 %v7042_v55, %v7044_v0 }
  0xad   :  { %8766 = vst [vmem:[#allocation8_spill] sm:$0xff] %v7074_v21  ;;  %v547_v53 = vrot.slane %v7074_v21, %v7050_v5 }
  0xae   :  { %v7055_v10 = vpop.xlane.xlu1 %252  ;;  %v591_v0 = vrot.slane %v7160_v45, %v7050_v5 }
  0xaf   :  { %v238_v13 = vpop.xlane.xlu0 %237  ;;  %v787_v40 = vsel %vm786_vm7, %v547_v53, %v785_v28  ;;  %v7164_v48 = vadd.f32 %v7042_v55, %v7055_v10 }
  0xb0   :  { %v7116_v24 = vadd.f32 %v7042_v55, %v238_v13 }
  0xb1   :  { %8774 = vst [vmem:[#allocation16_spill] sm:$0xff] %v7164_v48  ;;  %v595_v10 = vrot.slane %v7164_v48, %v7050_v5 }
  0xb2   :  { %v7076_v22 = vpop.xlane.xlu1 %273  ;;  %8771 = vst [vmem:[#allocation13_spill] sm:$0xff] %v7116_v24  ;;  %v575_v31 = vrot.slane %v7116_v24, %v7050_v5 }
  0xb3   :  { %v7078_v1 = vpop.xlane.xlu0 %270 }
  0xb4   :  { %v794_v43 = vsel %vm784_vm6, %v575_v31, %v793_v39  ;;  %v7205_v51 = vadd.f32 %v7042_v55, %v7078_v1 }
  0xb6   :  { %v241_v59 = vpop.xlane.xlu1 %240  ;;  %v619_v37 = vrot.slane %v7205_v51, %v7050_v5 }
  0xb7   :  { %v220_v2 = vpop.xlane.xlu0 %219  ;;  %v7124_v30 = vadd.f32 %v7042_v55, %v241_v59  ;;  %v7170_v59 = vadd.f32 %v7042_v55, %v7035_v42 }
  0xb8   :  { %v7107_v8 = vadd.f32 %v7042_v55, %v220_v2 }
  0xb9   :  { %8772 = vst [vmem:[#allocation14_spill] sm:$0xff] %v7124_v30  ;;  %v579_v62 = vrot.slane %v7124_v30, %v7050_v5  ;;  %v587_v28 = vrot.slane %v7170_v59, %v7050_v5 }
  0xba   :  { %8769 = vst [vmem:[#allocation11_spill] sm:$0xff] %v7107_v8  ;;  %v551_v25 = vrot.slane %v7107_v8, %v7050_v5  ;;  %v277_v33 = vpop.xlane.xlu1 %276 }
  0xbb   :  { %v256_v34 = vpop.xlane.xlu0 %255  ;;  %v795_v13 = vsel %vm786_vm7, %v579_v62, %v794_v43  ;;  %v797_v50 = vsel %vm776_vm2, %v591_v0, %v587_v28  ;;  %v7211_v27 = vadd.f32 %v7042_v55, %v277_v33 }
  0xbc   :  { %v789_v57 = vsel %vm788_vm8, %v551_v25, %v787_v40  ;;  %v7173_v2 = vadd.f32 %v7042_v55, %v256_v34  ;;  %v7198_v34 = vadd.f32 %v7042_v55, %v7076_v22  ;;  %v798_v58 = vsel %vm778_vm3, %v595_v10, %v797_v50 }
  0xbd   :  { %847 = vxpose.xlu0.b32.start.end [1/1] (short) (narrow) %v789_v57, 8  ;;  %8779 = vst [vmem:[#allocation21_spill] sm:$0xff] %v7211_v27 }
  0xbe   :  { %v259_v63 = vpop.xlane.xlu1 %258  ;;  %8775 = vst [vmem:[#allocation17_spill] sm:$0xff] %v7173_v2  ;;  %v599_v29 = vrot.slane %v7173_v2, %v7050_v5 }
  0xbf   :  { %v244_v36 = vpop.xlane.xlu0 %243  ;;  %v7176_v6 = vadd.f32 %v7042_v55, %v259_v63  ;;  %v623_v63 = vrot.slane %v7198_v34, %v7050_v5 }
  0xc0   :  { %v7145_v38 = vadd.f32 %v7042_v55, %v244_v36  ;;  %v799_v61 = vsel %vm780_vm4, %v599_v29, %v798_v58 }
  0xc1   :  { %8776 = vst [vmem:[#allocation18_spill] sm:$0xff] %v7176_v6  ;;  %v603_v40 = vrot.slane %v7176_v6, %v7050_v5  ;;  %v804_v10 = vsel %vm776_vm2, %v623_v63, %v619_v37 }
  0xc2   :  { %8773 = vst [vmem:[#allocation15_spill] sm:$0xff] %v7145_v38  ;;  %v583_v41 = vrot.slane %v7145_v38, %v7050_v5  ;;  %v262_v46 = vpop.xlane.xlu1 %261 }
  0xc3   :  { %v280_v56 = vpop.xlane.xlu0 %279  ;;  %v7181_v12 = vadd.f32 %v7042_v55, %v262_v46  ;;  %v800_v33 = vsel %vm782_vm5, %v603_v40, %v799_v61  ;;  %v627_v46 = vrot.slane %v7211_v27, %v7050_v5 }
  0xc4   :  { %v796_v14 = vsel %vm788_vm8, %v583_v41, %v795_v13  ;;  %v7217_v62 = vadd.f32 %v7042_v55, %v280_v56 }
  0xc5   :  { %879 = vxpose.xlu1.b32.start.end [1/1] (short) (narrow) %v796_v14, 8  ;;  %8777 = vst [vmem:[#allocation19_spill] sm:$0xff] %v7181_v12  ;;  %v607_v57 = vrot.slane %v7181_v12, %v7050_v5  ;;  %v805_v29 = vsel %vm778_vm3, %v627_v46, %v804_v10 }
  0xc6   :  { %v7154_v19 = vpop.xlane.xlu1 %294  ;;  %8780 = vst [vmem:[#allocation22_spill] sm:$0xff] %v7217_v62 }
  0xc7   :  { %v283_v23 = vpop.xlane.xlu0 %282  ;;  %v801_v43 = vsel %vm784_vm6, %v607_v57, %v800_v33 }
  0xc8   :  { %v7225_v36 = vadd.f32 %v7042_v55, %v283_v23 }
  0xca   :  { %v265_v26 = vpop.xlane.xlu1 %264  ;;  %8782 = vst [vmem:[#allocation24_spill] sm:$0xff] %v7225_v36  ;;  %v635_v0 = vrot.slane %v7225_v36, %v7050_v5 }
  0xcb   :  { %v7156_v44 = vpop.xlane.xlu0 %297  ;;  %v7186_v18 = vadd.f32 %v7042_v55, %v265_v26  ;;  %v631_v26 = vrot.slane %v7217_v62, %v7050_v5 }
  0xcd   :  { %8778 = vst [vmem:[#allocation20_spill] sm:$0xff] %v7186_v18  ;;  %v611_v22 = vrot.slane %v7186_v18, %v7050_v5  ;;  %v806_v58 = vsel %vm780_vm4, %v631_v26, %v805_v29  ;;  %v7275_v29 = vadd.f32 %v7042_v55, %v7154_v19 }
  0xce   :  { %v7166_v49 = vpop.xlane.xlu1 %300 }
  0xcf   :  { %v286_v53 = vpop.xlane.xlu0 %285  ;;  %v802_v23 = vsel %vm786_vm7, %v611_v22, %v801_v43 }
  0xd0   :  { %v7231_v39 = vadd.f32 %v7042_v55, %v286_v53 }
  0xd2   :  { %v7188_v42 = vpop.xlane.xlu1 %321  ;;  %8783 = vst [vmem:[#allocation25_spill] sm:$0xff] %v7231_v39  ;;  %v639_v28 = vrot.slane %v7231_v39, %v7050_v5 }
  0xd3   :  { %v7190_v25 = vpop.xlane.xlu0 %318 }
  0xd6   :  { %v289_v31 = vpop.xlane.xlu1 %288 }
  0xd7   :  { %v268_v60 = vpop.xlane.xlu0 %267  ;;  %v7239_v56 = vadd.f32 %v7042_v55, %v289_v31  ;;  %v807_v31 = vsel %vm782_vm5, %v635_v0, %v806_v58  ;;  %v7271_v0 = vadd.f32 %v7042_v55, %v7166_v49 }
  0xd8   :  { %v7220_v1 = vadd.f32 %v7042_v55, %v268_v60  ;;  %v808_v61 = vsel %vm784_vm6, %v639_v28, %v807_v31 }
  0xd9   :  { %8784 = vst [vmem:[#allocation26_spill] sm:$0xff] %v7239_v56  ;;  %v643_v40 = vrot.slane %v7239_v56, %v7050_v5  ;;  %8786 = vst [vmem:[#allocation28_spill] sm:$0xff] %v7271_v0  ;;  %v659_v49 = vrot.slane %v7271_v0, %v7050_v5 }
  0xda   :  { %8781 = vst [vmem:[#allocation23_spill] sm:$0xff] %v7220_v1  ;;  %v615_v41 = vrot.slane %v7220_v1, %v7050_v5  ;;  %v325_v13 = vpop.xlane.xlu1 %324 }
  0xdb   :  { %v304_v14 = vpop.xlane.xlu0 %303  ;;  %v809_v37 = vsel %vm786_vm7, %v643_v40, %v808_v61  ;;  %v7299_v61 = vadd.f32 %v7042_v55, %v7188_v42  ;;  %v7312_v35 = vadd.f32 %v7042_v55, %v325_v13 }
  0xdc   :  { %v803_v53 = vsel %vm788_vm8, %v615_v41, %v802_v23  ;;  %v7278_v40 = vadd.f32 %v7042_v55, %v304_v14  ;;  %v651_v14 = vrot.slane %v7275_v29, %v7050_v5 }
  0xdd   :  { %911 = vxpose.xlu0.b32.start.end [1/1] (short) (narrow) %v803_v53, 8  ;;  %v7267_v53 = vadd.f32 %v7042_v55, %v7156_v44  ;;  %8791 = vst [vmem:[#allocation33_spill] sm:$0xff] %v7312_v35 }
  0xde   :  { %v307_v50 = vpop.xlane.xlu1 %306  ;;  %8787 = vst [vmem:[#allocation29_spill] sm:$0xff] %v7278_v40 }
  0xdf   :  { %v292_v57 = vpop.xlane.xlu0 %291  ;;  %v655_v44 = vrot.slane %v7267_v53, %v7050_v5 }
  0xe0   :  { %v7255_v22 = vadd.f32 %v7042_v55, %v292_v57  ;;  %v7281_v57 = vadd.f32 %v7042_v55, %v307_v50  ;;  %v663_v50 = vrot.slane %v7278_v40, %v7050_v5 }
  0xe2   :  { %8785 = vst [vmem:[#allocation27_spill] sm:$0xff] %v7255_v22  ;;  %v647_v60 = vrot.slane %v7255_v22, %v7050_v5  ;;  %v310_v63 = vpop.xlane.xlu1 %309  ;;  %8788 = vst [vmem:[#allocation30_spill] sm:$0xff] %v7281_v57 }
  0xe3   :  { %v328_v33 = vpop.xlane.xlu0 %327  ;;  %v7286_v58 = vadd.f32 %v7042_v55, %v310_v63  ;;  %v667_v63 = vrot.slane %v7281_v57, %v7050_v5 }
  0xe4   :  { %v810_v41 = vsel %vm788_vm8, %v647_v60, %v809_v37  ;;  %v811_v37 = vsel %vm776_vm2, %v655_v44, %v651_v14  ;;  %v7318_v44 = vadd.f32 %v7042_v55, %v328_v33  ;;  %v687_v14 = vrot.slane %v7299_v61, %v7050_v5 }
  0xe5   :  { %943 = vxpose.xlu0.b32.start.end [1/1] (short) (narrow) %v810_v41, 8  ;;  %8789 = vst [vmem:[#allocation31_spill] sm:$0xff] %v7286_v58  ;;  %v7306_v41 = vadd.f32 %v7042_v55, %v7190_v25  ;;  %v812_v32 = vsel %vm778_vm3, %v659_v49, %v811_v37  ;;  %v691_v33 = vrot.slane %v7312_v35, %v7050_v5 }
  0xe6   :  { %v7263_v43 = vpop.xlane.xlu1 %342  ;;  %v813_v8 = vsel %vm780_vm4, %v663_v50, %v812_v32  ;;  %8792 = vst [vmem:[#allocation34_spill] sm:$0xff] %v7318_v44 }
  0xe7   :  { %v331_v46 = vpop.xlane.xlu0 %330  ;;  %v814_v13 = vsel %vm782_vm5, %v667_v63, %v813_v8  ;;  %v683_v37 = vrot.slane %v7306_v41, %v7050_v5  ;;  %v695_v63 = vrot.slane %v7318_v44, %v7050_v5 }
  0xe8   :  { %v7326_v49 = vadd.f32 %v7042_v55, %v331_v46 }
  0xea   :  { %v313_v23 = vpop.xlane.xlu1 %312  ;;  %8794 = vst [vmem:[#allocation36_spill] sm:$0xff] %v7326_v49 }
  0xeb   :  { %v346_v26 = vpop.xlane.xlu0 %345  ;;  %v7291_v31 = vadd.f32 %v7042_v55, %v313_v23  ;;  %v671_v23 = vrot.slane %v7286_v58, %v7050_v5 }
  0xed   :  { %8790 = vst [vmem:[#allocation32_spill] sm:$0xff] %v7291_v31  ;;  %v675_v42 = vrot.slane %v7291_v31, %v7050_v5 }
  0xee   :  { %v349_v10 = vpop.xlane.xlu1 %348 }
  0xef   :  { %v334_v28 = vpop.xlane.xlu0 %333 }
  0xf0   :  { %v7332_v38 = vadd.f32 %v7042_v55, %v334_v28 }
  0xf2   :  { %v370_v19 = vpop.xlane.xlu1 %369  ;;  %8795 = vst [vmem:[#allocation37_spill] sm:$0xff] %v7332_v38 }
  0xf3   :  { %v367_v60 = vpop.xlane.xlu0 %366 }
  0xf6   :  { %v337_v22 = vpop.xlane.xlu1 %336 }
  0xf7   :  { %v316_v1 = vpop.xlane.xlu0 %315  ;;  %v7340_v50 = vadd.f32 %v7042_v55, %v337_v22 }
  0xf8   :  { %v7321_v25 = vadd.f32 %v7042_v55, %v316_v1  ;;  %v815_v1 = vsel %vm784_vm6, %v671_v23, %v814_v13  ;;  %v818_v23 = vsel %vm776_vm2, %v687_v14, %v683_v37  ;;  %v703_v13 = vrot.slane %v7332_v38, %v7050_v5 }
  0xf9   :  { %8796 = vst [vmem:[#allocation38_spill] sm:$0xff] %v7340_v50  ;;  %v816_v8 = vsel %vm786_vm7, %v675_v42, %v815_v1  ;;  %v819_v22 = vsel %vm778_vm3, %v691_v33, %v818_v23  ;;  %v707_v18 = vrot.slane %v7340_v50, %v7050_v5  ;;  %v7366_v33 = vadd.f32 %v7042_v55, %v349_v10 }
  0xfa   :  { %8793 = vst [vmem:[#allocation35_spill] sm:$0xff] %v7321_v25  ;;  %v679_v32 = vrot.slane %v7321_v25, %v7050_v5  ;;  %v373_v46 = vpop.xlane.xlu1 %372  ;;  %v699_v25 = vrot.slane %v7326_v49, %v7050_v5  ;;  %v820_v31 = vsel %vm780_vm4, %v695_v63, %v819_v22  ;;  %v7371_v22 = vadd.f32 %v7042_v55, %v7263_v43 }
  0xfb   :  { %v352_v56 = vpop.xlane.xlu0 %351  ;;  %8798 = vst [vmem:[#allocation40_spill] sm:$0xff] %v7366_v33  ;;  %v7388_v43 = vadd.f32 %v7042_v55, %v370_v19 }
  0xfc   :  { %v817_v28 = vsel %vm788_vm8, %v679_v32, %v816_v8  ;;  %v821_v8 = vsel %vm782_vm5, %v699_v25, %v820_v31  ;;  %v7374_v31 = vadd.f32 %v7042_v55, %v352_v56  ;;  %v7391_v56 = vadd.f32 %v7042_v55, %v367_v60 }
  0xfd   :  { %975 = vxpose.xlu1.b32.start.end [1/1] (short) (narrow) %v817_v28, 8  ;;  %v7360_v28 = vadd.f32 %v7042_v55, %v346_v26  ;;  %v822_v37 = vsel %vm784_vm6, %v703_v13, %v821_v8 }
  0xfe   :  { %v355_v42 = vpop.xlane.xlu1 %354  ;;  %v823_v63 = vsel %vm786_vm7, %v707_v18, %v822_v37  ;;  %8799 = vst [vmem:[#allocation41_spill] sm:$0xff] %v7374_v31  ;;  %v723_v18 = vrot.slane %v7366_v33, %v7050_v5  ;;  %v727_v37 = vrot.slane %v7374_v31, %v7050_v5  ;;  %v747_v21 = vrot.slane %v7391_v56, %v7050_v5 }
  0xff   :  { %v340_v1 = vpop.xlane.xlu0 %339  ;;  %v7378_v25 = vadd.f32 %v7042_v55, %v355_v42  ;;  %v719_v10 = vrot.slane %v7360_v28, %v7050_v5  ;;  %v715_v42 = vrot.slane %v7371_v22, %v7050_v5 }
 0x100   :  { %v7356_v32 = vadd.f32 %v7042_v55, %v340_v1 }
 0x101   :  { %8800 = vst [vmem:[#allocation42_spill] sm:$0xff] %v7378_v25  ;;  %v731_v19 = vrot.slane %v7378_v25, %v7050_v5 }
 0x102   :  { %8797 = vst [vmem:[#allocation39_spill] sm:$0xff] %v7356_v32  ;;  %v711_v14 = vrot.slane %v7356_v32, %v7050_v5  ;;  %v358_v23 = vpop.xlane.xlu1 %357 }
 0x103   :  { %v376_v50 = vpop.xlane.xlu0 %375  ;;  %v7383_v13 = vadd.f32 %v7042_v55, %v358_v23 }
 0x104   :  { %v824_v26 = vsel %vm788_vm8, %v711_v14, %v823_v63  ;;  %v7396_v14 = vadd.f32 %v7042_v55, %v373_v46  ;;  %v7406_v60 = vadd.f32 %v7042_v55, %v376_v50  ;;  %v825_v63 = vsel %vm776_vm2, %v719_v10, %v715_v42 }
 0x105   :  { %1007 = vxpose.xlu0.b32.start.end [1/1] (short) (narrow) %v824_v26, 8  ;;  %8801 = vst [vmem:[#allocation43_spill] sm:$0xff] %v7383_v13  ;;  %v735_v26 = vrot.slane %v7383_v13, %v7050_v5  ;;  %v826_v32 = vsel %vm778_vm3, %v723_v18, %v825_v63 }
 0x106   :  { %v361_v1 = vpop.xlane.xlu1 %360  ;;  %8802 = vst [vmem:[#allocation44_spill] sm:$0xff] %v7396_v14  ;;  %8804 = vst [vmem:[#allocation46_spill] sm:$0xff] %v7406_v60  ;;  %v755_v10 = vrot.slane %v7396_v14, %v7050_v5  ;;  %v827_v42 = vsel %vm780_vm4, %v727_v37, %v826_v32  ;;  %v759_v63 = vrot.slane %v7406_v60, %v7050_v5 }
 0x107   :  { %v379_v8 = vpop.xlane.xlu0 %378  ;;  %v7401_v23 = vadd.f32 %v7042_v55, %v361_v1  ;;  %v751_v1 = vrot.slane %v7388_v43, %v7050_v5  ;;  %v828_v39 = vsel %vm782_vm5, %v731_v19, %v827_v42 }
 0x108   :  { %v7412_v46 = vadd.f32 %v7042_v55, %v379_v8  ;;  %v829_v12 = vsel %vm784_vm6, %v735_v26, %v828_v39 }
 0x109   :  { %8803 = vst [vmem:[#allocation45_spill] sm:$0xff] %v7401_v23  ;;  %v739_v50 = vrot.slane %v7401_v23, %v7050_v5  ;;  %v832_v32 = vsel %vm776_vm2, %v751_v1, %v747_v21 }
 0x10a   :  { %8805 = vst [vmem:[#allocation47_spill] sm:$0xff] %v7412_v46  ;;  %v364_v30 = vpop.xlane.xlu1 %363  ;;  %v763_v23 = vrot.slane %v7412_v46, %v7050_v5  ;;  %v833_v20 = vsel %vm778_vm3, %v755_v10, %v832_v32  ;;  %v8810_v10 = vmov 0  }
 0x10b   :  { %v382_v38 = vpop.xlane.xlu0 %381  ;;  %v7425_v8 = vadd.f32 %v7042_v55, %v364_v30  ;;  %v830_v58 = vsel %vm786_vm7, %v739_v50, %v829_v12  ;;  %v834_v39 = vsel %vm780_vm4, %v759_v63, %v833_v20 }
 0x10c   :  { %v7428_v18 = vadd.f32 %v7042_v55, %v382_v38  ;;  %v835_v12 = vsel %vm782_vm5, %v763_v23, %v834_v39 }
 0x10d   :  { %8806 = vst [vmem:[#allocation48_spill] sm:$0xff] %v7425_v8  ;;  %v743_v13 = vrot.slane %v7425_v8, %v7050_v5 }
 0x10e   :  { %8807 = vst [vmem:[#allocation49_spill] sm:$0xff] %v7428_v18  ;;  %v767_v30 = vrot.slane %v7428_v18, %v7050_v5  ;;  %v388_v37 = vpop.xlane.xlu1 %387 }
 0x10f   :  { %v385_v38 = vpop.xlane.xlu0 %384  ;;  %v7447_v42 = vadd.f32 %v7042_v55, %v388_v37  ;;  %v831_v8 = vsel %vm788_vm8, %v743_v13, %v830_v58 }
 0x110   :  { %v7444_v19 = vadd.f32 %v7042_v55, %v385_v38  ;;  %1039 = vxpose.xlu1.b32.start.end [1/1] (short) (narrow) %v831_v8, 8  ;;  %v836_v1 = vsel %vm784_vm6, %v767_v30, %v835_v12  ;;  %v1282_v8 = vpop.f32.mrb[0].mxu1 }
 0x111   :  { %8809 = vst [vmem:[#allocation51_spill] sm:$0xff] %v7447_v42  ;;  %v775_v26 = vrot.slane %v7447_v42, %v7050_v5  ;;  %v5955_v63 = vpop.f32.mrb[1].mxu1 }
 0x112   :  { %8808 = vst [vmem:[#allocation50_spill] sm:$0xff] %v7444_v19  ;;  %v771_v21 = vrot.slane %v7444_v19, %v7050_v5  ;;  %v1285_v32 = vpop.f32.mrb[2].mxu1 }
 0x113   :  { %v5956_v30 = vpop.f32.mrb[3].mxu1 }
 0x114   :  { %v837_v50 = vsel %vm786_vm7, %v771_v21, %v836_v1  ;;  %v1328_v38 = vpop.f32.mrb[4].mxu1 }
 0x115   :  { %v838_v55 = vsel %vm788_vm8, %v775_v26, %v837_v50  ;;  %v1329_v37 = vadd.f32 %v1328_v38, %v1282_v8  ;;  %v5961_v39 = vpop.f32.mrb[5].mxu1  ;;  %v7474_v8 = vld [vmem:[%s8700_s5] ss:$0 sm:$0xff] }
 0x116   :  { %1071 = vxpose.xlu0.b32.start.end [1/1] (short) (narrow) %v838_v55, 8  ;;  %v1331_v21 = vpop.f32.mrb[6].mxu1 }
 0x117   :  { %v5962_v26 = vpop.f32.mrb[7].mxu1  ;;  %v1340_v63 = vadd.f32 %v7474_v8, %v1329_v37  ;;  %v7483_v21 = vsub.s32 0, %v7037_v54 }
 0x12e   :  { %6154 = vset.pattern.permute.xlu1 %v8810_v10 }
 0x13d   :  { %v863_v58 = vpop.trf.xlu0 }
 0x13e   :  { %5939 = vmatprep.mubr.msk.f32.mxu0 %vm196_vm0, %v863_v58  ;;  %v8811_v58 = vmov 0.0  }
 0x13f   :  { %6155 = vset.pattern.permute.xlu0 %v8810_v10 }
 0x145   :  { %v895_v20 = vpop.trf.xlu1 }
 0x146   :  { %5940 = vmatmul.mubr.msk.f32.vlgmr.msra.gmra.mrb[0].mxu0 %vm196_vm0, %v895_v20  ;;  %v6517_v20 = vmov 1966171168  }
 0x15d   :  { %v927_v13 = vpop.trf.xlu0 }
 0x15e   :  { %5942 = vmatprep.mubr.msk.f32.mxu0 %vm196_vm0, %v927_v13  ;;  %v1390_v13 = vunpack.c.l.s4 %v6517_v20 }
 0x165   :  { %v959_v23 = vpop.trf.xlu0 }
 0x166   :  { %5943 = vmatmul.mubr.msk.f32.gmra.mrb[2].mxu0 %vm196_vm0, %v959_v23  ;;  %v1391_v23 = vunpack.c.0.s8 %v1390_v13 }
 0x168   :  { %v7478_v32 = vsub.s32 %v1391_v23, %v7037_v54 }
 0x16a   :  { %v1395_v30 = vrot.slane %v1340_v63, %v7478_v32 }
 0x16c   :  { %v1403_v38 = vcombine.high %v1395_v30, %v1395_v30  ;;  %v1411_v39 = vrot.slane %v1395_v30, %v7478_v32 }
 0x16e   :  { %v1425_v26 = vrot.slane %v1403_v38, %v7478_v32  ;;  %v1440_v37 = vrot.slane %v1411_v39, %v7483_v21  ;;  %v7504_v38 = vld [vmem:[%s8702_s8] ss:$0 sm:$0xff] }
 0x17d   :  { %v991_v12 = vpop.trf.xlu1 }
 0x17e   :  { %5945 = vmatprep.mubr.msk.f32.mxu0 %vm196_vm0, %v991_v12  ;;  %v1444_v12 = vrot.slane %v1425_v26, %v7483_v21 }
 0x185   :  { %v1023_v1 = vpop.trf.xlu0 }
 0x186   :  { %5946 = vmatmul.mubr.msk.f32.gmra.mrb[4].mxu0 %vm196_vm0, %v1023_v1  ;;  %v7490_v1 = vld [vmem:[%s8701_s7] ss:$0 sm:$0xff] }
 0x190   :  { %v1055_v50 = vpop.trf.xlu1 }
 0x191   :  { %5948 = vmatprep.mubr.msk.f32.mxu0 %vm196_vm0, %v1055_v50 }
 0x196   :  { %v1087_v55 = vpop.trf.xlu0 }
 0x197   :  { %5949 = vmatmul.mubr.msk.f32.gmra.mrb[6].mxu0 %vm196_vm0, %v1087_v55 }
 0x198   :  { %5965 = vmatprep.mubr.msk.bf16.mxu0 %vm6515_vm1, %v8811_v58 }
 0x219   :  { %v5941_v50 = vpop.f32.mrb[0].mxu0 }
 0x21a   :  { %v7494_v55 = vadd.f32 %v5941_v50, %v7490_v1  ;;  %v1199_v20 = vpop.f32.mrb[1].mxu0 }
 0x21b   :  { %v7497_v13 = vadd.f32 %v7490_v1, %v1199_v20 }
 0x21c   :  { %v1478_v23 = vadd.f32 %v1444_v12, %v7494_v55  ;;  %v1435_v12 = vcombine.high %v1425_v26, %v1425_v26 }
 0x21d   :  { %v1477_v30 = vadd.f32 %v1440_v37, %v7497_v13  ;;  %v1433_v37 = vcombine.high %v1411_v39, %v1411_v39  ;;  %v1388_v39 = vcombine.high %v1340_v63, %v1340_v63 }
 0x21e   :  { %6159 = vtanh.f32 %v1478_v23  ;;  %v1452_v23 = vrot.slane %v1435_v12, %v7483_v21 }
 0x21f   :  { %6161 = vtanh.f32 %v1477_v30  ;;  %v1448_v30 = vrot.slane %v1433_v37, %v7483_v21  ;;  %v1402_v12 = vrot.slane %v1388_v39, %v7478_v32 }
 0x221   :  { %v1404_v37 = vcombine.high %v1402_v12, %v1402_v12 }
 0x228   :  { %v6160_v42 = vpop.eup %6159 }
 0x229   :  { %v6162_v19 = vpop.eup %6161  ;;  %v1500_v50 = vmul.f32 %v6160_v42, %v7504_v38 }
 0x22a   :  { %v1499_v18 = vmul.f32 %v6162_v19, %v7504_v38 }
 0x22b   :  { %v1510_v20 = vsel %vm196_vm0, %v1500_v50, 0.0 }
 0x22c   :  { %v1507_v24 = vsel %vm196_vm0, %v1499_v18, 0.0  ;;  %1511 = vadd.xlane.f32.xlu0 %v1510_v20 }
 0x22d   :  { %1508 = vadd.xlane.f32.xlu1 %v1507_v24 }
 0x239   :  { %v5944_v46 = vpop.f32.mrb[2].mxu0 }
 0x23a   :  { %v7513_v49 = vadd.f32 %v5944_v46, %v7490_v1  ;;  %v1209_v36 = vpop.f32.mrb[3].mxu0 }
 0x23b   :  { %v7516_v42 = vadd.f32 %v7490_v1, %v1209_v36 }
 0x23c   :  { %v1480_v19 = vadd.f32 %v1452_v23, %v7513_v49  ;;  %v1432_v23 = vrot.slane %v1404_v37, %v7478_v32 }
 0x23d   :  { %v1479_v18 = vadd.f32 %v1448_v30, %v7516_v42  ;;  %v1418_v30 = vrot.slane %v1402_v12, %v7478_v32 }
 0x23e   :  { %6163 = vtanh.f32 %v1480_v19  ;;  %v1460_v63 = vrot.slane %v1432_v23, %v7483_v21 }
 0x23f   :  { %6165 = vtanh.f32 %v1479_v18 }
 0x248   :  { %v6164_v24 = vpop.eup %6163 }
 0x249   :  { %v6166_v26 = vpop.eup %6165  ;;  %v1502_v50 = vmul.f32 %v6164_v24, %v7504_v38 }
 0x24a   :  { %v1501_v20 = vmul.f32 %v6166_v26, %v7504_v38  ;;  %v1456_v26 = vrot.slane %v1418_v30, %v7483_v21 }
 0x24b   :  { %v1516_v46 = vsel %vm196_vm0, %v1502_v50, 0.0 }
 0x24c   :  { %1517 = vadd.xlane.f32.xlu1 %v1516_v46  ;;  %v1513_v36 = vsel %vm196_vm0, %v1501_v20, 0.0  ;;  %v1436_v46 = vcombine.high %v1432_v23, %v1432_v23 }
 0x24e   :  { %v1468_v57 = vrot.slane %v1436_v46, %v7483_v21 }
 0x250   :  { %1514 = vadd.xlane.f32.xlu1 %v1513_v36  ;;  %v1434_v36 = vcombine.high %v1418_v30, %v1418_v30 }
 0x259   :  { %v5947_v19 = vpop.f32.mrb[4].mxu0 }
 0x25a   :  { %v7529_v18 = vadd.f32 %v5947_v19, %v7490_v1  ;;  %v1219_v24 = vpop.f32.mrb[5].mxu0 }
 0x25b   :  { %v7533_v39 = vadd.f32 %v7490_v1, %v1219_v24 }
 0x25c   :  { %v1482_v50 = vadd.f32 %v1460_v63, %v7529_v18 }
 0x25d   :  { %v1481_v20 = vadd.f32 %v1456_v26, %v7533_v39  ;;  %v1464_v26 = vrot.slane %v1434_v36, %v7483_v21 }
 0x25e   :  { %6167 = vtanh.f32 %v1482_v50 }
 0x25f   :  { %6169 = vtanh.f32 %v1481_v20 }
 0x268   :  { %v6168_v12 = vpop.eup %6167 }
 0x269   :  { %v6170_v37 = vpop.eup %6169  ;;  %v1504_v25 = vmul.f32 %v6168_v12, %v7504_v38 }
 0x26a   :  { %v5950_v19 = vpop.f32.mrb[6].mxu0  ;;  %v1503_v6 = vmul.f32 %v6170_v37, %v7504_v38 }
 0x26b   :  { %v7541_v24 = vadd.f32 %v5950_v19, %v7490_v1  ;;  %v1229_v17 = vpop.f32.mrb[7].mxu0  ;;  %v1522_v63 = vsel %vm196_vm0, %v1504_v25, 0.0 }
 0x26c   :  { %v7546_v23 = vadd.f32 %v7490_v1, %v1229_v17  ;;  %1523 = vadd.xlane.f32.xlu1 %v1522_v63  ;;  %v1519_v30 = vsel %vm196_vm0, %v1503_v6, 0.0 }
 0x26d   :  { %1520 = vadd.xlane.f32.xlu0 %v1519_v30  ;;  %v1484_v50 = vadd.f32 %v1468_v57, %v7541_v24  ;;  %v7558_v57 = vstv %s8703_s9 }
 0x26e   :  { %v1483_v20 = vadd.f32 %v1464_v26, %v7546_v23 }
 0x26f   :  { %6171 = vtanh.f32 %v1484_v50 }
 0x270   :  { %6173 = vtanh.f32 %v1483_v20 }
 0x279   :  { %v6172_v46 = vpop.eup %6171 }
 0x27a   :  { %v6174_v12 = vpop.eup %6173  ;;  %v1506_v37 = vmul.f32 %v6172_v46, %v7504_v38 }
 0x27b   :  { %v1505_v25 = vmul.f32 %v6174_v12, %v7504_v38 }
 0x27c   :  { %v1528_v36 = vsel %vm196_vm0, %v1506_v37, 0.0 }
 0x27d   :  { %1529 = vadd.xlane.f32.xlu1 %v1528_v36  ;;  %v1525_v17 = vsel %vm196_vm0, %v1505_v25, 0.0 }
 0x27e   :  { %1526 = vadd.xlane.f32.xlu0 %v1525_v17 }
 0x2b9   :  { %v1512_v19 = vpop.xlane.xlu0 %1511 }
 0x2ba   :  { %v1509_v6 = vpop.xlane.xlu1 %1508  ;;  %v1533_v63 = vadd.f32 %v7558_v57, %v1512_v19 }
 0x2bb   :  { %v1532_v26 = vadd.f32 %v7558_v57, %v1509_v6 }
 0x2bc   :  { %v1542_v50 = vmul.f32 1.442695, %v1533_v63 }
 0x2bd   :  { %v1540_v46 = vmul.f32 1.442695, %v1532_v26 }
 0x2be   :  { %6175 = vpow2.f32 %v1542_v50 }
 0x2bf   :  { %6177 = vpow2.f32 %v1540_v46 }
 0x2c8   :  { %v6176_v63 = vpop.eup %6175 }
 0x2c9   :  { %v6178_v26 = vpop.eup %6177 }
 0x2d9   :  { %v1518_v1 = vpop.xlane.xlu1 %1517 }
 0x2da   :  { %v1535_v37 = vadd.f32 %v7558_v57, %v1518_v1 }
 0x2dc   :  { %v1546_v11 = vmul.f32 1.442695, %v1535_v37  ;;  %v1571_v37 = vrot.slane %v6176_v63, %v7050_v5 }
 0x2dd   :  { %v1515_v30 = vpop.xlane.xlu1 %1514 }
 0x2de   :  { %v1534_v20 = vadd.f32 %v7558_v57, %v1515_v30 }
 0x2e0   :  { %v1544_v25 = vmul.f32 1.442695, %v1534_v20 }
 0x2e2   :  { %6179 = vpow2.f32 %v1544_v25 }
 0x2e3   :  { %6181 = vpow2.f32 %v1546_v11 }
 0x2ec   :  { %v6180_v46 = vpop.eup %6179 }
 0x2ed   :  { %v6182_v11 = vpop.eup %6181 }
 0x2f9   :  { %v1524_v17 = vpop.xlane.xlu1 %1523 }
 0x2fa   :  { %v1521_v12 = vpop.xlane.xlu0 %1520  ;;  %v1537_v19 = vadd.f32 %v7558_v57, %v1524_v17 }
 0x2fb   :  { %v1536_v36 = vadd.f32 %v7558_v57, %v1521_v12  ;;  %v1567_v12 = vrot.slane %v6178_v26, %v7050_v5 }
 0x2fc   :  { %v1550_v6 = vmul.f32 1.442695, %v1537_v19  ;;  %v1579_v19 = vrot.slane %v6182_v11, %v7050_v5 }
 0x2fd   :  { %v1548_v60 = vmul.f32 1.442695, %v1536_v36  ;;  %v1596_v17 = vsel %vm776_vm2, %v1571_v37, %v1567_v12 }
 0x2ff   :  { %6183 = vpow2.f32 %v1548_v60  ;;  %v1575_v60 = vrot.slane %v6180_v46, %v7050_v5 }
 0x300   :  { %6185 = vpow2.f32 %v1550_v6 }
 0x309   :  { %v6184_v36 = vpop.eup %6183 }
 0x30a   :  { %v1530_v30 = vpop.xlane.xlu1 %1529  ;;  %v6186_v6 = vpop.eup %6185 }
 0x30b   :  { %v1539_v44 = vadd.f32 %v7558_v57, %v1530_v30  ;;  %v1527_v1 = vpop.xlane.xlu0 %1526  ;;  %v1583_v30 = vrot.slane %v6184_v36, %v7050_v5 }
 0x30c   :  { %v1538_v50 = vadd.f32 %v7558_v57, %v1527_v1 }
 0x30d   :  { %v1554_v20 = vmul.f32 1.442695, %v1539_v44  ;;  %v1597_v44 = vsel %vm778_vm3, %v1575_v60, %v1596_v17 }
 0x30e   :  { %v1552_v25 = vmul.f32 1.442695, %v1538_v50  ;;  %v1598_v1 = vsel %vm780_vm4, %v1579_v19, %v1597_v44  ;;  %v7585_v19 = vsub.s32 1, %v7037_v54  ;;  %v7591_v44 = vsub.s32 3, %v7037_v54 }
 0x30f   :  { %6187 = vpow2.f32 %v1554_v20  ;;  %v1599_v50 = vsel %vm782_vm5, %v1583_v30, %v1598_v1  ;;  %v7588_v30 = vsub.s32 2, %v7037_v54 }
 0x310   :  { %6189 = vpow2.f32 %v1552_v25  ;;  %v1587_v25 = vrot.slane %v6186_v6, %v7050_v5 }
 0x312   :  { %v1600_v12 = vsel %vm784_vm6, %v1587_v25, %v1599_v50  ;;  %v7594_v50 = vsub.s32 4, %v7037_v54 }
 0x319   :  { %v6188_v62 = vpop.eup %6187 }
 0x31a   :  { %v6190_v20 = vpop.eup %6189  ;;  %v1595_v2 = vrot.slane %v6188_v62, %v7050_v5 }
 0x31b   :  { %v1591_v31 = vrot.slane %v6190_v20, %v7050_v5 }
 0x31d   :  { %v1601_v37 = vsel %vm786_vm7, %v1591_v31, %v1600_v12 }
 0x31e   :  { %v1602_v40 = vsel %vm788_vm8, %v1595_v2, %v1601_v37 }
 0x31f   :  { %v1604_v60 = vsel %vm196_vm0, %v1602_v40, 0.0 }
 0x320   :  { %1605 = vadd.xlane.f32.xlu0 %v1604_v60 }
 0x3ad   :  { %v1606_v17 = vpop.xlane.xlu0 %1605 }
 0x3ae   :  { %6191 = vrcp.f32 %v1606_v17 }
 0x3b8   :  { %v6192_v1 = vpop.eup %6191 }
 0x3b9   :  { %v1616_v2 = vrot.slane %v6192_v1, %v7585_v19  ;;  %v1612_v40 = vrot.slane %v6192_v1, %v7483_v21  ;;  %v1620_v31 = vrot.slane %v6192_v1, %v7588_v30  ;;  %v1624_v25 = vrot.slane %v6192_v1, %v7591_v44 }
 0x3ba   :  { %v1628_v17 = vrot.slane %v6192_v1, %v7594_v50  ;;  %v1632_v16 = vrot.slane %v6192_v1, %v7602_v15 }
 0x3bb   :  { %v1650_v12 = vmul.f32 %v6176_v63, %v1616_v2  ;;  %v1649_v37 = vmul.f32 %v6178_v26, %v1612_v40  ;;  %v1651_v60 = vmul.f32 %v6180_v46, %v1620_v31  ;;  %v1652_v27 = vmul.f32 %v6182_v11, %v1624_v25 }
 0x3bc   :  { %v1653_v0 = vmul.f32 %v6184_v36, %v1628_v17  ;;  %v7609_v63 = vsub.s32 6, %v7037_v54  ;;  %v1654_v11 = vmul.f32 %v6186_v6, %v1632_v16  ;;  %v7624_v16 = vld [vmem:[%s8704_s11] sm:$0xff]  }
 0x3bd   :  { %v1658_v7 = vmul.f32 %v1650_v12, %v7100_v3  ;;  %v1657_v14 = vmul.f32 %v1649_v37, %v7053_v9  ;;  %v1659_v35 = vmul.f32 %v1651_v60, %v7170_v59  ;;  %v1660_v40 = vmul.f32 %v1652_v27, %v7205_v51  ;;  %5964 = vmatpush3.bf16.msra.mxu0 %v7624_v16 }
 0x3be   :  { %v1636_v9 = vrot.slane %v6192_v1, %v7609_v63  ;;  %v7614_v3 = vsub.s32 7, %v7037_v54  ;;  %5975 = vmatprep.subr.bf16.mxu0 %v8811_v58 }
 0x3bf   :  { %v1666_v33 = vpack.c.bf16 %v1658_v7, %v1658_v7  ;;  %v1665_v48 = vpack.c.bf16 %v1657_v14, %v1657_v14  ;;  %v1667_v2 = vpack.c.bf16 %v1659_v35, %v1659_v35  ;;  %v1668_v59 = vpack.c.bf16 %v1660_v40, %v1660_v40 }
 0x3c0   :  { %v1661_v14 = vmul.f32 %v1653_v0, %v7275_v29  ;;  %v1640_v36 = vrot.slane %v6192_v1, %v7614_v3  ;;  %v1662_v35 = vmul.f32 %v1654_v11, %v7306_v41  ;;  %v1655_v51 = vmul.f32 %v6190_v20, %v1636_v9  ;;  %5966 = vmatmul.mubr.bf16.vlgmr.msra.gmra.mrb[8].mxu0 %v8810_v10 }
 0x3c1   :  { %v1682_v26 = vunpack.c.l.b16 %v1666_v33  ;;  %v1681_v46 = vunpack.c.l.b16 %v1665_v48  ;;  %v1683_v7 = vunpack.c.l.b16 %v1667_v2  ;;  %v1684_v33 = vunpack.c.l.b16 %v1668_v59  ;;  %5977 = vmatprep.mubr.msk.bf16.mxu0 %vm6515_vm1, %v8811_v58 }
 0x3c2   :  { %v1669_v48 = vpack.c.bf16 %v1661_v14, %v1661_v14  ;;  %v1670_v31 = vpack.c.bf16 %v1662_v35, %v1662_v35  ;;  %v1663_v25 = vmul.f32 %v1655_v51, %v7371_v22  ;;  %v1656_v54 = vmul.f32 %v6188_v62, %v1640_v36  ;;  %v7632_v62 = vld [vmem:[%s8696_s4] sm:$0xff]  }
 0x3c3   :  { %1693 = vperm.xlu0 %6155, %v1682_v26   ;;  %1690 = vperm.xlu1 %6154, %v1681_v46  }
 0x3c4   :  { %v1685_v27 = vunpack.c.l.b16 %v1669_v48  ;;  %v1686_v12 = vunpack.c.l.b16 %v1670_v31  ;;  %v1671_v37 = vpack.c.bf16 %v1663_v25, %v1663_v25  ;;  %v1664_v0 = vmul.f32 %v1656_v54, %v7391_v56  ;;  %5976 = vmatpush3.bf16.msra.mxu0 %v7632_v62  ;;  %v122_v56 = vld [vmem:[%s8705_s10] sm:$0xf] }
 0x3c5   :  { %5987 = vmatprep.subr.bf16.mxu0 %v8811_v58  ;;  %v7641_v10 = vsel %vm1756_vm9, %v122_v56, 0  ;;  %v7673_v56 = vld [vmem:[%s8706_s12] ss:$0 sm:$0xff] }
 0x3c6   :  { %v1687_v29 = vunpack.c.l.b16 %v1671_v37  ;;  %v1672_v41 = vpack.c.bf16 %v1664_v0, %v1664_v0  ;;  %5970 = vmatpush3.bf16.msra.mxu1 %v7641_v10  ;;  %v7664_v37 = vld [vmem:[%s8697_s3] sm:$0xff]  }
 0x3c7   :  { %1696 = vperm.xlu1 %6154, %v1683_v7   ;;  %5981 = vmatprep.subr.bf16.mxu1 %v8811_v58 }
 0x3c8   :  { %v1688_v22 = vunpack.c.l.b16 %v1672_v41 }
 0x3cb   :  { %1699 = vperm.xlu1 %6154, %v1684_v33  }
 0x3cf   :  { %1702 = vperm.xlu1 %6154, %v1685_v27  }
 0x3d3   :  { %1705 = vperm.xlu1 %6154, %v1686_v12  }
 0x3d7   :  { %1708 = vperm.xlu1 %6154, %v1687_v29  }
 0x3db   :  { %1711 = vperm.xlu1 %6154, %v1688_v22  }
 0x442   :  { %v1691_v6 = vpop.permute.xlu1 %1690  ;;  %v1694_v17 = vpop.permute.xlu0 %1693 }
 0x443   :  { %v1720_v46 = vrot.slane %v1694_v17, %v7050_v5  ;;  %v1716_v2 = vrot.slane %v1691_v6, %v7050_v5 }
 0x445   :  { %v1745_v14 = vsel %vm776_vm2, %v1720_v46, %v1716_v2 }
 0x446   :  { %v1697_v20 = vpop.permute.xlu1 %1696 }
 0x447   :  { %v1724_v40 = vrot.slane %v1697_v20, %v7050_v5 }
 0x449   :  { %v1746_v36 = vsel %vm778_vm3, %v1724_v40, %v1745_v14 }
 0x44a   :  { %v1700_v1 = vpop.permute.xlu1 %1699 }
 0x44b   :  { %v1728_v9 = vrot.slane %v1700_v1, %v7050_v5 }
 0x44d   :  { %v1747_v48 = vsel %vm780_vm4, %v1728_v9, %v1746_v36 }
 0x44e   :  { %v1703_v60 = vpop.permute.xlu1 %1702 }
 0x44f   :  { %v1732_v7 = vrot.slane %v1703_v60, %v7050_v5 }
 0x451   :  { %v1748_v35 = vsel %vm782_vm5, %v1732_v7, %v1747_v48 }
 0x452   :  { %v1706_v26 = vpop.permute.xlu1 %1705 }
 0x453   :  { %v1736_v11 = vrot.slane %v1706_v26, %v7050_v5 }
 0x455   :  { %v1749_v27 = vsel %vm784_vm6, %v1736_v11, %v1748_v35 }
 0x456   :  { %v1709_v59 = vpop.permute.xlu1 %1708 }
 0x457   :  { %v1740_v33 = vrot.slane %v1709_v59, %v7050_v5 }
 0x459   :  { %v1750_v25 = vsel %vm786_vm7, %v1740_v33, %v1749_v27 }
 0x45a   :  { %v1712_v51 = vpop.permute.xlu1 %1711 }
 0x45b   :  { %v1744_v31 = vrot.slane %v1712_v51, %v7050_v5 }
 0x45d   :  { %v1751_v54 = vsel %vm788_vm8, %v1744_v31, %v1750_v25 }
 0x45e   :  { %v1752_v12 = vpack.c.b16 %v1751_v54, %v1751_v54 }
 0x460   :  { %5972 = vmatmul.mubr.msk.bf16.vlgmr.msra.gmra.mrb[8].mxu1 %vm196_vm0, %v1752_v12 }
 0x461   :  { %5982 = vmatpush3.bf16.msra.mxu1 %v7664_v37  ;;  %5983 = vmatprep.mubr.msk.bf16.mxu1 %vm6515_vm1, %v8811_v58 }
 0x462   :  { %5993 = vmatprep.subr.bf16.mxu1 %v8811_v58 }
 0x493   :  { %v1381_v0 = vpop.f32.mrb[8].mxu0 }
 0x494   :  { %v5967_v29 = vpop.f32.mrb[9].mxu0 }
 0x495   :  { %v1384_v41 = vpop.f32.mrb[10].mxu0 }
 0x496   :  { %v5968_v22 = vpop.f32.mrb[11].mxu0 }
 0x533   :  { %v1794_v6 = vpop.f32.mrb[8].mxu1 }
 0x534   :  { %v1795_v20 = vadd.f32 %v1794_v6, %v1381_v0  ;;  %v5973_v1 = vpop.f32.mrb[9].mxu1 }
 0x535   :  { %v1797_v60 = vpop.f32.mrb[10].mxu1 }
 0x536   :  { %v1806_v17 = vadd.f32 %v7673_v56, %v1795_v20  ;;  %v5974_v26 = vpop.f32.mrb[11].mxu1 }
 0x538   :  { %6193 = vtanh.f32 %v1806_v17  ;;  %v5828_v2 = vmul.f32 -1.442695, %v1806_v17 }
 0x53a   :  { %6195 = vpow2.f32 %v5828_v2 }
 0x542   :  { %v6194_v46 = vpop.eup %6193 }
 0x543   :  { %1816 = vrot.lane.b32.xlu1 %v6194_v46, %s6518_s30 }
 0x544   :  { %v6196_v40 = vpop.eup %6195 }
 0x545   :  { %v1810_v9 = vadd.f32 1.0, %v6196_v40 }
 0x547   :  { %6197 = vrcp.f32 %v1810_v9 }
 0x551   :  { %v6198_v7 = vpop.eup %6197 }
 0x552   :  { %v1814_v11 = vmul.f32 0.0, %v6198_v7 }
 0x5b5   :  { %v1817_v59 = vpop.permute.xlu1 %1816 }
 0x5b6   :  { %v1819_v14 = vmul.f32 %v6198_v7, %v1817_v59 }
 0x5b8   :  { %1821 = vrot.lane.b32.xlu1 %v1819_v14, %s6519_s14 }
 0x62a   :  { %v1822_v36 = vpop.permute.xlu1 %1821 }
 0x62b   :  { %v7678_v33 = vadd.f32 %v1822_v36, %v1814_v11 }
 0x62d   :  { %6199 = vtanh.f32 %v7678_v33  ;;  %v1832_v48 = vpack.c.bf16 %v7678_v33, %v7678_v33 }
 0x62f   :  { %1834 = vrot.lane.b32.xlu1 %v1832_v48, %s6520_s15 }
 0x637   :  { %v6200_v35 = vpop.eup %6199 }
 0x638   :  { %1827 = vrot.lane.b32.xlu0 %v6200_v35, %s6519_s14 }
 0x6a1   :  { %v1835_v51 = vpop.permute.xlu1 %1834 }
 0x6a2   :  { %5978 = vmatmul.mubr.msk.bf16.vlgmr.msra.gmra.mrb[12].mxu0 %vm1244_vm10, %v1835_v51 }
 0x6a3   :  { %5988 = vmatpush3.bf16.msra.mxu0 %v7624_v16  ;;  %5989 = vmatprep.mubr.msk.bf16.mxu0 %vm6515_vm1, %v8811_v58 }
 0x6a4   :  { %5999 = vmatprep.subr.bf16.mxu0 %v8811_v58 }
 0x6aa   :  { %v1828_v27 = vpop.permute.xlu0 %1827 }
 0x6ab   :  { %v7690_v31 = vmul.f32 %v6198_v7, %v1828_v27 }
 0x6ad   :  { %8812 = vst [vmem:[#allocation52_spill] sm:$0xff] %v7690_v31  ;;  %v1831_v25 = vpack.c.bf16 %v7690_v31, %v7690_v31 }
 0x6af   :  { %1880 = vrot.lane.b32.xlu0 %v1831_v25, %s6521_s16 }
 0x721   :  { %v1881_v54 = vpop.permute.xlu0 %1880 }
 0x722   :  { %5984 = vmatmul.mubr.msk.bf16.vlgmr.msra.gmra.mrb[12].mxu1 %vm1244_vm10, %v1881_v54  ;;  %5990 = vmatmul.mubr.msk.bf16.vlgmr.msra.gmra.mrb[16].mxu0 %vm1244_vm10, %v1881_v54 }
 0x723   :  { %5994 = vmatpush3.bf16.msra.mxu1 %v7641_v10  ;;  %5995 = vmatprep.mubr.msk.bf16.mxu1 %vm6515_vm1, %v8811_v58 }
 0x724   :  { %6000 = vmatpush3.bf16.msra.mxu0 %v7632_v62  ;;  %6001 = vmatprep.mubr.msk.bf16.mxu0 %vm6515_vm1, %v8811_v58 }
 0x725   :  { %6005 = vmatprep.subr.bf16.mxu1 %v8811_v58  ;;  %6011 = vmatprep.subr.bf16.mxu0 %v8811_v58 }
 0x775   :  { %v1873_v12 = vpop.f32.mrb[12].mxu0 }
 0x776   :  { %v5979_v0 = vpop.f32.mrb[13].mxu0 }
 0x777   :  { %v1876_v29 = vpop.f32.mrb[14].mxu0 }
 0x778   :  { %v5980_v41 = vpop.f32.mrb[15].mxu0 }
 0x7f5   :  { %v1919_v22 = vpop.f32.mrb[12].mxu1  ;;  %v7705_v6 = vpop.f32.mrb[16].mxu0 }
 0x7f6   :  { %v1920_v20 = vadd.f32 %v1919_v22, %v1873_v12  ;;  %v5985_v1 = vpop.f32.mrb[13].mxu1  ;;  %v5991_v60 = vpop.f32.mrb[17].mxu0 }
 0x7f7   :  { %v1922_v17 = vpop.f32.mrb[14].mxu1  ;;  %v1963_v26 = vpop.f32.mrb[18].mxu0 }
 0x7f8   :  { %v1925_v46 = vadd.f32 %v7474_v8, %v1920_v20  ;;  %v5986_v2 = vpop.f32.mrb[15].mxu1  ;;  %v5992_v40 = vpop.f32.mrb[19].mxu0 }
 0x7fa   :  { %v1967_v9 = vcombine.high %v1925_v46, %v1925_v46  ;;  %v1974_v7 = vrot.slane %v1925_v46, %v7478_v32 }
 0x7fc   :  { %v1981_v59 = vrot.slane %v1967_v9, %v7478_v32  ;;  %v1982_v14 = vcombine.high %v1974_v7, %v1974_v7  ;;  %v1990_v11 = vrot.slane %v1974_v7, %v7478_v32 }
 0x7fe   :  { %v1983_v36 = vcombine.high %v1981_v59, %v1981_v59  ;;  %v1997_v48 = vrot.slane %v1981_v59, %v7478_v32  ;;  %v2004_v35 = vrot.slane %v1982_v14, %v7478_v32  ;;  %v2012_v51 = vcombine.high %v1990_v11, %v1990_v11 }
 0x7ff   :  { %v2019_v27 = vrot.slane %v1990_v11, %v7483_v21 }
 0x800   :  { %v2011_v8 = vrot.slane %v1983_v36, %v7478_v32  ;;  %v2014_v25 = vcombine.high %v2004_v35, %v2004_v35  ;;  %v2023_v54 = vrot.slane %v2004_v35, %v7483_v21  ;;  %v2013_v12 = vcombine.high %v1997_v48, %v1997_v48 }
 0x801   :  { %v2027_v0 = vrot.slane %v2012_v51, %v7483_v21  ;;  %v2035_v29 = vrot.slane %v1997_v48, %v7483_v21  ;;  %v2056_v41 = vadd.f32 %v2019_v27, %v7497_v13 }
 0x802   :  { %v2015_v22 = vcombine.high %v2011_v8, %v2011_v8  ;;  %v2031_v20 = vrot.slane %v2014_v25, %v7483_v21  ;;  %v2039_v1 = vrot.slane %v2011_v8, %v7483_v21  ;;  %v2057_v60 = vadd.f32 %v2023_v54, %v7494_v55 }
 0x803   :  { %v2058_v17 = vadd.f32 %v2027_v0, %v7516_v42  ;;  %v2060_v26 = vadd.f32 %v2035_v29, %v7533_v39  ;;  %6201 = vtanh.f32 %v2056_v41  ;;  %v2043_v40 = vrot.slane %v2013_v12, %v7483_v21 }
 0x804   :  { %v2047_v46 = vrot.slane %v2015_v22, %v7483_v21  ;;  %v2059_v2 = vadd.f32 %v2031_v20, %v7513_v49  ;;  %v2061_v9 = vadd.f32 %v2039_v1, %v7529_v18  ;;  %6203 = vtanh.f32 %v2057_v60 }
 0x805   :  { %6205 = vtanh.f32 %v2058_v17  ;;  %v2062_v59 = vadd.f32 %v2043_v40, %v7546_v23 }
 0x806   :  { %6207 = vtanh.f32 %v2060_v26  ;;  %v2063_v7 = vadd.f32 %v2047_v46, %v7541_v24 }
 0x807   :  { %6209 = vtanh.f32 %v2059_v2 }
 0x808   :  { %6211 = vtanh.f32 %v2061_v9 }
 0x809   :  { %6213 = vtanh.f32 %v2063_v7 }
 0x80a   :  { %6215 = vtanh.f32 %v2062_v59 }
 0x80d   :  { %v6202_v14 = vpop.eup %6201 }
 0x80e   :  { %v2072_v11 = vmul.f32 %v6202_v14, %v7504_v38  ;;  %v6204_v36 = vpop.eup %6203 }
 0x80f   :  { %v6206_v48 = vpop.eup %6205  ;;  %v2073_v51 = vmul.f32 %v6204_v36, %v7504_v38 }
 0x810   :  { %v2080_v35 = vsel %vm196_vm0, %v2072_v11, 0.0  ;;  %v6208_v27 = vpop.eup %6207  ;;  %v2074_v54 = vmul.f32 %v6206_v48, %v7504_v38 }
 0x811   :  { %2081 = vadd.xlane.f32.xlu1 %v2080_v35  ;;  %v6210_v8 = vpop.eup %6209  ;;  %v2083_v25 = vsel %vm196_vm0, %v2073_v51, 0.0  ;;  %v2076_v1 = vmul.f32 %v6208_v27, %v7504_v38 }
 0x812   :  { %v6212_v12 = vpop.eup %6211  ;;  %2084 = vadd.xlane.f32.xlu0 %v2083_v25  ;;  %v2075_v0 = vmul.f32 %v6210_v8, %v7504_v38  ;;  %v2086_v20 = vsel %vm196_vm0, %v2074_v54, 0.0 }
 0x813   :  { %v2077_v41 = vmul.f32 %v6212_v12, %v7504_v38  ;;  %v6214_v22 = vpop.eup %6213  ;;  %v2092_v46 = vsel %vm196_vm0, %v2076_v1, 0.0 }
 0x814   :  { %v2089_v29 = vsel %vm196_vm0, %v2075_v0, 0.0  ;;  %v6216_v60 = vpop.eup %6215  ;;  %v2079_v26 = vmul.f32 %v6214_v22, %v7504_v38 }
 0x815   :  { %2090 = vadd.xlane.f32.xlu1 %v2089_v29  ;;  %v2095_v17 = vsel %vm196_vm0, %v2077_v41, 0.0  ;;  %v2078_v2 = vmul.f32 %v6216_v60, %v7504_v38 }
 0x816   :  { %2087 = vadd.xlane.f32.xlu0 %v2086_v20  ;;  %v2101_v40 = vsel %vm196_vm0, %v2079_v26, 0.0 }
 0x817   :  { %v2098_v9 = vsel %vm196_vm0, %v2078_v2, 0.0 }
 0x819   :  { %2096 = vadd.xlane.f32.xlu1 %v2095_v17 }
 0x81a   :  { %2093 = vadd.xlane.f32.xlu0 %v2092_v46 }
 0x81d   :  { %2102 = vadd.xlane.f32.xlu1 %v2101_v40 }
 0x81e   :  { %2099 = vadd.xlane.f32.xlu0 %v2098_v9 }
 0x89e   :  { %v2082_v7 = vpop.xlane.xlu1 %2081 }
 0x89f   :  { %v2104_v59 = vadd.f32 %v2082_v7, %v7558_v57  ;;  %v2085_v14 = vpop.xlane.xlu0 %2084 }
 0x8a0   :  { %v2105_v11 = vadd.f32 %v2085_v14, %v7558_v57 }
 0x8a1   :  { %v2112_v36 = vmul.f32 1.442695, %v2104_v59 }
 0x8a2   :  { %v2114_v48 = vmul.f32 1.442695, %v2105_v11  ;;  %v2091_v35 = vpop.xlane.xlu1 %2090 }
 0x8a3   :  { %v2107_v51 = vadd.f32 %v2091_v35, %v7558_v57  ;;  %v2088_v27 = vpop.xlane.xlu0 %2087 }
 0x8a4   :  { %6217 = vpow2.f32 %v2114_v48  ;;  %v2106_v38 = vadd.f32 %v2088_v27, %v7558_v57 }
 0x8a5   :  { %6219 = vpow2.f32 %v2112_v36  ;;  %v2118_v8 = vmul.f32 1.442695, %v2107_v51 }
 0x8a6   :  { %v2116_v25 = vmul.f32 1.442695, %v2106_v38  ;;  %v2097_v54 = vpop.xlane.xlu1 %2096 }
 0x8a7   :  { %v2109_v12 = vadd.f32 %v2097_v54, %v7558_v57  ;;  %v2094_v0 = vpop.xlane.xlu0 %2093 }
 0x8a8   :  { %6221 = vpow2.f32 %v2116_v25  ;;  %v2108_v29 = vadd.f32 %v2094_v0, %v7558_v57 }
 0x8a9   :  { %6223 = vpow2.f32 %v2118_v8  ;;  %v2122_v41 = vmul.f32 1.442695, %v2109_v12 }
 0x8aa   :  { %v2120_v22 = vmul.f32 1.442695, %v2108_v29  ;;  %v2103_v20 = vpop.xlane.xlu1 %2102 }
 0x8ab   :  { %v2111_v1 = vadd.f32 %v2103_v20, %v7558_v57  ;;  %v2100_v60 = vpop.xlane.xlu0 %2099 }
 0x8ac   :  { %6225 = vpow2.f32 %v2120_v22  ;;  %v2110_v17 = vadd.f32 %v2100_v60, %v7558_v57 }
 0x8ad   :  { %6227 = vpow2.f32 %v2122_v41  ;;  %v2126_v26 = vmul.f32 1.442695, %v2111_v1 }
 0x8ae   :  { %v6218_v46 = vpop.eup %6217  ;;  %v2124_v2 = vmul.f32 1.442695, %v2110_v17 }
 0x8af   :  { %v6220_v40 = vpop.eup %6219  ;;  %6229 = vpow2.f32 %v2126_v26  ;;  %v2143_v9 = vrot.slane %v6218_v46, %v7050_v5 }
 0x8b0   :  { %6231 = vpow2.f32 %v2124_v2  ;;  %v2139_v59 = vrot.slane %v6220_v40, %v7050_v5 }
 0x8b2   :  { %v6222_v7 = vpop.eup %6221  ;;  %v2168_v36 = vsel %vm776_vm2, %v2143_v9, %v2139_v59 }
 0x8b3   :  { %v6224_v14 = vpop.eup %6223  ;;  %v2147_v11 = vrot.slane %v6222_v7, %v7050_v5 }
 0x8b4   :  { %v2151_v51 = vrot.slane %v6224_v14, %v7050_v5 }
 0x8b5   :  { %v2169_v48 = vsel %vm778_vm3, %v2147_v11, %v2168_v36 }
 0x8b6   :  { %v6226_v35 = vpop.eup %6225  ;;  %v2170_v8 = vsel %vm780_vm4, %v2151_v51, %v2169_v48 }
 0x8b7   :  { %v6228_v27 = vpop.eup %6227  ;;  %v2155_v38 = vrot.slane %v6226_v35, %v7050_v5 }
 0x8b8   :  { %v2159_v0 = vrot.slane %v6228_v27, %v7050_v5 }
 0x8b9   :  { %v6230_v25 = vpop.eup %6229  ;;  %v2171_v54 = vsel %vm782_vm5, %v2155_v38, %v2170_v8 }
 0x8ba   :  { %v6232_v12 = vpop.eup %6231  ;;  %v2167_v41 = vrot.slane %v6230_v25, %v7050_v5  ;;  %v2172_v22 = vsel %vm784_vm6, %v2159_v0, %v2171_v54 }
 0x8bb   :  { %v2163_v29 = vrot.slane %v6232_v12, %v7050_v5 }
 0x8bd   :  { %v2173_v20 = vsel %vm786_vm7, %v2163_v29, %v2172_v22 }
 0x8be   :  { %v2174_v1 = vsel %vm788_vm8, %v2167_v41, %v2173_v20 }
 0x8bf   :  { %v2176_v60 = vsel %vm196_vm0, %v2174_v1, 0.0 }
 0x8c0   :  { %2177 = vadd.xlane.f32.xlu0 %v2176_v60 }
 0x94d   :  { %v2178_v17 = vpop.xlane.xlu0 %2177 }
 0x94e   :  { %6233 = vrcp.f32 %v2178_v17 }
 0x958   :  { %v6234_v26 = vpop.eup %6233 }
 0x959   :  { %v2188_v2 = vrot.slane %v6234_v26, %v7585_v19  ;;  %v2184_v9 = vrot.slane %v6234_v26, %v7483_v21  ;;  %v2200_v59 = vrot.slane %v6234_v26, %v7594_v50  ;;  %v2192_v11 = vrot.slane %v6234_v26, %v7588_v30 }
 0x95a   :  { %v2208_v36 = vrot.slane %v6234_v26, %v7609_v63  ;;  %v2196_v48 = vrot.slane %v6234_v26, %v7591_v44  ;;  %v2204_v41 = vrot.slane %v6234_v26, %v7602_v15 }
 0x95b   :  { %v2222_v51 = vmul.f32 %v6218_v46, %v2188_v2  ;;  %v2221_v38 = vmul.f32 %v6220_v40, %v2184_v9  ;;  %v2225_v8 = vmul.f32 %v6226_v35, %v2200_v59  ;;  %v2223_v54 = vmul.f32 %v6222_v7, %v2192_v11 }
 0x95c   :  { %v2227_v0 = vmul.f32 %v6232_v12, %v2208_v36  ;;  %v2224_v29 = vmul.f32 %v6224_v14, %v2196_v48  ;;  %v2226_v40 = vmul.f32 %v6228_v27, %v2204_v41  ;;  %v2212_v7 = vrot.slane %v6234_v26, %v7614_v3 }
 0x95d   :  { %v2230_v22 = vmul.f32 %v2222_v51, %v7088_v47  ;;  %v2229_v20 = vmul.f32 %v2221_v38, %v7047_v4  ;;  %v2233_v1 = vmul.f32 %v2225_v8, %v7267_v53  ;;  %v2231_v60 = vmul.f32 %v2223_v54, %v7160_v45 }
 0x95e   :  { %v2235_v52 = vmul.f32 %v2227_v0, %v7360_v28  ;;  %v2232_v46 = vmul.f32 %v2224_v29, %v7198_v34  ;;  %v2234_v4 = vmul.f32 %v2226_v40, %v7299_v61  ;;  %v2228_v47 = vmul.f32 %v6230_v25, %v2212_v7 }
 0x95f   :  { %v2238_v17 = vpack.c.bf16 %v2230_v22, %v2230_v22  ;;  %v2237_v31 = vpack.c.bf16 %v2229_v20, %v2229_v20  ;;  %v2241_v12 = vpack.c.bf16 %v2233_v1, %v2233_v1  ;;  %v2239_v2 = vpack.c.bf16 %v2231_v60, %v2231_v60 }
 0x960   :  { %v2243_v9 = vpack.c.bf16 %v2235_v52, %v2235_v52  ;;  %v2240_v59 = vpack.c.bf16 %v2232_v46, %v2232_v46  ;;  %v2242_v27 = vpack.c.bf16 %v2234_v4, %v2234_v4  ;;  %v2236_v26 = vmul.f32 %v2228_v47, %v7388_v43 }
 0x961   :  { %v2254_v14 = vunpack.c.l.b16 %v2238_v17  ;;  %v2253_v35 = vunpack.c.l.b16 %v2237_v31  ;;  %v2257_v53 = vunpack.c.l.b16 %v2241_v12  ;;  %v2255_v45 = vunpack.c.l.b16 %v2239_v2 }
 0x962   :  { %v2259_v28 = vunpack.c.l.b16 %v2243_v9  ;;  %v2256_v34 = vunpack.c.l.b16 %v2240_v59  ;;  %v2258_v31 = vunpack.c.l.b16 %v2242_v27  ;;  %v2244_v11 = vpack.c.bf16 %v2236_v26, %v2236_v26 }
 0x963   :  { %2265 = vperm.xlu0 %6155, %v2254_v14   ;;  %2262 = vperm.xlu1 %6154, %v2253_v35  }
 0x964   :  { %v2260_v36 = vunpack.c.l.b16 %v2244_v11 }
 0x967   :  { %2274 = vperm.xlu0 %6155, %v2257_v53   ;;  %2268 = vperm.xlu1 %6154, %v2255_v45  }
 0x96b   :  { %2280 = vperm.xlu0 %6155, %v2259_v28   ;;  %2271 = vperm.xlu1 %6154, %v2256_v34  }
 0x96f   :  { %2277 = vperm.xlu1 %6154, %v2258_v31  }
 0x973   :  { %2283 = vperm.xlu1 %6154, %v2260_v36  }
 0x9e2   :  { %v2263_v61 = vpop.permute.xlu1 %2262  ;;  %v2266_v25 = vpop.permute.xlu0 %2265 }
 0x9e3   :  { %v2292_v52 = vrot.slane %v2266_v25, %v7050_v5  ;;  %v2288_v51 = vrot.slane %v2263_v61, %v7050_v5 }
 0x9e5   :  { %v2317_v43 = vsel %vm776_vm2, %v2292_v52, %v2288_v51 }
 0x9e6   :  { %v2269_v48 = vpop.permute.xlu1 %2268  ;;  %v2275_v8 = vpop.permute.xlu0 %2274 }
 0x9e7   :  { %v2296_v38 = vrot.slane %v2269_v48, %v7050_v5  ;;  %v2304_v22 = vrot.slane %v2275_v8, %v7050_v5 }
 0x9e9   :  { %v2318_v29 = vsel %vm778_vm3, %v2296_v38, %v2317_v43 }
 0x9ea   :  { %v2272_v54 = vpop.permute.xlu1 %2271  ;;  %v2281_v1 = vpop.permute.xlu0 %2280 }
 0x9eb   :  { %v2300_v0 = vrot.slane %v2272_v54, %v7050_v5  ;;  %v2312_v40 = vrot.slane %v2281_v1, %v7050_v5 }
 0x9ed   :  { %v2319_v41 = vsel %vm780_vm4, %v2300_v0, %v2318_v29 }
 0x9ee   :  { %v2278_v20 = vpop.permute.xlu1 %2277  ;;  %v2320_v17 = vsel %vm782_vm5, %v2304_v22, %v2319_v41 }
 0x9ef   :  { %v2308_v60 = vrot.slane %v2278_v20, %v7050_v5 }
 0x9f1   :  { %v2321_v46 = vsel %vm784_vm6, %v2308_v60, %v2320_v17 }
 0x9f2   :  { %v2284_v7 = vpop.permute.xlu1 %2283  ;;  %v2322_v35 = vsel %vm786_vm7, %v2312_v40, %v2321_v46 }
 0x9f3   :  { %v2316_v14 = vrot.slane %v2284_v7, %v7050_v5 }
 0x9f5   :  { %v2323_v12 = vsel %vm788_vm8, %v2316_v14, %v2322_v35 }
 0x9f6   :  { %v2324_v2 = vpack.c.b16 %v2323_v12, %v2323_v12 }
 0x9f8   :  { %5996 = vmatmul.mubr.msk.bf16.vlgmr.msra.gmra.mrb[16].mxu1 %vm196_vm0, %v2324_v2 }
 0x9f9   :  { %6006 = vmatpush3.bf16.msra.mxu1 %v7664_v37  ;;  %6007 = vmatprep.mubr.msk.bf16.mxu1 %vm6515_vm1, %v8811_v58 }
 0x9fa   :  { %6017 = vmatprep.subr.bf16.mxu1 %v8811_v58 }
 0xacb   :  { %v2362_v4 = vpop.f32.mrb[16].mxu1 }
 0xacc   :  { %v2363_v47 = vadd.f32 %v2362_v4, %v7705_v6  ;;  %v5997_v53 = vpop.f32.mrb[17].mxu1 }
 0xacd   :  { %v2365_v45 = vpop.f32.mrb[18].mxu1 }
 0xace   :  { %v2368_v9 = vadd.f32 %v7673_v56, %v2363_v47  ;;  %v5998_v59 = vpop.f32.mrb[19].mxu1 }
 0xad0   :  { %6235 = vtanh.f32 %v2368_v9  ;;  %v5833_v34 = vmul.f32 -1.442695, %v2368_v9 }
 0xad2   :  { %6237 = vpow2.f32 %v5833_v34 }
 0xada   :  { %v6236_v28 = vpop.eup %6235 }
 0xadb   :  { %2378 = vrot.lane.b32.xlu0 %v6236_v28, %s6518_s30 }
 0xadc   :  { %v6238_v37 = vpop.eup %6237 }
 0xadd   :  { %v2372_v27 = vadd.f32 1.0, %v6238_v37 }
 0xadf   :  { %6239 = vrcp.f32 %v2372_v27 }
 0xae9   :  { %v6240_v26 = vpop.eup %6239 }
 0xaea   :  { %v2376_v6 = vmul.f32 %v6240_v26, %v7678_v33 }
 0xb4d   :  { %v2379_v31 = vpop.permute.xlu0 %2378 }
 0xb4e   :  { %v2381_v11 = vmul.f32 %v6240_v26, %v2379_v31 }
 0xb50   :  { %2383 = vrot.lane.b32.xlu1 %v2381_v11, %s6519_s14 }
 0xbc2   :  { %v2384_v36 = vpop.permute.xlu1 %2383 }
 0xbc3   :  { %v7811_v61 = vadd.f32 %v2384_v36, %v2376_v6 }
 0xbc5   :  { %6241 = vtanh.f32 %v7811_v61  ;;  %v2394_v56 = vpack.c.bf16 %v7811_v61, %v7811_v61 }
 0xbc7   :  { %2396 = vrot.lane.b32.xlu1 %v2394_v56, %s6520_s15 }
 0xbcf   :  { %v6242_v25 = vpop.eup %6241 }
 0xbd0   :  { %2389 = vrot.lane.b32.xlu0 %v6242_v25, %s6519_s14 }
 0xc39   :  { %v2397_v48 = vpop.permute.xlu1 %2396 }
 0xc3a   :  { %6002 = vmatmul.mubr.msk.bf16.vlgmr.msra.gmra.mrb[20].mxu0 %vm1244_vm10, %v2397_v48 }
 0xc3b   :  { %6012 = vmatpush3.bf16.msra.mxu0 %v7624_v16  ;;  %6013 = vmatprep.mubr.msk.bf16.mxu0 %vm6515_vm1, %v8811_v58 }
 0xc3c   :  { %6023 = vmatprep.subr.bf16.mxu0 %v8811_v58 }
 0xc42   :  { %v2390_v33 = vpop.permute.xlu0 %2389 }
 0xc43   :  { %v7823_v52 = vmul.f32 %v6240_v26, %v2390_v33 }
 0xc45   :  { %v2393_v51 = vpack.c.bf16 %v7823_v52, %v7823_v52 }
 0xc47   :  { %2442 = vrot.lane.b32.xlu0 %v2393_v51, %s6521_s16 }
 0xcb9   :  { %v2443_v38 = vpop.permute.xlu0 %2442 }
 0xcba   :  { %6008 = vmatmul.mubr.msk.bf16.vlgmr.msra.gmra.mrb[20].mxu1 %vm1244_vm10, %v2443_v38  ;;  %6014 = vmatmul.mubr.msk.bf16.vlgmr.msra.gmra.mrb[24].mxu0 %vm1244_vm10, %v2443_v38 }
 0xcbb   :  { %6018 = vmatpush3.bf16.msra.mxu1 %v7641_v10  ;;  %6019 = vmatprep.mubr.msk.bf16.mxu1 %vm6515_vm1, %v8811_v58 }
 0xcbc   :  { %6024 = vmatpush3.bf16.msra.mxu0 %v7632_v62  ;;  %6025 = vmatprep.mubr.msk.bf16.mxu0 %vm6515_vm1, %v8811_v58  ;;  %v7843_v62 = vld [vmem:[%s8700_s5] ss:$0 sm:$0xff] }
 0xcbd   :  { %6029 = vmatprep.subr.bf16.mxu1 %v8811_v58  ;;  %6035 = vmatprep.subr.bf16.mxu0 %v8811_v58 }
 0xd0d   :  { %v2435_v16 = vpop.f32.mrb[20].mxu0 }
 0xd0e   :  { %v6003_v8 = vpop.f32.mrb[21].mxu0 }
 0xd0f   :  { %v2438_v54 = vpop.f32.mrb[22].mxu0 }
 0xd10   :  { %v6004_v43 = vpop.f32.mrb[23].mxu0 }
 0xd8d   :  { %v2481_v0 = vpop.f32.mrb[20].mxu1  ;;  %v7838_v29 = vpop.f32.mrb[24].mxu0 }
 0xd8e   :  { %v2482_v41 = vadd.f32 %v2481_v0, %v2435_v16  ;;  %v6009_v22 = vpop.f32.mrb[21].mxu1  ;;  %v6015_v20 = vpop.f32.mrb[25].mxu0  ;;  %v7871_v0 = vld [vmem:[%s8702_s8] ss:$0 sm:$0xff] }
 0xd8f   :  { %v2484_v1 = vpop.f32.mrb[22].mxu1  ;;  %v2525_v60 = vpop.f32.mrb[26].mxu0 }
 0xd90   :  { %v2487_v17 = vadd.f32 %v7843_v62, %v2482_v41  ;;  %v6010_v46 = vpop.f32.mrb[23].mxu1  ;;  %v6016_v40 = vpop.f32.mrb[27].mxu0 }
 0xd92   :  { %v2529_v7 = vcombine.high %v2487_v17, %v2487_v17  ;;  %v2536_v14 = vrot.slane %v2487_v17, %v7478_v32 }
 0xd94   :  { %v2543_v35 = vrot.slane %v2529_v7, %v7478_v32  ;;  %v2544_v12 = vcombine.high %v2536_v14, %v2536_v14  ;;  %v2552_v2 = vrot.slane %v2536_v14, %v7478_v32 }
 0xd96   :  { %v2545_v4 = vcombine.high %v2543_v35, %v2543_v35  ;;  %v2559_v47 = vrot.slane %v2543_v35, %v7478_v32  ;;  %v2566_v53 = vrot.slane %v2544_v12, %v7478_v32  ;;  %v2574_v45 = vcombine.high %v2552_v2, %v2552_v2 }
 0xd97   :  { %v2581_v9 = vrot.slane %v2552_v2, %v7483_v21 }
 0xd98   :  { %v2573_v59 = vrot.slane %v2545_v4, %v7478_v32  ;;  %v2576_v28 = vcombine.high %v2566_v53, %v2566_v53  ;;  %v2585_v34 = vrot.slane %v2566_v53, %v7483_v21  ;;  %v2575_v37 = vcombine.high %v2559_v47, %v2559_v47 }
 0xd99   :  { %v2589_v27 = vrot.slane %v2574_v45, %v7483_v21  ;;  %v2597_v26 = vrot.slane %v2559_v47, %v7483_v21  ;;  %v2618_v31 = vadd.f32 %v2581_v9, %v7497_v13 }
 0xd9a   :  { %v2577_v11 = vcombine.high %v2573_v59, %v2573_v59  ;;  %v2593_v6 = vrot.slane %v2576_v28, %v7483_v21  ;;  %v2601_v36 = vrot.slane %v2573_v59, %v7483_v21  ;;  %v2619_v56 = vadd.f32 %v2585_v34, %v7494_v55 }
 0xd9b   :  { %v2620_v25 = vadd.f32 %v2589_v27, %v7516_v42  ;;  %v2622_v48 = vadd.f32 %v2597_v26, %v7533_v39  ;;  %6243 = vtanh.f32 %v2618_v31  ;;  %v2605_v38 = vrot.slane %v2575_v37, %v7483_v21 }
 0xd9c   :  { %v2609_v33 = vrot.slane %v2577_v11, %v7483_v21  ;;  %v2621_v51 = vadd.f32 %v2593_v6, %v7513_v49  ;;  %v2623_v16 = vadd.f32 %v2601_v36, %v7529_v18  ;;  %6245 = vtanh.f32 %v2619_v56 }
 0xd9d   :  { %6247 = vtanh.f32 %v2620_v25  ;;  %v2624_v54 = vadd.f32 %v2605_v38, %v7546_v23 }
 0xd9e   :  { %6249 = vtanh.f32 %v2622_v48  ;;  %v2625_v8 = vadd.f32 %v2609_v33, %v7541_v24 }
 0xd9f   :  { %6251 = vtanh.f32 %v2621_v51 }
 0xda0   :  { %6253 = vtanh.f32 %v2623_v16 }
 0xda1   :  { %6255 = vtanh.f32 %v2625_v8 }
 0xda2   :  { %6257 = vtanh.f32 %v2624_v54 }
 0xda5   :  { %v6244_v43 = vpop.eup %6243 }
 0xda6   :  { %v2634_v41 = vmul.f32 %v7871_v0, %v6244_v43  ;;  %v6246_v22 = vpop.eup %6245 }
 0xda7   :  { %v6248_v20 = vpop.eup %6247  ;;  %v2635_v60 = vmul.f32 %v7871_v0, %v6246_v22 }
 0xda8   :  { %v2642_v1 = vsel %vm196_vm0, %v2634_v41, 0.0  ;;  %v6250_v17 = vpop.eup %6249  ;;  %v2636_v7 = vmul.f32 %v7871_v0, %v6248_v20 }
 0xda9   :  { %2643 = vadd.xlane.f32.xlu1 %v2642_v1  ;;  %v6252_v46 = vpop.eup %6251  ;;  %v2645_v40 = vsel %vm196_vm0, %v2635_v60, 0.0  ;;  %v2638_v53 = vmul.f32 %v7871_v0, %v6250_v17 }
 0xdaa   :  { %v6254_v14 = vpop.eup %6253  ;;  %2646 = vadd.xlane.f32.xlu0 %v2645_v40  ;;  %v2637_v35 = vmul.f32 %v7871_v0, %v6252_v46  ;;  %v2648_v47 = vsel %vm196_vm0, %v2636_v7, 0.0 }
 0xdab   :  { %v2639_v2 = vmul.f32 %v7871_v0, %v6254_v14  ;;  %v6256_v4 = vpop.eup %6255  ;;  %v2654_v28 = vsel %vm196_vm0, %v2638_v53, 0.0 }
 0xdac   :  { %v2651_v12 = vsel %vm196_vm0, %v2637_v35, 0.0  ;;  %v6258_v45 = vpop.eup %6257  ;;  %v2641_v59 = vmul.f32 %v7871_v0, %v6256_v4 }
 0xdad   :  { %2652 = vadd.xlane.f32.xlu1 %v2651_v12  ;;  %v2657_v9 = vsel %vm196_vm0, %v2639_v2, 0.0  ;;  %v2640_v34 = vmul.f32 %v7871_v0, %v6258_v45 }
 0xdae   :  { %2649 = vadd.xlane.f32.xlu0 %v2648_v47  ;;  %v2663_v37 = vsel %vm196_vm0, %v2641_v59, 0.0 }
 0xdaf   :  { %v2660_v27 = vsel %vm196_vm0, %v2640_v34, 0.0 }
 0xdb1   :  { %2658 = vadd.xlane.f32.xlu1 %v2657_v9 }
 0xdb2   :  { %2655 = vadd.xlane.f32.xlu0 %v2654_v28 }
 0xdb5   :  { %2664 = vadd.xlane.f32.xlu1 %v2663_v37 }
 0xdb6   :  { %2661 = vadd.xlane.f32.xlu0 %v2660_v27 }
 0xe36   :  { %v2644_v26 = vpop.xlane.xlu1 %2643 }
 0xe37   :  { %v2666_v31 = vadd.f32 %v2644_v26, %v7558_v57  ;;  %v2647_v11 = vpop.xlane.xlu0 %2646 }
 0xe38   :  { %v2667_v6 = vadd.f32 %v2647_v11, %v7558_v57 }
 0xe39   :  { %v2674_v36 = vmul.f32 1.442695, %v2666_v31 }
 0xe3a   :  { %v2676_v56 = vmul.f32 1.442695, %v2667_v6  ;;  %v2653_v25 = vpop.xlane.xlu1 %2652 }
 0xe3b   :  { %v2669_v48 = vadd.f32 %v2653_v25, %v7558_v57  ;;  %v2650_v33 = vpop.xlane.xlu0 %2649 }
 0xe3c   :  { %6259 = vpow2.f32 %v2676_v56  ;;  %v2668_v51 = vadd.f32 %v2650_v33, %v7558_v57 }
 0xe3d   :  { %6261 = vpow2.f32 %v2674_v36  ;;  %v2680_v38 = vmul.f32 1.442695, %v2669_v48 }
 0xe3e   :  { %v2678_v16 = vmul.f32 1.442695, %v2668_v51  ;;  %v2659_v8 = vpop.xlane.xlu1 %2658 }
 0xe3f   :  { %v2671_v54 = vadd.f32 %v2659_v8, %v7558_v57  ;;  %v2656_v43 = vpop.xlane.xlu0 %2655 }
 0xe40   :  { %6263 = vpow2.f32 %v2678_v16  ;;  %v2670_v41 = vadd.f32 %v2656_v43, %v7558_v57 }
 0xe41   :  { %6265 = vpow2.f32 %v2680_v38  ;;  %v2684_v22 = vmul.f32 1.442695, %v2671_v54 }
 0xe42   :  { %v2682_v20 = vmul.f32 1.442695, %v2670_v41  ;;  %v2665_v1 = vpop.xlane.xlu1 %2664 }
 0xe43   :  { %v2673_v60 = vadd.f32 %v2665_v1, %v7558_v57  ;;  %v2662_v17 = vpop.xlane.xlu0 %2661 }
 0xe44   :  { %6267 = vpow2.f32 %v2682_v20  ;;  %v2672_v46 = vadd.f32 %v2662_v17, %v7558_v57 }
 0xe45   :  { %6269 = vpow2.f32 %v2684_v22  ;;  %v2688_v40 = vmul.f32 1.442695, %v2673_v60 }
 0xe46   :  { %v6260_v7 = vpop.eup %6259  ;;  %v2686_v14 = vmul.f32 1.442695, %v2672_v46 }
 0xe47   :  { %v6262_v35 = vpop.eup %6261  ;;  %6271 = vpow2.f32 %v2688_v40  ;;  %v2705_v12 = vrot.slane %v6260_v7, %v7050_v5 }
 0xe48   :  { %6273 = vpow2.f32 %v2686_v14  ;;  %v2701_v4 = vrot.slane %v6262_v35, %v7050_v5 }
 0xe4a   :  { %v6264_v2 = vpop.eup %6263  ;;  %v2730_v45 = vsel %vm776_vm2, %v2705_v12, %v2701_v4  ;;  %v8813_v4 = vld [vmem:[#allocation9_spill] sm:$0xff] }
 0xe4b   :  { %v6266_v47 = vpop.eup %6265  ;;  %v2709_v53 = vrot.slane %v6264_v2, %v7050_v5 }
 0xe4c   :  { %v2713_v28 = vrot.slane %v6266_v47, %v7050_v5 }
 0xe4d   :  { %v2731_v9 = vsel %vm778_vm3, %v2709_v53, %v2730_v45  ;;  %v8814_v45 = vld [vmem:[#allocation5_spill] sm:$0xff] }
 0xe4e   :  { %v6268_v59 = vpop.eup %6267  ;;  %v2732_v27 = vsel %vm780_vm4, %v2713_v28, %v2731_v9  ;;  %v8815_v28 = vld [vmem:[#allocation28_spill] sm:$0xff] }
 0xe4f   :  { %v6270_v34 = vpop.eup %6269  ;;  %v2717_v37 = vrot.slane %v6268_v59, %v7050_v5 }
 0xe50   :  { %v2721_v6 = vrot.slane %v6270_v34, %v7050_v5 }
 0xe51   :  { %v6272_v26 = vpop.eup %6271  ;;  %v2733_v31 = vsel %vm782_vm5, %v2717_v37, %v2732_v27  ;;  %v8816_v27 = vld [vmem:[#allocation16_spill] sm:$0xff] }
 0xe52   :  { %v6274_v11 = vpop.eup %6273  ;;  %v2729_v56 = vrot.slane %v6272_v26, %v7050_v5  ;;  %v2734_v25 = vsel %vm784_vm6, %v2721_v6, %v2733_v31 }
 0xe53   :  { %v2725_v36 = vrot.slane %v6274_v11, %v7050_v5 }
 0xe55   :  { %v2735_v48 = vsel %vm786_vm7, %v2725_v36, %v2734_v25 }
 0xe56   :  { %v2736_v33 = vsel %vm788_vm8, %v2729_v56, %v2735_v48  ;;  %v8817_v56 = vld [vmem:[#allocation40_spill] sm:$0xff] }
 0xe57   :  { %v2738_v51 = vsel %vm196_vm0, %v2736_v33, 0.0 }
 0xe58   :  { %2739 = vadd.xlane.f32.xlu0 %v2738_v51  ;;  %v8819_v51 = vld [vmem:[#allocation33_spill] sm:$0xff] }
 0xee5   :  { %v2740_v38 = vpop.xlane.xlu0 %2739 }
 0xee6   :  { %6275 = vrcp.f32 %v2740_v38 }
 0xef0   :  { %v6276_v16 = vpop.eup %6275 }
 0xef1   :  { %v2750_v8 = vrot.slane %v6276_v16, %v7585_v19  ;;  %v2746_v54 = vrot.slane %v6276_v16, %v7483_v21  ;;  %v2762_v43 = vrot.slane %v6276_v16, %v7594_v50  ;;  %v2754_v41 = vrot.slane %v6276_v16, %v7588_v30 }
 0xef2   :  { %v2770_v22 = vrot.slane %v6276_v16, %v7609_v63  ;;  %v2758_v20 = vrot.slane %v6276_v16, %v7591_v44  ;;  %v2766_v12 = vrot.slane %v6276_v16, %v7602_v15 }
 0xef3   :  { %v2784_v1 = vmul.f32 %v6260_v7, %v2750_v8  ;;  %v2783_v60 = vmul.f32 %v6262_v35, %v2746_v54  ;;  %v2787_v17 = vmul.f32 %v6268_v59, %v2762_v43  ;;  %v2785_v46 = vmul.f32 %v6264_v2, %v2754_v41  ;;  %v8818_v7 = vld [vmem:[#allocation21_spill] sm:$0xff] }
 0xef4   :  { %v2789_v40 = vmul.f32 %v6274_v11, %v2770_v22  ;;  %v2786_v14 = vmul.f32 %v6266_v47, %v2758_v20  ;;  %v2788_v59 = vmul.f32 %v6270_v34, %v2766_v12  ;;  %v2774_v2 = vrot.slane %v6276_v16, %v7614_v3 }
 0xef5   :  { %v2792_v53 = vmul.f32 %v2784_v1, %v8813_v4  ;;  %v2791_v9 = vmul.f32 %v2783_v60, %v8814_v45  ;;  %v2795_v37 = vmul.f32 %v2787_v17, %v8815_v28  ;;  %v2793_v31 = vmul.f32 %v2785_v46, %v8816_v27  ;;  %v8820_v60 = vld [vmem:[#allocation44_spill] sm:$0xff] }
 0xef6   :  { %v2797_v25 = vmul.f32 %v2789_v40, %v8817_v56  ;;  %v2794_v35 = vmul.f32 %v2786_v14, %v8818_v7  ;;  %v2796_v38 = vmul.f32 %v2788_v59, %v8819_v51  ;;  %v2790_v8 = vmul.f32 %v6272_v26, %v2774_v2 }
 0xef7   :  { %v2800_v6 = vpack.c.bf16 %v2792_v53, %v2792_v53  ;;  %v2799_v36 = vpack.c.bf16 %v2791_v9, %v2791_v9  ;;  %v2803_v48 = vpack.c.bf16 %v2795_v37, %v2795_v37  ;;  %v2801_v33 = vpack.c.bf16 %v2793_v31, %v2793_v31 }
 0xef8   :  { %v2805_v41 = vpack.c.bf16 %v2797_v25, %v2797_v25  ;;  %v2802_v22 = vpack.c.bf16 %v2794_v35, %v2794_v35  ;;  %v2804_v34 = vpack.c.bf16 %v2796_v38, %v2796_v38  ;;  %v2798_v16 = vmul.f32 %v2790_v8, %v8820_v60  ;;  %v7948_v38 = vld [vmem:[%s8697_s3] sm:$0xff]  }
 0xef9   :  { %v2816_v47 = vunpack.c.l.b16 %v2800_v6  ;;  %v2815_v11 = vunpack.c.l.b16 %v2799_v36  ;;  %v2819_v54 = vunpack.c.l.b16 %v2803_v48  ;;  %v2817_v43 = vunpack.c.l.b16 %v2801_v33 }
 0xefa   :  { %v2821_v20 = vunpack.c.l.b16 %v2805_v41  ;;  %v2818_v1 = vunpack.c.l.b16 %v2802_v22  ;;  %v2820_v17 = vunpack.c.l.b16 %v2804_v34  ;;  %v2806_v46 = vpack.c.bf16 %v2798_v16, %v2798_v16  ;;  %v7958_v22 = vld [vmem:[%s8706_s12] ss:$0 sm:$0xff] }
 0xefb   :  { %2827 = vperm.xlu0 %6155, %v2816_v47   ;;  %2824 = vperm.xlu1 %6154, %v2815_v11  }
 0xefc   :  { %v2822_v40 = vunpack.c.l.b16 %v2806_v46 }
 0xeff   :  { %2836 = vperm.xlu0 %6155, %v2819_v54   ;;  %2830 = vperm.xlu1 %6154, %v2817_v43  }
 0xf03   :  { %2842 = vperm.xlu0 %6155, %v2821_v20   ;;  %2833 = vperm.xlu1 %6154, %v2818_v1  }
 0xf07   :  { %2839 = vperm.xlu1 %6154, %v2820_v17  }
 0xf0b   :  { %2845 = vperm.xlu1 %6154, %v2822_v40  }
 0xf7a   :  { %v2825_v14 = vpop.permute.xlu1 %2824  ;;  %v2828_v26 = vpop.permute.xlu0 %2827 }
 0xf7b   :  { %v2854_v4 = vrot.slane %v2828_v26, %v7050_v5  ;;  %v2850_v53 = vrot.slane %v2825_v14, %v7050_v5 }
 0xf7d   :  { %v2879_v37 = vsel %vm776_vm2, %v2854_v4, %v2850_v53 }
 0xf7e   :  { %v2831_v12 = vpop.permute.xlu1 %2830  ;;  %v2837_v9 = vpop.permute.xlu0 %2836 }
 0xf7f   :  { %v2858_v45 = vrot.slane %v2831_v12, %v7050_v5  ;;  %v2866_v36 = vrot.slane %v2837_v9, %v7050_v5 }
 0xf81   :  { %v2880_v31 = vsel %vm778_vm3, %v2858_v45, %v2879_v37 }
 0xf82   :  { %v2834_v28 = vpop.permute.xlu1 %2833  ;;  %v2843_v25 = vpop.permute.xlu0 %2842 }
 0xf83   :  { %v2862_v27 = vrot.slane %v2834_v28, %v7050_v5  ;;  %v2874_v2 = vrot.slane %v2843_v25, %v7050_v5 }
 0xf85   :  { %v2881_v6 = vsel %vm780_vm4, %v2862_v27, %v2880_v31  ;;  %v7994_v31 = vld [vmem:[%s8696_s4] sm:$0xff]  }
 0xf86   :  { %v2840_v56 = vpop.permute.xlu1 %2839  ;;  %v2882_v35 = vsel %vm782_vm5, %v2866_v36, %v2881_v6 }
 0xf87   :  { %v2870_v7 = vrot.slane %v2840_v56, %v7050_v5 }
 0xf89   :  { %v2883_v59 = vsel %vm784_vm6, %v2870_v7, %v2882_v35 }
 0xf8a   :  { %v2846_v47 = vpop.permute.xlu1 %2845  ;;  %v2884_v48 = vsel %vm786_vm7, %v2874_v2, %v2883_v59 }
 0xf8b   :  { %v2878_v11 = vrot.slane %v2846_v47, %v7050_v5 }
 0xf8d   :  { %v2885_v33 = vsel %vm788_vm8, %v2878_v11, %v2884_v48 }
 0xf8e   :  { %v2886_v51 = vpack.c.b16 %v2885_v33, %v2885_v33 }
 0xf90   :  { %6020 = vmatmul.mubr.msk.bf16.vlgmr.msra.gmra.mrb[24].mxu1 %vm196_vm0, %v2886_v51 }
 0xf91   :  { %6030 = vmatpush3.bf16.msra.mxu1 %v7948_v38  ;;  %6031 = vmatprep.mubr.msk.bf16.mxu1 %vm6515_vm1, %v8811_v58 }
 0xf92   :  { %6041 = vmatprep.subr.bf16.mxu1 %v8811_v58 }
0x1063   :  { %v2924_v8 = vpop.f32.mrb[24].mxu1 }
0x1064   :  { %v2925_v54 = vadd.f32 %v2924_v8, %v7838_v29  ;;  %v6021_v43 = vpop.f32.mrb[25].mxu1 }
0x1065   :  { %v2927_v41 = vpop.f32.mrb[26].mxu1 }
0x1066   :  { %v2930_v20 = vadd.f32 %v7958_v22, %v2925_v54  ;;  %v6022_v1 = vpop.f32.mrb[27].mxu1 }
0x1068   :  { %6277 = vtanh.f32 %v2930_v20  ;;  %v5838_v60 = vmul.f32 -1.442695, %v2930_v20 }
0x106a   :  { %6279 = vpow2.f32 %v5838_v60 }
0x1072   :  { %v6278_v34 = vpop.eup %6277 }
0x1073   :  { %2940 = vrot.lane.b32.xlu0 %v6278_v34, %s6518_s30 }
0x1074   :  { %v6280_v16 = vpop.eup %6279 }
0x1075   :  { %v2934_v17 = vadd.f32 1.0, %v6280_v16 }
0x1077   :  { %6281 = vrcp.f32 %v2934_v17 }
0x1081   :  { %v6282_v29 = vpop.eup %6281 }
0x1082   :  { %v2938_v14 = vmul.f32 %v6282_v29, %v7811_v61  ;;  %v7975_v61 = vld [vmem:[%s8704_s11] sm:$0xff]  }
0x10e5   :  { %v2941_v46 = vpop.permute.xlu0 %2940 }
0x10e6   :  { %v2943_v40 = vmul.f32 %v6282_v29, %v2941_v46 }
0x10e8   :  { %2945 = vrot.lane.b32.xlu1 %v2943_v40, %s6519_s14 }
0x115a   :  { %v2946_v26 = vpop.permute.xlu1 %2945 }
0x115b   :  { %v7964_v12 = vadd.f32 %v2946_v26, %v2938_v14 }
0x115d   :  { %6283 = vtanh.f32 %v7964_v12  ;;  %v2956_v4 = vpack.c.bf16 %v7964_v12, %v7964_v12 }
0x115f   :  { %2958 = vrot.lane.b32.xlu1 %v2956_v4, %s6520_s15 }
0x1167   :  { %v6284_v53 = vpop.eup %6283 }
0x1168   :  { %2951 = vrot.lane.b32.xlu0 %v6284_v53, %s6519_s14 }
0x11d1   :  { %v2959_v45 = vpop.permute.xlu1 %2958 }
0x11d2   :  { %6026 = vmatmul.mubr.msk.bf16.vlgmr.msra.gmra.mrb[28].mxu0 %vm1244_vm10, %v2959_v45 }
0x11d3   :  { %6036 = vmatpush3.bf16.msra.mxu0 %v7975_v61  ;;  %6037 = vmatprep.mubr.msk.bf16.mxu0 %vm6515_vm1, %v8811_v58 }
0x11d4   :  { %6047 = vmatprep.subr.bf16.mxu0 %v8811_v58 }
0x11da   :  { %v2952_v9 = vpop.permute.xlu0 %2951 }
0x11db   :  { %v7981_v28 = vmul.f32 %v6282_v29, %v2952_v9 }
0x11dd   :  { %8821 = vst [vmem:[#allocation9_spill] sm:$0xff] %v7981_v28  ;;  %v2955_v37 = vpack.c.bf16 %v7981_v28, %v7981_v28 }
0x11df   :  { %3004 = vrot.lane.b32.xlu0 %v2955_v37, %s6521_s16 }
0x1251   :  { %v3005_v27 = vpop.permute.xlu0 %3004 }
0x1252   :  { %6032 = vmatmul.mubr.msk.bf16.vlgmr.msra.gmra.mrb[28].mxu1 %vm1244_vm10, %v3005_v27  ;;  %6038 = vmatmul.mubr.msk.bf16.vlgmr.msra.gmra.mrb[32].mxu0 %vm1244_vm10, %v3005_v27 }
0x1253   :  { %6042 = vmatpush3.bf16.msra.mxu1 %v7641_v10  ;;  %6043 = vmatprep.mubr.msk.bf16.mxu1 %vm6515_vm1, %v8811_v58 }
0x1254   :  { %6048 = vmatpush3.bf16.msra.mxu0 %v7994_v31  ;;  %6049 = vmatprep.mubr.msk.bf16.mxu0 %vm6515_vm1, %v8811_v58 }
0x1255   :  { %6053 = vmatprep.subr.bf16.mxu1 %v8811_v58  ;;  %6059 = vmatprep.subr.bf16.mxu0 %v8811_v58 }
0x12a5   :  { %v2997_v6 = vpop.f32.mrb[28].mxu0 }
0x12a6   :  { %v6027_v36 = vpop.f32.mrb[29].mxu0 }
0x12a7   :  { %v3000_v56 = vpop.f32.mrb[30].mxu0 }
0x12a8   :  { %v6028_v25 = vpop.f32.mrb[31].mxu0 }
0x1325   :  { %v3043_v7 = vpop.f32.mrb[28].mxu1  ;;  %v8001_v35 = vpop.f32.mrb[32].mxu0 }
0x1326   :  { %v3044_v59 = vadd.f32 %v3043_v7, %v2997_v6  ;;  %v6033_v2 = vpop.f32.mrb[29].mxu1  ;;  %v6039_v47 = vpop.f32.mrb[33].mxu0 }
0x1327   :  { %v3046_v11 = vpop.f32.mrb[30].mxu1  ;;  %v3087_v48 = vpop.f32.mrb[34].mxu0 }
0x1328   :  { %v3049_v33 = vadd.f32 %v7843_v62, %v3044_v59  ;;  %v6034_v51 = vpop.f32.mrb[31].mxu1  ;;  %v6040_v8 = vpop.f32.mrb[35].mxu0 }
0x132a   :  { %v3091_v54 = vcombine.high %v3049_v33, %v3049_v33  ;;  %v3098_v43 = vrot.slane %v3049_v33, %v7478_v32 }
0x132c   :  { %v3105_v41 = vrot.slane %v3091_v54, %v7478_v32  ;;  %v3106_v20 = vcombine.high %v3098_v43, %v3098_v43  ;;  %v3114_v1 = vrot.slane %v3098_v43, %v7478_v32 }
0x132e   :  { %v3107_v34 = vcombine.high %v3105_v41, %v3105_v41  ;;  %v3121_v60 = vrot.slane %v3105_v41, %v7478_v32  ;;  %v3128_v16 = vrot.slane %v3106_v20, %v7478_v32  ;;  %v3136_v17 = vcombine.high %v3114_v1, %v3114_v1 }
0x132f   :  { %v3143_v29 = vrot.slane %v3114_v1, %v7483_v21 }
0x1330   :  { %v3135_v62 = vrot.slane %v3107_v34, %v7478_v32  ;;  %v3138_v46 = vcombine.high %v3128_v16, %v3128_v16  ;;  %v3147_v40 = vrot.slane %v3128_v16, %v7483_v21  ;;  %v3137_v14 = vcombine.high %v3121_v60, %v3121_v60 }
0x1331   :  { %v3151_v26 = vrot.slane %v3136_v17, %v7483_v21  ;;  %v3159_v4 = vrot.slane %v3121_v60, %v7483_v21  ;;  %v3180_v53 = vadd.f32 %v3143_v29, %v7497_v13 }
0x1332   :  { %v3139_v45 = vcombine.high %v3135_v62, %v3135_v62  ;;  %v3155_v9 = vrot.slane %v3138_v46, %v7483_v21  ;;  %v3163_v37 = vrot.slane %v3135_v62, %v7483_v21  ;;  %v3181_v27 = vadd.f32 %v3147_v40, %v7494_v55 }
0x1333   :  { %v3182_v6 = vadd.f32 %v3151_v26, %v7516_v42  ;;  %v3184_v36 = vadd.f32 %v3159_v4, %v7533_v39  ;;  %6285 = vtanh.f32 %v3180_v53  ;;  %v3167_v7 = vrot.slane %v3137_v14, %v7483_v21 }
0x1334   :  { %v3171_v56 = vrot.slane %v3139_v45, %v7483_v21  ;;  %v3183_v25 = vadd.f32 %v3155_v9, %v7513_v49  ;;  %v3185_v59 = vadd.f32 %v3163_v37, %v7529_v18  ;;  %6287 = vtanh.f32 %v3181_v27 }
0x1335   :  { %6289 = vtanh.f32 %v3182_v6  ;;  %v3186_v47 = vadd.f32 %v3167_v7, %v7546_v23 }
0x1336   :  { %6291 = vtanh.f32 %v3184_v36  ;;  %v3187_v2 = vadd.f32 %v3171_v56, %v7541_v24 }
0x1337   :  { %6293 = vtanh.f32 %v3183_v25 }
0x1338   :  { %6295 = vtanh.f32 %v3185_v59 }
0x1339   :  { %6297 = vtanh.f32 %v3187_v2 }
0x133a   :  { %6299 = vtanh.f32 %v3186_v47 }
0x133d   :  { %v6286_v11 = vpop.eup %6285 }
0x133e   :  { %v3196_v48 = vmul.f32 %v7871_v0, %v6286_v11  ;;  %v6288_v33 = vpop.eup %6287 }
0x133f   :  { %v6290_v51 = vpop.eup %6289  ;;  %v3197_v54 = vmul.f32 %v7871_v0, %v6288_v33 }
0x1340   :  { %v3204_v8 = vsel %vm196_vm0, %v3196_v48, 0.0  ;;  %v6292_v43 = vpop.eup %6291  ;;  %v3198_v1 = vmul.f32 %v7871_v0, %v6290_v51 }
0x1341   :  { %3205 = vadd.xlane.f32.xlu1 %v3204_v8  ;;  %v6294_v41 = vpop.eup %6293  ;;  %v3207_v20 = vsel %vm196_vm0, %v3197_v54, 0.0  ;;  %v3200_v46 = vmul.f32 %v7871_v0, %v6292_v43 }
0x1342   :  { %v6296_v34 = vpop.eup %6295  ;;  %3208 = vadd.xlane.f32.xlu0 %v3207_v20  ;;  %v3199_v60 = vmul.f32 %v7871_v0, %v6294_v41  ;;  %v3210_v62 = vsel %vm196_vm0, %v3198_v1, 0.0 }
0x1343   :  { %v3201_v17 = vmul.f32 %v7871_v0, %v6296_v34  ;;  %v6298_v29 = vpop.eup %6297  ;;  %v3216_v4 = vsel %vm196_vm0, %v3200_v46, 0.0 }
0x1344   :  { %v3213_v16 = vsel %vm196_vm0, %v3199_v60, 0.0  ;;  %v6300_v40 = vpop.eup %6299  ;;  %v3203_v26 = vmul.f32 %v7871_v0, %v6298_v29 }
0x1345   :  { %3214 = vadd.xlane.f32.xlu1 %v3213_v16  ;;  %v3219_v14 = vsel %vm196_vm0, %v3201_v17, 0.0  ;;  %v3202_v53 = vmul.f32 %v7871_v0, %v6300_v40 }
0x1346   :  { %3211 = vadd.xlane.f32.xlu0 %v3210_v62  ;;  %v3225_v45 = vsel %vm196_vm0, %v3203_v26, 0.0 }
0x1347   :  { %v3222_v9 = vsel %vm196_vm0, %v3202_v53, 0.0 }
0x1349   :  { %3220 = vadd.xlane.f32.xlu1 %v3219_v14 }
0x134a   :  { %3217 = vadd.xlane.f32.xlu0 %v3216_v4 }
0x134d   :  { %3226 = vadd.xlane.f32.xlu1 %v3225_v45 }
0x134e   :  { %3223 = vadd.xlane.f32.xlu0 %v3222_v9 }
0x13ce   :  { %v3206_v37 = vpop.xlane.xlu1 %3205 }
0x13cf   :  { %v3228_v27 = vadd.f32 %v3206_v37, %v7558_v57  ;;  %v3209_v6 = vpop.xlane.xlu0 %3208 }
0x13d0   :  { %v3229_v36 = vadd.f32 %v3209_v6, %v7558_v57 }
0x13d1   :  { %v3236_v56 = vmul.f32 1.442695, %v3228_v27 }
0x13d2   :  { %v3238_v25 = vmul.f32 1.442695, %v3229_v36  ;;  %v3215_v7 = vpop.xlane.xlu1 %3214 }
0x13d3   :  { %v3231_v59 = vadd.f32 %v3215_v7, %v7558_v57  ;;  %v3212_v2 = vpop.xlane.xlu0 %3211 }
0x13d4   :  { %6301 = vpow2.f32 %v3238_v25  ;;  %v3230_v0 = vadd.f32 %v3212_v2, %v7558_v57 }
0x13d5   :  { %6303 = vpow2.f32 %v3236_v56  ;;  %v3242_v47 = vmul.f32 1.442695, %v3231_v59 }
0x13d6   :  { %v3240_v11 = vmul.f32 1.442695, %v3230_v0  ;;  %v3221_v48 = vpop.xlane.xlu1 %3220 }
0x13d7   :  { %v3233_v33 = vadd.f32 %v3221_v48, %v7558_v57  ;;  %v3218_v51 = vpop.xlane.xlu0 %3217 }
0x13d8   :  { %6305 = vpow2.f32 %v3240_v11  ;;  %v3232_v8 = vadd.f32 %v3218_v51, %v7558_v57 }
0x13d9   :  { %6307 = vpow2.f32 %v3242_v47  ;;  %v3246_v54 = vmul.f32 1.442695, %v3233_v33 }
0x13da   :  { %v3244_v43 = vmul.f32 1.442695, %v3232_v8  ;;  %v3227_v41 = vpop.xlane.xlu1 %3226 }
0x13db   :  { %v3235_v20 = vadd.f32 %v3227_v41, %v7558_v57  ;;  %v3224_v1 = vpop.xlane.xlu0 %3223 }
0x13dc   :  { %6309 = vpow2.f32 %v3244_v43  ;;  %v3234_v34 = vadd.f32 %v3224_v1, %v7558_v57 }
0x13dd   :  { %6311 = vpow2.f32 %v3246_v54  ;;  %v3250_v60 = vmul.f32 1.442695, %v3235_v20 }
0x13de   :  { %v6302_v16 = vpop.eup %6301  ;;  %v3248_v17 = vmul.f32 1.442695, %v3234_v34 }
0x13df   :  { %v6304_v29 = vpop.eup %6303  ;;  %6313 = vpow2.f32 %v3250_v60  ;;  %v3267_v62 = vrot.slane %v6302_v16, %v7050_v5 }
0x13e0   :  { %6315 = vpow2.f32 %v3248_v17  ;;  %v3263_v40 = vrot.slane %v6304_v29, %v7050_v5 }
0x13e2   :  { %v6306_v46 = vpop.eup %6305  ;;  %v3292_v4 = vsel %vm776_vm2, %v3267_v62, %v3263_v40 }
0x13e3   :  { %v6308_v14 = vpop.eup %6307  ;;  %v3271_v26 = vrot.slane %v6306_v46, %v7050_v5 }
0x13e4   :  { %v3275_v9 = vrot.slane %v6308_v14, %v7050_v5 }
0x13e5   :  { %v3293_v53 = vsel %vm778_vm3, %v3271_v26, %v3292_v4 }
0x13e6   :  { %v6310_v45 = vpop.eup %6309  ;;  %v3294_v6 = vsel %vm780_vm4, %v3275_v9, %v3293_v53  ;;  %v8822_v53 = vld [vmem:[#allocation10_spill] sm:$0xff] }
0x13e7   :  { %v6312_v37 = vpop.eup %6311  ;;  %v3279_v27 = vrot.slane %v6310_v45, %v7050_v5 }
0x13e8   :  { %v3283_v7 = vrot.slane %v6312_v37, %v7050_v5 }
0x13e9   :  { %v6314_v36 = vpop.eup %6313  ;;  %v3295_v56 = vsel %vm782_vm5, %v3279_v27, %v3294_v6  ;;  %v8823_v27 = vld [vmem:[#allocation4_spill] sm:$0xff] }
0x13ea   :  { %v6316_v25 = vpop.eup %6315  ;;  %v3291_v2 = vrot.slane %v6314_v36, %v7050_v5  ;;  %v3296_v0 = vsel %vm784_vm6, %v3283_v7, %v3295_v56  ;;  %v8824_v56 = vld [vmem:[#allocation29_spill] sm:$0xff] }
0x13eb   :  { %v3287_v59 = vrot.slane %v6316_v25, %v7050_v5 }
0x13ed   :  { %v3297_v47 = vsel %vm786_vm7, %v3287_v59, %v3296_v0  ;;  %v8825_v59 = vld [vmem:[#allocation17_spill] sm:$0xff] }
0x13ee   :  { %v3298_v11 = vsel %vm788_vm8, %v3291_v2, %v3297_v47 }
0x13ef   :  { %v3300_v48 = vsel %vm196_vm0, %v3298_v11, 0.0  ;;  %v8826_v11 = vld [vmem:[#allocation41_spill] sm:$0xff] }
0x13f0   :  { %3301 = vadd.xlane.f32.xlu0 %v3300_v48 }
0x147d   :  { %v3302_v33 = vpop.xlane.xlu0 %3301 }
0x147e   :  { %6317 = vrcp.f32 %v3302_v33 }
0x1488   :  { %v6318_v51 = vpop.eup %6317 }
0x1489   :  { %v3312_v8 = vrot.slane %v6318_v51, %v7585_v19  ;;  %v3308_v54 = vrot.slane %v6318_v51, %v7483_v21  ;;  %v3324_v43 = vrot.slane %v6318_v51, %v7594_v50  ;;  %v3316_v41 = vrot.slane %v6318_v51, %v7588_v30 }
0x148a   :  { %v3332_v20 = vrot.slane %v6318_v51, %v7609_v63  ;;  %v3320_v1 = vrot.slane %v6318_v51, %v7591_v44  ;;  %v3328_v4 = vrot.slane %v6318_v51, %v7602_v15 }
0x148b   :  { %v3346_v34 = vmul.f32 %v6302_v16, %v3312_v8  ;;  %v3345_v60 = vmul.f32 %v6304_v29, %v3308_v54  ;;  %v3349_v17 = vmul.f32 %v6310_v45, %v3324_v43  ;;  %v3347_v62 = vmul.f32 %v6306_v46, %v3316_v41  ;;  %v8827_v16 = vld [vmem:[#allocation22_spill] sm:$0xff] }
0x148c   :  { %v3351_v40 = vmul.f32 %v6316_v25, %v3332_v20  ;;  %v3348_v26 = vmul.f32 %v6308_v14, %v3320_v1  ;;  %v3350_v45 = vmul.f32 %v6312_v37, %v3328_v4  ;;  %v3336_v46 = vrot.slane %v6318_v51, %v7614_v3  ;;  %v8828_v54 = vld [vmem:[#allocation34_spill] sm:$0xff] }
0x148d   :  { %v3354_v9 = vmul.f32 %v3346_v34, %v8822_v53  ;;  %v3353_v6 = vmul.f32 %v3345_v60, %v8823_v27  ;;  %v3357_v7 = vmul.f32 %v3349_v17, %v8824_v56  ;;  %v3355_v2 = vmul.f32 %v3347_v62, %v8825_v59 }
0x148e   :  { %v3359_v48 = vmul.f32 %v3351_v40, %v8826_v11  ;;  %v3356_v29 = vmul.f32 %v3348_v26, %v8827_v16  ;;  %v3358_v43 = vmul.f32 %v3350_v45, %v8828_v54  ;;  %v3352_v41 = vmul.f32 %v6314_v36, %v3336_v46  ;;  %v8829_v40 = vld [vmem:[#allocation46_spill] sm:$0xff] }
0x148f   :  { %v3362_v0 = vpack.c.bf16 %v3354_v9, %v3354_v9  ;;  %v3361_v47 = vpack.c.bf16 %v3353_v6, %v3353_v6  ;;  %v3365_v33 = vpack.c.bf16 %v3357_v7, %v3357_v7  ;;  %v3363_v8 = vpack.c.bf16 %v3355_v2, %v3355_v2 }
0x1490   :  { %v3367_v34 = vpack.c.bf16 %v3359_v48, %v3359_v48  ;;  %v3364_v60 = vpack.c.bf16 %v3356_v29, %v3356_v29  ;;  %v3366_v37 = vpack.c.bf16 %v3358_v43, %v3358_v43  ;;  %v3360_v51 = vmul.f32 %v3352_v41, %v8829_v40 }
0x1491   :  { %v3378_v14 = vunpack.c.l.b16 %v3362_v0  ;;  %v3377_v25 = vunpack.c.l.b16 %v3361_v47  ;;  %v3381_v20 = vunpack.c.l.b16 %v3365_v33  ;;  %v3379_v1 = vunpack.c.l.b16 %v3363_v8 }
0x1492   :  { %v3383_v17 = vunpack.c.l.b16 %v3367_v34  ;;  %v3380_v62 = vunpack.c.l.b16 %v3364_v60  ;;  %v3382_v26 = vunpack.c.l.b16 %v3366_v37  ;;  %v3368_v4 = vpack.c.bf16 %v3360_v51, %v3360_v51 }
0x1493   :  { %3389 = vperm.xlu0 %6155, %v3378_v14   ;;  %3386 = vperm.xlu1 %6154, %v3377_v25  }
0x1494   :  { %v3384_v53 = vunpack.c.l.b16 %v3368_v4 }
0x1497   :  { %3398 = vperm.xlu0 %6155, %v3381_v20   ;;  %3392 = vperm.xlu1 %6154, %v3379_v1  }
0x149b   :  { %3404 = vperm.xlu0 %6155, %v3383_v17   ;;  %3395 = vperm.xlu1 %6154, %v3380_v62  }
0x149f   :  { %3401 = vperm.xlu1 %6154, %v3382_v26  }
0x14a3   :  { %3407 = vperm.xlu1 %6154, %v3384_v53  }
0x1512   :  { %v3387_v9 = vpop.permute.xlu1 %3386  ;;  %v3390_v36 = vpop.permute.xlu0 %3389 }
0x1513   :  { %v3416_v6 = vrot.slane %v3390_v36, %v7050_v5  ;;  %v3412_v56 = vrot.slane %v3387_v9, %v7050_v5 }
0x1515   :  { %v3441_v0 = vsel %vm776_vm2, %v3416_v6, %v3412_v56 }
0x1516   :  { %v3393_v27 = vpop.permute.xlu1 %3392  ;;  %v3399_v59 = vpop.permute.xlu0 %3398 }
0x1517   :  { %v3420_v7 = vrot.slane %v3393_v27, %v7050_v5  ;;  %v3428_v16 = vrot.slane %v3399_v59, %v7050_v5 }
0x1519   :  { %v3442_v11 = vsel %vm778_vm3, %v3420_v7, %v3441_v0 }
0x151a   :  { %v3396_v2 = vpop.permute.xlu1 %3395  ;;  %v3405_v45 = vpop.permute.xlu0 %3404 }
0x151b   :  { %v3424_v47 = vrot.slane %v3396_v2, %v7050_v5  ;;  %v3436_v33 = vrot.slane %v3405_v45, %v7050_v5 }
0x151d   :  { %v3443_v48 = vsel %vm780_vm4, %v3424_v47, %v3442_v11 }
0x151e   :  { %v3402_v29 = vpop.permute.xlu1 %3401  ;;  %v3444_v14 = vsel %vm782_vm5, %v3428_v16, %v3443_v48 }
0x151f   :  { %v3432_v46 = vrot.slane %v3402_v29, %v7050_v5 }
0x1521   :  { %v3445_v25 = vsel %vm784_vm6, %v3432_v46, %v3444_v14 }
0x1522   :  { %v3408_v8 = vpop.permute.xlu1 %3407  ;;  %v3446_v43 = vsel %vm786_vm7, %v3436_v33, %v3445_v25 }
0x1523   :  { %v3440_v54 = vrot.slane %v3408_v8, %v7050_v5 }
0x1525   :  { %v3447_v41 = vsel %vm788_vm8, %v3440_v54, %v3446_v43 }
0x1526   :  { %v3448_v20 = vpack.c.b16 %v3447_v41, %v3447_v41 }
0x1528   :  { %6044 = vmatmul.mubr.msk.bf16.vlgmr.msra.gmra.mrb[32].mxu1 %vm196_vm0, %v3448_v20 }
0x1529   :  { %6054 = vmatpush3.bf16.msra.mxu1 %v7948_v38  ;;  %6055 = vmatprep.mubr.msk.bf16.mxu1 %vm6515_vm1, %v8811_v58 }
0x152a   :  { %6065 = vmatprep.subr.bf16.mxu1 %v8811_v58 }
0x15fb   :  { %v3486_v1 = vpop.f32.mrb[32].mxu1 }
0x15fc   :  { %v3487_v34 = vadd.f32 %v3486_v1, %v8001_v35  ;;  %v6045_v60 = vpop.f32.mrb[33].mxu1 }
0x15fd   :  { %v3489_v17 = vpop.f32.mrb[34].mxu1 }
0x15fe   :  { %v3492_v62 = vadd.f32 %v7958_v22, %v3487_v34  ;;  %v6046_v37 = vpop.f32.mrb[35].mxu1 }
0x1600   :  { %6319 = vtanh.f32 %v3492_v62  ;;  %v5843_v51 = vmul.f32 -1.442695, %v3492_v62 }
0x1602   :  { %6321 = vpow2.f32 %v5843_v51 }
0x160a   :  { %v6320_v40 = vpop.eup %6319 }
0x160b   :  { %3502 = vrot.lane.b32.xlu0 %v6320_v40, %s6518_s30 }
0x160c   :  { %v6322_v38 = vpop.eup %6321 }
0x160d   :  { %v3496_v26 = vadd.f32 1.0, %v6322_v38 }
0x160f   :  { %6323 = vrcp.f32 %v3496_v26 }
0x1619   :  { %v6324_v4 = vpop.eup %6323 }
0x161a   :  { %v3500_v35 = vmul.f32 %v6324_v4, %v7964_v12 }
0x167d   :  { %v3503_v53 = vpop.permute.xlu0 %3502 }
0x167e   :  { %v3505_v9 = vmul.f32 %v6324_v4, %v3503_v53 }
0x1680   :  { %3507 = vrot.lane.b32.xlu1 %v3505_v9, %s6519_s14 }
0x16f2   :  { %v3508_v36 = vpop.permute.xlu1 %3507 }
0x16f3   :  { %v8107_v27 = vadd.f32 %v3508_v36, %v3500_v35 }
0x16f5   :  { %6325 = vtanh.f32 %v8107_v27  ;;  %v3518_v22 = vpack.c.bf16 %v8107_v27, %v8107_v27 }
0x16f7   :  { %3520 = vrot.lane.b32.xlu1 %v3518_v22, %s6520_s15 }
0x16ff   :  { %v6326_v6 = vpop.eup %6325 }
0x1700   :  { %3513 = vrot.lane.b32.xlu0 %v6326_v6, %s6519_s14 }
0x1769   :  { %v3521_v56 = vpop.permute.xlu1 %3520 }
0x176a   :  { %6050 = vmatmul.mubr.msk.bf16.vlgmr.msra.gmra.mrb[36].mxu0 %vm1244_vm10, %v3521_v56 }
0x176b   :  { %6060 = vmatpush3.bf16.msra.mxu0 %v7975_v61  ;;  %6061 = vmatprep.mubr.msk.bf16.mxu0 %vm6515_vm1, %v8811_v58 }
0x176c   :  { %6071 = vmatprep.subr.bf16.mxu0 %v8811_v58 }
0x1772   :  { %v3514_v12 = vpop.permute.xlu0 %3513 }
0x1773   :  { %v8119_v7 = vmul.f32 %v6324_v4, %v3514_v12 }
0x1775   :  { %v3517_v59 = vpack.c.bf16 %v8119_v7, %v8119_v7 }
0x1777   :  { %3566 = vrot.lane.b32.xlu0 %v3517_v59, %s6521_s16 }
0x17e9   :  { %v3567_v2 = vpop.permute.xlu0 %3566 }
0x17ea   :  { %6056 = vmatmul.mubr.msk.bf16.vlgmr.msra.gmra.mrb[36].mxu1 %vm1244_vm10, %v3567_v2  ;;  %6062 = vmatmul.mubr.msk.bf16.vlgmr.msra.gmra.mrb[40].mxu0 %vm1244_vm10, %v3567_v2 }
0x17eb   :  { %6066 = vmatpush3.bf16.msra.mxu1 %v7641_v10  ;;  %6067 = vmatprep.mubr.msk.bf16.mxu1 %vm6515_vm1, %v8811_v58 }
0x17ec   :  { %6072 = vmatpush3.bf16.msra.mxu0 %v7994_v31  ;;  %6073 = vmatprep.mubr.msk.bf16.mxu0 %vm6515_vm1, %v8811_v58  ;;  %v8139_v31 = vld [vmem:[%s8700_s5] ss:$0 sm:$0xff] }
0x17ed   :  { %6077 = vmatprep.subr.bf16.mxu1 %v8811_v58  ;;  %6083 = vmatprep.subr.bf16.mxu0 %v8811_v58 }
0x183d   :  { %v3559_v61 = vpop.f32.mrb[36].mxu0 }
0x183e   :  { %v6051_v0 = vpop.f32.mrb[37].mxu0 }
0x183f   :  { %v3562_v47 = vpop.f32.mrb[38].mxu0 }
0x1840   :  { %v6052_v11 = vpop.f32.mrb[39].mxu0 }
0x18bd   :  { %v3605_v48 = vpop.f32.mrb[36].mxu1  ;;  %v8134_v16 = vpop.f32.mrb[40].mxu0 }
0x18be   :  { %v3606_v29 = vadd.f32 %v3605_v48, %v3559_v61  ;;  %v6057_v45 = vpop.f32.mrb[37].mxu1  ;;  %v6063_v46 = vpop.f32.mrb[41].mxu0 }
0x18bf   :  { %v3608_v14 = vpop.f32.mrb[38].mxu1  ;;  %v3649_v25 = vpop.f32.mrb[42].mxu0  ;;  %v8167_v45 = vld [vmem:[%s8702_s8] ss:$0 sm:$0xff] }
0x18c0   :  { %v3611_v33 = vadd.f32 %v8139_v31, %v3606_v29  ;;  %v6058_v8 = vpop.f32.mrb[39].mxu1  ;;  %v6064_v54 = vpop.f32.mrb[43].mxu0 }
0x18c2   :  { %v3653_v43 = vcombine.high %v3611_v33, %v3611_v33  ;;  %v3660_v41 = vrot.slane %v3611_v33, %v7478_v32 }
0x18c4   :  { %v3667_v20 = vrot.slane %v3653_v43, %v7478_v32  ;;  %v3668_v1 = vcombine.high %v3660_v41, %v3660_v41  ;;  %v3676_v34 = vrot.slane %v3660_v41, %v7478_v32 }
0x18c6   :  { %v3669_v60 = vcombine.high %v3667_v20, %v3667_v20  ;;  %v3683_v17 = vrot.slane %v3667_v20, %v7478_v32  ;;  %v3690_v62 = vrot.slane %v3668_v1, %v7478_v32  ;;  %v3698_v37 = vcombine.high %v3676_v34, %v3676_v34 }
0x18c7   :  { %v3705_v40 = vrot.slane %v3676_v34, %v7483_v21 }
0x18c8   :  { %v3697_v51 = vrot.slane %v3669_v60, %v7478_v32  ;;  %v3700_v38 = vcombine.high %v3690_v62, %v3690_v62  ;;  %v3709_v26 = vrot.slane %v3690_v62, %v7483_v21  ;;  %v3699_v4 = vcombine.high %v3683_v17, %v3683_v17 }
0x18c9   :  { %v3713_v53 = vrot.slane %v3698_v37, %v7483_v21  ;;  %v3721_v9 = vrot.slane %v3683_v17, %v7483_v21  ;;  %v3742_v35 = vadd.f32 %v3705_v40, %v7497_v13 }
0x18ca   :  { %v3701_v36 = vcombine.high %v3697_v51, %v3697_v51  ;;  %v3717_v22 = vrot.slane %v3700_v38, %v7483_v21  ;;  %v3725_v6 = vrot.slane %v3697_v51, %v7483_v21  ;;  %v3743_v56 = vadd.f32 %v3709_v26, %v7494_v55 }
0x18cb   :  { %v3744_v12 = vadd.f32 %v3713_v53, %v7516_v42  ;;  %v3746_v59 = vadd.f32 %v3721_v9, %v7533_v39  ;;  %6327 = vtanh.f32 %v3742_v35  ;;  %v3729_v0 = vrot.slane %v3699_v4, %v7483_v21 }
0x18cc   :  { %v3733_v2 = vrot.slane %v3701_v36, %v7483_v21  ;;  %v3745_v61 = vadd.f32 %v3717_v22, %v7513_v49  ;;  %v3747_v47 = vadd.f32 %v3725_v6, %v7529_v18  ;;  %6329 = vtanh.f32 %v3743_v56 }
0x18cd   :  { %6331 = vtanh.f32 %v3744_v12  ;;  %v3748_v48 = vadd.f32 %v3729_v0, %v7546_v23 }
0x18ce   :  { %6333 = vtanh.f32 %v3746_v59  ;;  %v3749_v11 = vadd.f32 %v3733_v2, %v7541_v24 }
0x18cf   :  { %6335 = vtanh.f32 %v3745_v61 }
0x18d0   :  { %6337 = vtanh.f32 %v3747_v47 }
0x18d1   :  { %6339 = vtanh.f32 %v3749_v11 }
0x18d2   :  { %6341 = vtanh.f32 %v3748_v48 }
0x18d5   :  { %v6328_v29 = vpop.eup %6327 }
0x18d6   :  { %v3758_v46 = vmul.f32 %v8167_v45, %v6328_v29  ;;  %v6330_v14 = vpop.eup %6329 }
0x18d7   :  { %v6332_v25 = vpop.eup %6331  ;;  %v3759_v8 = vmul.f32 %v8167_v45, %v6330_v14 }
0x18d8   :  { %v3766_v33 = vsel %vm196_vm0, %v3758_v46, 0.0  ;;  %v6334_v54 = vpop.eup %6333  ;;  %v3760_v20 = vmul.f32 %v8167_v45, %v6332_v25 }
0x18d9   :  { %3767 = vadd.xlane.f32.xlu1 %v3766_v33  ;;  %v6336_v43 = vpop.eup %6335  ;;  %v3769_v41 = vsel %vm196_vm0, %v3759_v8, 0.0  ;;  %v3762_v40 = vmul.f32 %v8167_v45, %v6334_v54 }
0x18da   :  { %v6338_v1 = vpop.eup %6337  ;;  %3770 = vadd.xlane.f32.xlu0 %v3769_v41  ;;  %v3761_v34 = vmul.f32 %v8167_v45, %v6336_v43  ;;  %v3772_v37 = vsel %vm196_vm0, %v3760_v20, 0.0 }
0x18db   :  { %v3763_v17 = vmul.f32 %v8167_v45, %v6338_v1  ;;  %v6340_v62 = vpop.eup %6339  ;;  %v3778_v4 = vsel %vm196_vm0, %v3762_v40, 0.0 }
0x18dc   :  { %v3775_v60 = vsel %vm196_vm0, %v3761_v34, 0.0  ;;  %v6342_v51 = vpop.eup %6341  ;;  %v3765_v26 = vmul.f32 %v8167_v45, %v6340_v62 }
0x18dd   :  { %3776 = vadd.xlane.f32.xlu1 %v3775_v60  ;;  %v3781_v38 = vsel %vm196_vm0, %v3763_v17, 0.0  ;;  %v3764_v53 = vmul.f32 %v8167_v45, %v6342_v51 }
0x18de   :  { %3773 = vadd.xlane.f32.xlu0 %v3772_v37  ;;  %v3787_v9 = vsel %vm196_vm0, %v3765_v26, 0.0 }
0x18df   :  { %v3784_v35 = vsel %vm196_vm0, %v3764_v53, 0.0 }
0x18e1   :  { %3782 = vadd.xlane.f32.xlu1 %v3781_v38 }
0x18e2   :  { %3779 = vadd.xlane.f32.xlu0 %v3778_v4 }
0x18e5   :  { %3788 = vadd.xlane.f32.xlu1 %v3787_v9 }
0x18e6   :  { %3785 = vadd.xlane.f32.xlu0 %v3784_v35 }
0x1966   :  { %v3768_v36 = vpop.xlane.xlu1 %3767 }
0x1967   :  { %v3790_v22 = vadd.f32 %v3768_v36, %v7558_v57  ;;  %v3771_v6 = vpop.xlane.xlu0 %3770 }
0x1968   :  { %v3791_v56 = vadd.f32 %v3771_v6, %v7558_v57 }
0x1969   :  { %v3798_v12 = vmul.f32 1.442695, %v3790_v22 }
0x196a   :  { %v3800_v59 = vmul.f32 1.442695, %v3791_v56  ;;  %v3777_v2 = vpop.xlane.xlu1 %3776 }
0x196b   :  { %v3793_v61 = vadd.f32 %v3777_v2, %v7558_v57  ;;  %v3774_v0 = vpop.xlane.xlu0 %3773 }
0x196c   :  { %6343 = vpow2.f32 %v3800_v59  ;;  %v3792_v47 = vadd.f32 %v3774_v0, %v7558_v57 }
0x196d   :  { %6345 = vpow2.f32 %v3798_v12  ;;  %v3804_v11 = vmul.f32 1.442695, %v3793_v61 }
0x196e   :  { %v3802_v48 = vmul.f32 1.442695, %v3792_v47  ;;  %v3783_v29 = vpop.xlane.xlu1 %3782 }
0x196f   :  { %v3795_v46 = vadd.f32 %v3783_v29, %v7558_v57  ;;  %v3780_v14 = vpop.xlane.xlu0 %3779 }
0x1970   :  { %6347 = vpow2.f32 %v3802_v48  ;;  %v3794_v25 = vadd.f32 %v3780_v14, %v7558_v57 }
0x1971   :  { %6349 = vpow2.f32 %v3804_v11  ;;  %v3808_v33 = vmul.f32 1.442695, %v3795_v46 }
0x1972   :  { %v3806_v8 = vmul.f32 1.442695, %v3794_v25  ;;  %v3789_v54 = vpop.xlane.xlu1 %3788 }
0x1973   :  { %v3797_v43 = vadd.f32 %v3789_v54, %v7558_v57  ;;  %v3786_v41 = vpop.xlane.xlu0 %3785 }
0x1974   :  { %6351 = vpow2.f32 %v3806_v8  ;;  %v3796_v20 = vadd.f32 %v3786_v41, %v7558_v57 }
0x1975   :  { %6353 = vpow2.f32 %v3808_v33  ;;  %v3812_v1 = vmul.f32 1.442695, %v3797_v43 }
0x1976   :  { %v6344_v34 = vpop.eup %6343  ;;  %v3810_v60 = vmul.f32 1.442695, %v3796_v20 }
0x1977   :  { %v6346_v17 = vpop.eup %6345  ;;  %6355 = vpow2.f32 %v3812_v1  ;;  %v3829_v62 = vrot.slane %v6344_v34, %v7050_v5 }
0x1978   :  { %6357 = vpow2.f32 %v3810_v60  ;;  %v3825_v40 = vrot.slane %v6346_v17, %v7050_v5 }
0x197a   :  { %v6348_v37 = vpop.eup %6347  ;;  %v3854_v26 = vsel %vm776_vm2, %v3829_v62, %v3825_v40 }
0x197b   :  { %v6350_v51 = vpop.eup %6349  ;;  %v3833_v38 = vrot.slane %v6348_v37, %v7050_v5 }
0x197c   :  { %v3837_v9 = vrot.slane %v6350_v51, %v7050_v5 }
0x197d   :  { %v3855_v4 = vsel %vm778_vm3, %v3833_v38, %v3854_v26  ;;  %v8830_v26 = vld [vmem:[#allocation12_spill] sm:$0xff] }
0x197e   :  { %v6352_v53 = vpop.eup %6351  ;;  %v3856_v22 = vsel %vm780_vm4, %v3837_v9, %v3855_v4  ;;  %v8831_v9 = vld [vmem:[#allocation6_spill] sm:$0xff] }
0x197f   :  { %v6354_v35 = vpop.eup %6353  ;;  %v3841_v36 = vrot.slane %v6352_v53, %v7050_v5 }
0x1980   :  { %v3845_v59 = vrot.slane %v6354_v35, %v7050_v5 }
0x1981   :  { %v6356_v6 = vpop.eup %6355  ;;  %v3857_v56 = vsel %vm782_vm5, %v3841_v36, %v3856_v22  ;;  %v8832_v22 = vld [vmem:[#allocation30_spill] sm:$0xff] }
0x1982   :  { %v6358_v12 = vpop.eup %6357  ;;  %v3853_v61 = vrot.slane %v6356_v6, %v7050_v5  ;;  %v3858_v0 = vsel %vm784_vm6, %v3845_v59, %v3857_v56  ;;  %v8833_v59 = vld [vmem:[#allocation18_spill] sm:$0xff] }
0x1983   :  { %v3849_v2 = vrot.slane %v6358_v12, %v7050_v5 }
0x1985   :  { %v3859_v47 = vsel %vm786_vm7, %v3849_v2, %v3858_v0 }
0x1986   :  { %v3860_v11 = vsel %vm788_vm8, %v3853_v61, %v3859_v47  ;;  %v8834_v47 = vld [vmem:[#allocation42_spill] sm:$0xff] }
0x1987   :  { %v3862_v48 = vsel %vm196_vm0, %v3860_v11, 0.0 }
0x1988   :  { %3863 = vadd.xlane.f32.xlu0 %v3862_v48 }
0x1a15   :  { %v3864_v29 = vpop.xlane.xlu0 %3863 }
0x1a16   :  { %6359 = vrcp.f32 %v3864_v29 }
0x1a20   :  { %v6360_v46 = vpop.eup %6359 }
0x1a21   :  { %v3874_v14 = vrot.slane %v6360_v46, %v7585_v19  ;;  %v3870_v25 = vrot.slane %v6360_v46, %v7483_v21  ;;  %v3886_v33 = vrot.slane %v6360_v46, %v7594_v50  ;;  %v3878_v8 = vrot.slane %v6360_v46, %v7588_v30 }
0x1a22   :  { %v3894_v54 = vrot.slane %v6360_v46, %v7609_v63  ;;  %v3882_v43 = vrot.slane %v6360_v46, %v7591_v44  ;;  %v3890_v38 = vrot.slane %v6360_v46, %v7602_v15 }
0x1a23   :  { %v3908_v41 = vmul.f32 %v6344_v34, %v3874_v14  ;;  %v3907_v20 = vmul.f32 %v6346_v17, %v3870_v25  ;;  %v3911_v1 = vmul.f32 %v6352_v53, %v3886_v33  ;;  %v3909_v60 = vmul.f32 %v6348_v37, %v3878_v8  ;;  %v8835_v34 = vld [vmem:[#allocation24_spill] sm:$0xff] }
0x1a24   :  { %v3913_v62 = vmul.f32 %v6358_v12, %v3894_v54  ;;  %v3910_v40 = vmul.f32 %v6350_v51, %v3882_v43  ;;  %v3912_v53 = vmul.f32 %v6354_v35, %v3890_v38  ;;  %v3898_v37 = vrot.slane %v6360_v46, %v7614_v3  ;;  %v8836_v14 = vld [vmem:[#allocation36_spill] sm:$0xff] }
0x1a25   :  { %v3916_v4 = vmul.f32 %v3908_v41, %v8830_v26  ;;  %v3915_v36 = vmul.f32 %v3907_v20, %v8831_v9  ;;  %v3919_v56 = vmul.f32 %v3911_v1, %v8832_v22  ;;  %v3917_v2 = vmul.f32 %v3909_v60, %v8833_v59  ;;  %v8837_v60 = vld [vmem:[#allocation47_spill] sm:$0xff] }
0x1a26   :  { %v3921_v11 = vmul.f32 %v3913_v62, %v8834_v47  ;;  %v3918_v17 = vmul.f32 %v3910_v40, %v8835_v34  ;;  %v3920_v25 = vmul.f32 %v3912_v53, %v8836_v14  ;;  %v3914_v33 = vmul.f32 %v6356_v6, %v3898_v37 }
0x1a27   :  { %v3924_v61 = vpack.c.bf16 %v3916_v4, %v3916_v4  ;;  %v3923_v0 = vpack.c.bf16 %v3915_v36, %v3915_v36  ;;  %v3927_v48 = vpack.c.bf16 %v3919_v56, %v3919_v56  ;;  %v3925_v29 = vpack.c.bf16 %v3917_v2, %v3917_v2 }
0x1a28   :  { %v3929_v43 = vpack.c.bf16 %v3921_v11, %v3921_v11  ;;  %v3926_v41 = vpack.c.bf16 %v3918_v17, %v3918_v17  ;;  %v3928_v35 = vpack.c.bf16 %v3920_v25, %v3920_v25  ;;  %v3922_v46 = vmul.f32 %v3914_v33, %v8837_v60 }
0x1a29   :  { %v3940_v51 = vunpack.c.l.b16 %v3924_v61  ;;  %v3939_v12 = vunpack.c.l.b16 %v3923_v0  ;;  %v3943_v8 = vunpack.c.l.b16 %v3927_v48  ;;  %v3941_v54 = vunpack.c.l.b16 %v3925_v29 }
0x1a2a   :  { %v3945_v20 = vunpack.c.l.b16 %v3929_v43  ;;  %v3942_v1 = vunpack.c.l.b16 %v3926_v41  ;;  %v3944_v62 = vunpack.c.l.b16 %v3928_v35  ;;  %v3930_v40 = vpack.c.bf16 %v3922_v46, %v3922_v46 }
0x1a2b   :  { %3951 = vperm.xlu0 %6155, %v3940_v51   ;;  %3948 = vperm.xlu1 %6154, %v3939_v12  }
0x1a2c   :  { %v3946_v38 = vunpack.c.l.b16 %v3930_v40 }
0x1a2f   :  { %3960 = vperm.xlu0 %6155, %v3943_v8   ;;  %3954 = vperm.xlu1 %6154, %v3941_v54   ;;  %v8244_v8 = vld [vmem:[%s8697_s3] sm:$0xff]  }
0x1a33   :  { %3966 = vperm.xlu0 %6155, %v3945_v20   ;;  %3957 = vperm.xlu1 %6154, %v3942_v1   ;;  %v8254_v1 = vld [vmem:[%s8706_s12] ss:$0 sm:$0xff] }
0x1a37   :  { %3963 = vperm.xlu1 %6154, %v3944_v62  }
0x1a3b   :  { %3969 = vperm.xlu1 %6154, %v3946_v38  }
0x1aaa   :  { %v3949_v26 = vpop.permute.xlu1 %3948  ;;  %v3952_v6 = vpop.permute.xlu0 %3951 }
0x1aab   :  { %v3978_v9 = vrot.slane %v3952_v6, %v7050_v5  ;;  %v3974_v36 = vrot.slane %v3949_v26, %v7050_v5 }
0x1aad   :  { %v4003_v2 = vsel %vm776_vm2, %v3978_v9, %v3974_v36 }
0x1aae   :  { %v3955_v4 = vpop.permute.xlu1 %3954  ;;  %v3961_v56 = vpop.permute.xlu0 %3960 }
0x1aaf   :  { %v3982_v22 = vrot.slane %v3955_v4, %v7050_v5  ;;  %v3990_v11 = vrot.slane %v3961_v56, %v7050_v5 }
0x1ab1   :  { %v4004_v0 = vsel %vm778_vm3, %v3982_v22, %v4003_v2 }
0x1ab2   :  { %v3958_v59 = vpop.permute.xlu1 %3957  ;;  %v3967_v17 = vpop.permute.xlu0 %3966 }
0x1ab3   :  { %v3986_v61 = vrot.slane %v3958_v59, %v7050_v5  ;;  %v3998_v12 = vrot.slane %v3967_v17, %v7050_v5 }
0x1ab5   :  { %v4005_v47 = vsel %vm780_vm4, %v3986_v61, %v4004_v0 }
0x1ab6   :  { %v3964_v34 = vpop.permute.xlu1 %3963  ;;  %v4006_v37 = vsel %vm782_vm5, %v3990_v11, %v4005_v47  ;;  %v8290_v11 = vld [vmem:[%s8696_s4] sm:$0xff]  }
0x1ab7   :  { %v3994_v53 = vrot.slane %v3964_v34, %v7050_v5 }
0x1ab9   :  { %v4007_v51 = vsel %vm784_vm6, %v3994_v53, %v4006_v37 }
0x1aba   :  { %v3970_v48 = vpop.permute.xlu1 %3969  ;;  %v4008_v14 = vsel %vm786_vm7, %v3998_v12, %v4007_v51 }
0x1abb   :  { %v4002_v29 = vrot.slane %v3970_v48, %v7050_v5 }
0x1abd   :  { %v4009_v25 = vsel %vm788_vm8, %v4002_v29, %v4008_v14 }
0x1abe   :  { %v4010_v33 = vpack.c.b16 %v4009_v25, %v4009_v25 }
0x1ac0   :  { %6068 = vmatmul.mubr.msk.bf16.vlgmr.msra.gmra.mrb[40].mxu1 %vm196_vm0, %v4010_v33 }
0x1ac1   :  { %6078 = vmatpush3.bf16.msra.mxu1 %v8244_v8  ;;  %6079 = vmatprep.mubr.msk.bf16.mxu1 %vm6515_vm1, %v8811_v58 }
0x1ac2   :  { %6089 = vmatprep.subr.bf16.mxu1 %v8811_v58 }
0x1b93   :  { %v4048_v54 = vpop.f32.mrb[40].mxu1 }
0x1b94   :  { %v4049_v43 = vadd.f32 %v4048_v54, %v8134_v16  ;;  %v6069_v41 = vpop.f32.mrb[41].mxu1 }
0x1b95   :  { %v4051_v20 = vpop.f32.mrb[42].mxu1 }
0x1b96   :  { %v4054_v35 = vadd.f32 %v8254_v1, %v4049_v43  ;;  %v6070_v60 = vpop.f32.mrb[43].mxu1 }
0x1b98   :  { %6361 = vtanh.f32 %v4054_v35  ;;  %v5848_v62 = vmul.f32 -1.442695, %v4054_v35 }
0x1b9a   :  { %6363 = vpow2.f32 %v5848_v62 }
0x1ba2   :  { %v6362_v46 = vpop.eup %6361 }
0x1ba3   :  { %4064 = vrot.lane.b32.xlu0 %v6362_v46, %s6518_s30 }
0x1ba4   :  { %v6364_v40 = vpop.eup %6363 }
0x1ba5   :  { %v4058_v38 = vadd.f32 1.0, %v6364_v40 }
0x1ba7   :  { %6365 = vrcp.f32 %v4058_v38 }
0x1bb1   :  { %v6366_v16 = vpop.eup %6365 }
0x1bb2   :  { %v4062_v4 = vmul.f32 %v6366_v16, %v8107_v27  ;;  %v8271_v27 = vld [vmem:[%s8704_s11] sm:$0xff]  }
0x1c15   :  { %v4065_v26 = vpop.permute.xlu0 %4064 }
0x1c16   :  { %v4067_v6 = vmul.f32 %v6366_v16, %v4065_v26 }
0x1c18   :  { %4069 = vrot.lane.b32.xlu1 %v4067_v6, %s6519_s14 }
0x1c8a   :  { %v4070_v9 = vpop.permute.xlu1 %4069 }
0x1c8b   :  { %v8260_v36 = vadd.f32 %v4070_v9, %v4062_v4 }
0x1c8d   :  { %6367 = vtanh.f32 %v8260_v36  ;;  %v4080_v22 = vpack.c.bf16 %v8260_v36, %v8260_v36 }
0x1c8f   :  { %4082 = vrot.lane.b32.xlu1 %v4080_v22, %s6520_s15 }
0x1c97   :  { %v6368_v56 = vpop.eup %6367 }
0x1c98   :  { %4075 = vrot.lane.b32.xlu0 %v6368_v56, %s6519_s14 }
0x1d01   :  { %v4083_v59 = vpop.permute.xlu1 %4082 }
0x1d02   :  { %6074 = vmatmul.mubr.msk.bf16.vlgmr.msra.gmra.mrb[44].mxu0 %vm1244_vm10, %v4083_v59 }
0x1d03   :  { %6084 = vmatpush3.bf16.msra.mxu0 %v8271_v27  ;;  %6085 = vmatprep.mubr.msk.bf16.mxu0 %vm6515_vm1, %v8811_v58 }
0x1d04   :  { %6095 = vmatprep.subr.bf16.mxu0 %v8811_v58 }
0x1d0a   :  { %v4076_v2 = vpop.permute.xlu0 %4075 }
0x1d0b   :  { %v8277_v61 = vmul.f32 %v6366_v16, %v4076_v2 }
0x1d0d   :  { %v4079_v0 = vpack.c.bf16 %v8277_v61, %v8277_v61 }
0x1d0f   :  { %4128 = vrot.lane.b32.xlu0 %v4079_v0, %s6521_s16 }
0x1d81   :  { %v4129_v47 = vpop.permute.xlu0 %4128 }
0x1d82   :  { %6080 = vmatmul.mubr.msk.bf16.vlgmr.msra.gmra.mrb[44].mxu1 %vm1244_vm10, %v4129_v47  ;;  %6086 = vmatmul.mubr.msk.bf16.vlgmr.msra.gmra.mrb[48].mxu0 %vm1244_vm10, %v4129_v47 }
0x1d83   :  { %6090 = vmatpush3.bf16.msra.mxu1 %v7641_v10  ;;  %6091 = vmatprep.mubr.msk.bf16.mxu1 %vm6515_vm1, %v8811_v58 }
0x1d84   :  { %6096 = vmatpush3.bf16.msra.mxu0 %v8290_v11  ;;  %6097 = vmatprep.mubr.msk.bf16.mxu0 %vm6515_vm1, %v8811_v58 }
0x1d85   :  { %6101 = vmatprep.subr.bf16.mxu1 %v8811_v58  ;;  %6107 = vmatprep.subr.bf16.mxu0 %v8811_v58 }
0x1dd5   :  { %v4121_v34 = vpop.f32.mrb[44].mxu0 }
0x1dd6   :  { %v6075_v17 = vpop.f32.mrb[45].mxu0 }
0x1dd7   :  { %v4124_v53 = vpop.f32.mrb[46].mxu0 }
0x1dd8   :  { %v6076_v37 = vpop.f32.mrb[47].mxu0 }
0x1e55   :  { %v4167_v51 = vpop.f32.mrb[44].mxu1  ;;  %v8297_v12 = vpop.f32.mrb[48].mxu0 }
0x1e56   :  { %v4168_v48 = vadd.f32 %v4167_v51, %v4121_v34  ;;  %v6081_v29 = vpop.f32.mrb[45].mxu1  ;;  %v6087_v14 = vpop.f32.mrb[49].mxu0 }
0x1e57   :  { %v4170_v25 = vpop.f32.mrb[46].mxu1  ;;  %v4211_v33 = vpop.f32.mrb[50].mxu0 }
0x1e58   :  { %v4173_v54 = vadd.f32 %v8139_v31, %v4168_v48  ;;  %v6082_v43 = vpop.f32.mrb[47].mxu1  ;;  %v6088_v41 = vpop.f32.mrb[51].mxu0 }
0x1e5a   :  { %v4215_v20 = vcombine.high %v4173_v54, %v4173_v54  ;;  %v4222_v35 = vrot.slane %v4173_v54, %v7478_v32 }
0x1e5c   :  { %v4229_v60 = vrot.slane %v4215_v20, %v7478_v32  ;;  %v4230_v46 = vcombine.high %v4222_v35, %v4222_v35  ;;  %v4238_v62 = vrot.slane %v4222_v35, %v7478_v32 }
0x1e5e   :  { %v4231_v40 = vcombine.high %v4229_v60, %v4229_v60  ;;  %v4245_v38 = vrot.slane %v4229_v60, %v7478_v32  ;;  %v4252_v16 = vrot.slane %v4230_v46, %v7478_v32  ;;  %v4260_v26 = vcombine.high %v4238_v62, %v4238_v62 }
0x1e5f   :  { %v4267_v6 = vrot.slane %v4238_v62, %v7483_v21 }
0x1e60   :  { %v4259_v31 = vrot.slane %v4231_v40, %v7478_v32  ;;  %v4262_v4 = vcombine.high %v4252_v16, %v4252_v16  ;;  %v4271_v9 = vrot.slane %v4252_v16, %v7483_v21  ;;  %v4261_v22 = vcombine.high %v4245_v38, %v4245_v38 }
0x1e61   :  { %v4275_v56 = vrot.slane %v4260_v26, %v7483_v21  ;;  %v4283_v59 = vrot.slane %v4245_v38, %v7483_v21  ;;  %v4304_v2 = vadd.f32 %v4267_v6, %v7497_v13 }
0x1e62   :  { %v4263_v0 = vcombine.high %v4259_v31, %v4259_v31  ;;  %v4279_v47 = vrot.slane %v4262_v4, %v7483_v21  ;;  %v4287_v34 = vrot.slane %v4259_v31, %v7483_v21  ;;  %v4305_v17 = vadd.f32 %v4271_v9, %v7494_v55 }
0x1e63   :  { %v4306_v53 = vadd.f32 %v4275_v56, %v7516_v42  ;;  %v4308_v37 = vadd.f32 %v4283_v59, %v7533_v39  ;;  %6369 = vtanh.f32 %v4304_v2  ;;  %v4291_v29 = vrot.slane %v4261_v22, %v7483_v21 }
0x1e64   :  { %v4295_v51 = vrot.slane %v4263_v0, %v7483_v21  ;;  %v4307_v48 = vadd.f32 %v4279_v47, %v7513_v49  ;;  %v4309_v14 = vadd.f32 %v4287_v34, %v7529_v18  ;;  %6371 = vtanh.f32 %v4305_v17 }
0x1e65   :  { %6373 = vtanh.f32 %v4306_v53  ;;  %v4310_v33 = vadd.f32 %v4291_v29, %v7546_v23 }
0x1e66   :  { %6375 = vtanh.f32 %v4308_v37  ;;  %v4311_v25 = vadd.f32 %v4295_v51, %v7541_v24 }
0x1e67   :  { %6377 = vtanh.f32 %v4307_v48 }
0x1e68   :  { %6379 = vtanh.f32 %v4309_v14 }
0x1e69   :  { %6381 = vtanh.f32 %v4311_v25 }
0x1e6a   :  { %6383 = vtanh.f32 %v4310_v33 }
0x1e6d   :  { %v6370_v54 = vpop.eup %6369 }
0x1e6e   :  { %v4320_v43 = vmul.f32 %v8167_v45, %v6370_v54  ;;  %v6372_v41 = vpop.eup %6371 }
0x1e6f   :  { %v6374_v20 = vpop.eup %6373  ;;  %v4321_v60 = vmul.f32 %v8167_v45, %v6372_v41 }
0x1e70   :  { %v4328_v35 = vsel %vm196_vm0, %v4320_v43, 0.0  ;;  %v6376_v46 = vpop.eup %6375  ;;  %v4322_v38 = vmul.f32 %v8167_v45, %v6374_v20 }
0x1e71   :  { %4329 = vadd.xlane.f32.xlu1 %v4328_v35  ;;  %v6378_v62 = vpop.eup %6377  ;;  %v4331_v40 = vsel %vm196_vm0, %v4321_v60, 0.0  ;;  %v4324_v22 = vmul.f32 %v8167_v45, %v6376_v46 }
0x1e72   :  { %v6380_v16 = vpop.eup %6379  ;;  %4332 = vadd.xlane.f32.xlu0 %v4331_v40  ;;  %v4323_v26 = vmul.f32 %v8167_v45, %v6378_v62  ;;  %v4334_v9 = vsel %vm196_vm0, %v4322_v38, 0.0 }
0x1e73   :  { %v4325_v31 = vmul.f32 %v8167_v45, %v6380_v16  ;;  %v6382_v4 = vpop.eup %6381  ;;  %v4340_v0 = vsel %vm196_vm0, %v4324_v22, 0.0 }
0x1e74   :  { %v4337_v6 = vsel %vm196_vm0, %v4323_v26, 0.0  ;;  %v6384_v56 = vpop.eup %6383  ;;  %v4327_v2 = vmul.f32 %v8167_v45, %v6382_v4 }
0x1e75   :  { %4338 = vadd.xlane.f32.xlu1 %v4337_v6  ;;  %v4343_v59 = vsel %vm196_vm0, %v4325_v31, 0.0  ;;  %v4326_v47 = vmul.f32 %v8167_v45, %v6384_v56 }
0x1e76   :  { %4335 = vadd.xlane.f32.xlu0 %v4334_v9  ;;  %v4349_v34 = vsel %vm196_vm0, %v4327_v2, 0.0 }
0x1e77   :  { %v4346_v17 = vsel %vm196_vm0, %v4326_v47, 0.0 }
0x1e79   :  { %4344 = vadd.xlane.f32.xlu1 %v4343_v59 }
0x1e7a   :  { %4341 = vadd.xlane.f32.xlu0 %v4340_v0 }
0x1e7d   :  { %4350 = vadd.xlane.f32.xlu1 %v4349_v34 }
0x1e7e   :  { %4347 = vadd.xlane.f32.xlu0 %v4346_v17 }
0x1efe   :  { %v4330_v53 = vpop.xlane.xlu1 %4329 }
0x1eff   :  { %v4352_v37 = vadd.f32 %v4330_v53, %v7558_v57  ;;  %v4333_v51 = vpop.xlane.xlu0 %4332 }
0x1f00   :  { %v4353_v48 = vadd.f32 %v4333_v51, %v7558_v57 }
0x1f01   :  { %v4360_v29 = vmul.f32 1.442695, %v4352_v37 }
0x1f02   :  { %v4362_v14 = vmul.f32 1.442695, %v4353_v48  ;;  %v4339_v25 = vpop.xlane.xlu1 %4338 }
0x1f03   :  { %v4355_v33 = vadd.f32 %v4339_v25, %v7558_v57  ;;  %v4336_v54 = vpop.xlane.xlu0 %4335 }
0x1f04   :  { %6385 = vpow2.f32 %v4362_v14  ;;  %v4354_v45 = vadd.f32 %v4336_v54, %v7558_v57 }
0x1f05   :  { %6387 = vpow2.f32 %v4360_v29  ;;  %v4366_v43 = vmul.f32 1.442695, %v4355_v33 }
0x1f06   :  { %v4364_v41 = vmul.f32 1.442695, %v4354_v45  ;;  %v4345_v20 = vpop.xlane.xlu1 %4344 }
0x1f07   :  { %v4357_v35 = vadd.f32 %v4345_v20, %v7558_v57  ;;  %v4342_v60 = vpop.xlane.xlu0 %4341 }
0x1f08   :  { %6389 = vpow2.f32 %v4364_v41  ;;  %v4356_v46 = vadd.f32 %v4342_v60, %v7558_v57 }
0x1f09   :  { %6391 = vpow2.f32 %v4366_v43  ;;  %v4370_v62 = vmul.f32 1.442695, %v4357_v35 }
0x1f0a   :  { %v4368_v40 = vmul.f32 1.442695, %v4356_v46  ;;  %v4351_v38 = vpop.xlane.xlu1 %4350 }
0x1f0b   :  { %v4359_v16 = vadd.f32 %v4351_v38, %v7558_v57  ;;  %v4348_v26 = vpop.xlane.xlu0 %4347 }
0x1f0c   :  { %6393 = vpow2.f32 %v4368_v40  ;;  %v4358_v6 = vadd.f32 %v4348_v26, %v7558_v57 }
0x1f0d   :  { %6395 = vpow2.f32 %v4370_v62  ;;  %v4374_v31 = vmul.f32 1.442695, %v4359_v16 }
0x1f0e   :  { %v6386_v4 = vpop.eup %6385  ;;  %v4372_v9 = vmul.f32 1.442695, %v4358_v6 }
0x1f0f   :  { %v6388_v22 = vpop.eup %6387  ;;  %6397 = vpow2.f32 %v4374_v31  ;;  %v4391_v56 = vrot.slane %v6386_v4, %v7050_v5 }
0x1f10   :  { %6399 = vpow2.f32 %v4372_v9  ;;  %v4387_v2 = vrot.slane %v6388_v22, %v7050_v5 }
0x1f12   :  { %v6390_v59 = vpop.eup %6389  ;;  %v4416_v34 = vsel %vm776_vm2, %v4391_v56, %v4387_v2 }
0x1f13   :  { %v6392_v0 = vpop.eup %6391  ;;  %v4395_v47 = vrot.slane %v6390_v59, %v7050_v5 }
0x1f14   :  { %v4399_v37 = vrot.slane %v6392_v0, %v7050_v5 }
0x1f15   :  { %v4417_v17 = vsel %vm778_vm3, %v4395_v47, %v4416_v34 }
0x1f16   :  { %v6394_v53 = vpop.eup %6393  ;;  %v4418_v29 = vsel %vm780_vm4, %v4399_v37, %v4417_v17 }
0x1f17   :  { %v6396_v51 = vpop.eup %6395  ;;  %v4403_v48 = vrot.slane %v6394_v53, %v7050_v5 }
0x1f18   :  { %v4407_v54 = vrot.slane %v6396_v51, %v7050_v5 }
0x1f19   :  { %v6398_v14 = vpop.eup %6397  ;;  %v4419_v25 = vsel %vm782_vm5, %v4403_v48, %v4418_v29  ;;  %v8838_v48 = vld [vmem:[#allocation13_spill] sm:$0xff] }
0x1f1a   :  { %v6400_v33 = vpop.eup %6399  ;;  %v4415_v43 = vrot.slane %v6398_v14, %v7050_v5  ;;  %v4420_v41 = vsel %vm784_vm6, %v4407_v54, %v4419_v25  ;;  %v8839_v25 = vld [vmem:[#allocation7_spill] sm:$0xff] }
0x1f1b   :  { %v4411_v45 = vrot.slane %v6400_v33, %v7050_v5 }
0x1f1d   :  { %v4421_v20 = vsel %vm786_vm7, %v4411_v45, %v4420_v41  ;;  %v8840_v45 = vld [vmem:[#allocation31_spill] sm:$0xff] }
0x1f1e   :  { %v4422_v35 = vsel %vm788_vm8, %v4415_v43, %v4421_v20  ;;  %v8841_v41 = vld [vmem:[#allocation19_spill] sm:$0xff] }
0x1f1f   :  { %v4424_v60 = vsel %vm196_vm0, %v4422_v35, 0.0 }
0x1f20   :  { %4425 = vadd.xlane.f32.xlu0 %v4424_v60 }
0x1fad   :  { %v4426_v46 = vpop.xlane.xlu0 %4425 }
0x1fae   :  { %6401 = vrcp.f32 %v4426_v46  ;;  %v8842_v46 = vld [vmem:[#allocation43_spill] sm:$0xff] }
0x1fb8   :  { %v6402_v62 = vpop.eup %6401 }
0x1fb9   :  { %v4436_v40 = vrot.slane %v6402_v62, %v7585_v19  ;;  %v4432_v38 = vrot.slane %v6402_v62, %v7483_v21  ;;  %v4448_v16 = vrot.slane %v6402_v62, %v7594_v50  ;;  %v4440_v26 = vrot.slane %v6402_v62, %v7588_v30 }
0x1fba   :  { %v4456_v6 = vrot.slane %v6402_v62, %v7609_v63  ;;  %v4444_v31 = vrot.slane %v6402_v62, %v7591_v44  ;;  %v4452_v37 = vrot.slane %v6402_v62, %v7602_v15 }
0x1fbb   :  { %v4470_v9 = vmul.f32 %v6386_v4, %v4436_v40  ;;  %v4469_v56 = vmul.f32 %v6388_v22, %v4432_v38  ;;  %v4473_v2 = vmul.f32 %v6394_v53, %v4448_v16  ;;  %v4471_v47 = vmul.f32 %v6390_v59, %v4440_v26  ;;  %v8843_v4 = vld [vmem:[#allocation25_spill] sm:$0xff] }
0x1fbc   :  { %v4475_v34 = vmul.f32 %v6400_v33, %v4456_v6  ;;  %v4472_v17 = vmul.f32 %v6392_v0, %v4444_v31  ;;  %v4474_v53 = vmul.f32 %v6396_v51, %v4452_v37  ;;  %v4460_v59 = vrot.slane %v6402_v62, %v7614_v3  ;;  %v8844_v16 = vld [vmem:[#allocation37_spill] sm:$0xff] }
0x1fbd   :  { %v4478_v29 = vmul.f32 %v4470_v9, %v8838_v48  ;;  %v4477_v54 = vmul.f32 %v4469_v56, %v8839_v25  ;;  %v4481_v43 = vmul.f32 %v4473_v2, %v8840_v45  ;;  %v4479_v20 = vmul.f32 %v4471_v47, %v8841_v41 }
0x1fbe   :  { %v4483_v28 = vmul.f32 %v4475_v34, %v8842_v46  ;;  %v4480_v22 = vmul.f32 %v4472_v17, %v8843_v4  ;;  %v4482_v26 = vmul.f32 %v4474_v53, %v8844_v16  ;;  %v4476_v6 = vmul.f32 %v6398_v14, %v4460_v59  ;;  %v8845_v17 = vld [vmem:[#allocation49_spill] sm:$0xff] }
0x1fbf   :  { %v4486_v35 = vpack.c.bf16 %v4478_v29, %v4478_v29  ;;  %v4485_v60 = vpack.c.bf16 %v4477_v54, %v4477_v54  ;;  %v4489_v40 = vpack.c.bf16 %v4481_v43, %v4481_v43  ;;  %v4487_v38 = vpack.c.bf16 %v4479_v20, %v4479_v20 }
0x1fc0   :  { %v4491_v56 = vpack.c.bf16 %v4483_v28, %v4483_v28  ;;  %v4488_v2 = vpack.c.bf16 %v4480_v22, %v4480_v22  ;;  %v4490_v51 = vpack.c.bf16 %v4482_v26, %v4482_v26  ;;  %v4484_v62 = vmul.f32 %v4476_v6, %v8845_v17 }
0x1fc1   :  { %v4502_v0 = vunpack.c.l.b16 %v4486_v35  ;;  %v4501_v33 = vunpack.c.l.b16 %v4485_v60  ;;  %v4505_v31 = vunpack.c.l.b16 %v4489_v40  ;;  %v4503_v9 = vunpack.c.l.b16 %v4487_v38 }
0x1fc2   :  { %v4507_v47 = vunpack.c.l.b16 %v4491_v56  ;;  %v4504_v34 = vunpack.c.l.b16 %v4488_v2  ;;  %v4506_v37 = vunpack.c.l.b16 %v4490_v51  ;;  %v4492_v48 = vpack.c.bf16 %v4484_v62, %v4484_v62 }
0x1fc3   :  { %4513 = vperm.xlu0 %6155, %v4502_v0   ;;  %4510 = vperm.xlu1 %6154, %v4501_v33  }
0x1fc4   :  { %v4508_v29 = vunpack.c.l.b16 %v4492_v48 }
0x1fc7   :  { %4522 = vperm.xlu0 %6155, %v4505_v31   ;;  %4516 = vperm.xlu1 %6154, %v4503_v9  }
0x1fcb   :  { %4528 = vperm.xlu0 %6155, %v4507_v47   ;;  %4519 = vperm.xlu1 %6154, %v4504_v34  }
0x1fcf   :  { %4525 = vperm.xlu1 %6154, %v4506_v37  }
0x1fd3   :  { %4531 = vperm.xlu1 %6154, %v4508_v29  }
0x2042   :  { %v4511_v25 = vpop.permute.xlu1 %4510  ;;  %v4514_v14 = vpop.permute.xlu0 %4513 }
0x2043   :  { %v4540_v28 = vrot.slane %v4514_v14, %v7050_v5  ;;  %v4536_v45 = vrot.slane %v4511_v25, %v7050_v5 }
0x2045   :  { %v4565_v35 = vsel %vm776_vm2, %v4540_v28, %v4536_v45 }
0x2046   :  { %v4517_v54 = vpop.permute.xlu1 %4516  ;;  %v4523_v41 = vpop.permute.xlu0 %4522 }
0x2047   :  { %v4544_v43 = vrot.slane %v4517_v54, %v7050_v5  ;;  %v4552_v22 = vrot.slane %v4523_v41, %v7050_v5 }
0x2049   :  { %v4566_v46 = vsel %vm778_vm3, %v4544_v43, %v4565_v35 }
0x204a   :  { %v4520_v20 = vpop.permute.xlu1 %4519  ;;  %v4529_v59 = vpop.permute.xlu0 %4528 }
0x204b   :  { %v4548_v60 = vrot.slane %v4520_v20, %v7050_v5  ;;  %v4560_v38 = vrot.slane %v4529_v59, %v7050_v5 }
0x204d   :  { %v4567_v4 = vsel %vm780_vm4, %v4548_v60, %v4566_v46 }
0x204e   :  { %v4526_v53 = vpop.permute.xlu1 %4525  ;;  %v4568_v33 = vsel %vm782_vm5, %v4552_v22, %v4567_v4 }
0x204f   :  { %v4556_v0 = vrot.slane %v4526_v53, %v7050_v5 }
0x2051   :  { %v4569_v40 = vsel %vm784_vm6, %v4556_v0, %v4568_v33 }
0x2052   :  { %v4532_v16 = vpop.permute.xlu1 %4531  ;;  %v4570_v6 = vsel %vm786_vm7, %v4560_v38, %v4569_v40 }
0x2053   :  { %v4564_v26 = vrot.slane %v4532_v16, %v7050_v5 }
0x2055   :  { %v4571_v31 = vsel %vm788_vm8, %v4564_v26, %v4570_v6 }
0x2056   :  { %v4572_v9 = vpack.c.b16 %v4571_v31, %v4571_v31 }
0x2058   :  { %6092 = vmatmul.mubr.msk.bf16.vlgmr.msra.gmra.mrb[48].mxu1 %vm196_vm0, %v4572_v9 }
0x2059   :  { %6102 = vmatpush3.bf16.msra.mxu1 %v8244_v8  ;;  %6103 = vmatprep.mubr.msk.bf16.mxu1 %vm6515_vm1, %v8811_v58 }
0x205a   :  { %6113 = vmatprep.subr.bf16.mxu1 %v8811_v58 }
0x212b   :  { %v4610_v56 = vpop.f32.mrb[48].mxu1 }
0x212c   :  { %v4611_v2 = vadd.f32 %v4610_v56, %v8297_v12  ;;  %v6093_v47 = vpop.f32.mrb[49].mxu1 }
0x212d   :  { %v4613_v34 = vpop.f32.mrb[50].mxu1 }
0x212e   :  { %v4616_v51 = vadd.f32 %v8254_v1, %v4611_v2  ;;  %v6094_v17 = vpop.f32.mrb[51].mxu1 }
0x2130   :  { %6403 = vtanh.f32 %v4616_v51  ;;  %v5853_v37 = vmul.f32 -1.442695, %v4616_v51 }
0x2132   :  { %6405 = vpow2.f32 %v5853_v37 }
0x213a   :  { %v6404_v62 = vpop.eup %6403 }
0x213b   :  { %4626 = vrot.lane.b32.xlu0 %v6404_v62, %s6518_s30 }
0x213c   :  { %v6406_v8 = vpop.eup %6405 }
0x213d   :  { %v4620_v48 = vadd.f32 1.0, %v6406_v8 }
0x213f   :  { %6407 = vrcp.f32 %v4620_v48 }
0x2149   :  { %v6408_v29 = vpop.eup %6407 }
0x214a   :  { %v4624_v12 = vmul.f32 %v6408_v29, %v8260_v36 }
0x21ad   :  { %v4627_v25 = vpop.permute.xlu0 %4626 }
0x21ae   :  { %v4629_v14 = vmul.f32 %v6408_v29, %v4627_v25 }
0x21b0   :  { %4631 = vrot.lane.b32.xlu1 %v4629_v14, %s6519_s14 }
0x2222   :  { %v4632_v54 = vpop.permute.xlu1 %4631 }
0x2223   :  { %v8403_v28 = vadd.f32 %v4632_v54, %v4624_v12 }
0x2225   :  { %6409 = vtanh.f32 %v8403_v28  ;;  %v4642_v1 = vpack.c.bf16 %v8403_v28, %v8403_v28 }
0x2227   :  { %4644 = vrot.lane.b32.xlu1 %v4642_v1, %s6520_s15 }
0x222f   :  { %v6410_v45 = vpop.eup %6409 }
0x2230   :  { %4637 = vrot.lane.b32.xlu0 %v6410_v45, %s6519_s14 }
0x2299   :  { %v4645_v43 = vpop.permute.xlu1 %4644 }
0x229a   :  { %6098 = vmatmul.mubr.msk.bf16.vlgmr.msra.gmra.mrb[52].mxu0 %vm1244_vm10, %v4645_v43 }
0x229b   :  { %6108 = vmatpush3.bf16.msra.mxu0 %v8271_v27  ;;  %6109 = vmatprep.mubr.msk.bf16.mxu0 %vm6515_vm1, %v8811_v58 }
0x229c   :  { %6119 = vmatprep.subr.bf16.mxu0 %v8811_v58 }
0x22a2   :  { %v4638_v36 = vpop.permute.xlu0 %4637 }
0x22a3   :  { %v8415_v41 = vmul.f32 %v6408_v29, %v4638_v36 }
0x22a5   :  { %v4641_v20 = vpack.c.bf16 %v8415_v41, %v8415_v41 }
0x22a7   :  { %4690 = vrot.lane.b32.xlu0 %v4641_v20, %s6521_s16 }
0x2319   :  { %v4691_v35 = vpop.permute.xlu0 %4690 }
0x231a   :  { %6104 = vmatmul.mubr.msk.bf16.vlgmr.msra.gmra.mrb[52].mxu1 %vm1244_vm10, %v4691_v35  ;;  %6110 = vmatmul.mubr.msk.bf16.vlgmr.msra.gmra.mrb[56].mxu0 %vm1244_vm10, %v4691_v35 }
0x231b   :  { %6114 = vmatpush3.bf16.msra.mxu1 %v7641_v10  ;;  %6115 = vmatprep.mubr.msk.bf16.mxu1 %vm6515_vm1, %v8811_v58 }
0x231c   :  { %6120 = vmatpush3.bf16.msra.mxu0 %v8290_v11  ;;  %6121 = vmatprep.mubr.msk.bf16.mxu0 %vm6515_vm1, %v8811_v58  ;;  %v8435_v11 = vld [vmem:[%s8700_s5] ss:$0 sm:$0xff] }
0x231d   :  { %6125 = vmatprep.subr.bf16.mxu1 %v8811_v58  ;;  %6131 = vmatprep.subr.bf16.mxu0 %v8811_v58 }
0x236d   :  { %v4683_v27 = vpop.f32.mrb[52].mxu0 }
0x236e   :  { %v6099_v60 = vpop.f32.mrb[53].mxu0 }
0x236f   :  { %v4686_v46 = vpop.f32.mrb[54].mxu0 }
0x2370   :  { %v6100_v4 = vpop.f32.mrb[55].mxu0 }
0x23ed   :  { %v4729_v22 = vpop.f32.mrb[52].mxu1  ;;  %v8430_v53 = vpop.f32.mrb[56].mxu0 }
0x23ee   :  { %v4730_v59 = vadd.f32 %v4729_v22, %v4683_v27  ;;  %v6105_v0 = vpop.f32.mrb[53].mxu1  ;;  %v6111_v33 = vpop.f32.mrb[57].mxu0 }
0x23ef   :  { %v4732_v40 = vpop.f32.mrb[54].mxu1  ;;  %v4773_v38 = vpop.f32.mrb[58].mxu0  ;;  %v8463_v33 = vld [vmem:[%s8702_s8] ss:$0 sm:$0xff] }
0x23f0   :  { %v4735_v16 = vadd.f32 %v8435_v11, %v4730_v59  ;;  %v6106_v26 = vpop.f32.mrb[55].mxu1  ;;  %v6112_v6 = vpop.f32.mrb[59].mxu0 }
0x23f2   :  { %v4777_v31 = vcombine.high %v4735_v16, %v4735_v16  ;;  %v4784_v9 = vrot.slane %v4735_v16, %v7478_v32 }
0x23f4   :  { %v4791_v56 = vrot.slane %v4777_v31, %v7478_v32  ;;  %v4792_v2 = vcombine.high %v4784_v9, %v4784_v9  ;;  %v4800_v47 = vrot.slane %v4784_v9, %v7478_v32 }
0x23f6   :  { %v4793_v34 = vcombine.high %v4791_v56, %v4791_v56  ;;  %v4807_v51 = vrot.slane %v4791_v56, %v7478_v32  ;;  %v4814_v17 = vrot.slane %v4792_v2, %v7478_v32  ;;  %v4822_v62 = vcombine.high %v4800_v47, %v4800_v47 }
0x23f7   :  { %v4829_v37 = vrot.slane %v4800_v47, %v7483_v21 }
0x23f8   :  { %v4821_v8 = vrot.slane %v4793_v34, %v7478_v32  ;;  %v4824_v48 = vcombine.high %v4814_v17, %v4814_v17  ;;  %v4833_v29 = vrot.slane %v4814_v17, %v7483_v21  ;;  %v4823_v25 = vcombine.high %v4807_v51, %v4807_v51 }
0x23f9   :  { %v4837_v14 = vrot.slane %v4822_v62, %v7483_v21  ;;  %v4845_v12 = vrot.slane %v4807_v51, %v7483_v21  ;;  %v4866_v54 = vadd.f32 %v4829_v37, %v7497_v13 }
0x23fa   :  { %v4825_v1 = vcombine.high %v4821_v8, %v4821_v8  ;;  %v4841_v45 = vrot.slane %v4824_v48, %v7483_v21  ;;  %v4849_v43 = vrot.slane %v4821_v8, %v7483_v21  ;;  %v4867_v36 = vadd.f32 %v4833_v29, %v7494_v55 }
0x23fb   :  { %v4868_v20 = vadd.f32 %v4837_v14, %v7516_v42  ;;  %v4870_v35 = vadd.f32 %v4845_v12, %v7533_v39  ;;  %6411 = vtanh.f32 %v4866_v54  ;;  %v4853_v46 = vrot.slane %v4823_v25, %v7483_v21 }
0x23fc   :  { %v4857_v27 = vrot.slane %v4825_v1, %v7483_v21  ;;  %v4869_v60 = vadd.f32 %v4841_v45, %v7513_v49  ;;  %v4871_v4 = vadd.f32 %v4849_v43, %v7529_v18  ;;  %6413 = vtanh.f32 %v4867_v36 }
0x23fd   :  { %6415 = vtanh.f32 %v4868_v20  ;;  %v4872_v59 = vadd.f32 %v4853_v46, %v7546_v23 }
0x23fe   :  { %6417 = vtanh.f32 %v4870_v35  ;;  %v4873_v22 = vadd.f32 %v4857_v27, %v7541_v24 }
0x23ff   :  { %6419 = vtanh.f32 %v4869_v60 }
0x2400   :  { %6421 = vtanh.f32 %v4871_v4 }
0x2401   :  { %6423 = vtanh.f32 %v4873_v22 }
0x2402   :  { %6425 = vtanh.f32 %v4872_v59 }
0x2405   :  { %v6412_v0 = vpop.eup %6411 }
0x2406   :  { %v4882_v40 = vmul.f32 %v8463_v33, %v6412_v0  ;;  %v6414_v38 = vpop.eup %6413 }
0x2407   :  { %v6416_v16 = vpop.eup %6415  ;;  %v4883_v6 = vmul.f32 %v8463_v33, %v6414_v38 }
0x2408   :  { %v4890_v26 = vsel %vm196_vm0, %v4882_v40, 0.0  ;;  %v6418_v31 = vpop.eup %6417  ;;  %v4884_v2 = vmul.f32 %v8463_v33, %v6416_v16 }
0x2409   :  { %4891 = vadd.xlane.f32.xlu1 %v4890_v26  ;;  %v6420_v9 = vpop.eup %6419  ;;  %v4893_v56 = vsel %vm196_vm0, %v4883_v6, 0.0  ;;  %v4886_v8 = vmul.f32 %v8463_v33, %v6418_v31 }
0x240a   :  { %v6422_v47 = vpop.eup %6421  ;;  %4894 = vadd.xlane.f32.xlu0 %v4893_v56  ;;  %v4885_v34 = vmul.f32 %v8463_v33, %v6420_v9  ;;  %v4896_v37 = vsel %vm196_vm0, %v4884_v2, 0.0 }
0x240b   :  { %v4887_v17 = vmul.f32 %v8463_v33, %v6422_v47  ;;  %v6424_v62 = vpop.eup %6423  ;;  %v4902_v14 = vsel %vm196_vm0, %v4886_v8, 0.0 }
0x240c   :  { %v4899_v51 = vsel %vm196_vm0, %v4885_v34, 0.0  ;;  %v6426_v48 = vpop.eup %6425  ;;  %v4889_v25 = vmul.f32 %v8463_v33, %v6424_v62 }
0x240d   :  { %4900 = vadd.xlane.f32.xlu1 %v4899_v51  ;;  %v4905_v29 = vsel %vm196_vm0, %v4887_v17, 0.0  ;;  %v4888_v12 = vmul.f32 %v8463_v33, %v6426_v48 }
0x240e   :  { %4897 = vadd.xlane.f32.xlu0 %v4896_v37  ;;  %v4911_v54 = vsel %vm196_vm0, %v4889_v25, 0.0 }
0x240f   :  { %v4908_v1 = vsel %vm196_vm0, %v4888_v12, 0.0 }
0x2411   :  { %4906 = vadd.xlane.f32.xlu1 %v4905_v29 }
0x2412   :  { %4903 = vadd.xlane.f32.xlu0 %v4902_v14 }
0x2415   :  { %4912 = vadd.xlane.f32.xlu1 %v4911_v54 }
0x2416   :  { %4909 = vadd.xlane.f32.xlu0 %v4908_v1 }
0x2496   :  { %v4892_v45 = vpop.xlane.xlu1 %4891 }
0x2497   :  { %v4914_v43 = vadd.f32 %v4892_v45, %v7558_v57  ;;  %v4895_v36 = vpop.xlane.xlu0 %4894 }
0x2498   :  { %v4915_v20 = vadd.f32 %v4895_v36, %v7558_v57 }
0x2499   :  { %v4922_v35 = vmul.f32 1.442695, %v4914_v43 }
0x249a   :  { %v4924_v27 = vmul.f32 1.442695, %v4915_v20  ;;  %v4901_v60 = vpop.xlane.xlu1 %4900 }
0x249b   :  { %v4917_v46 = vadd.f32 %v4901_v60, %v7558_v57  ;;  %v4898_v4 = vpop.xlane.xlu0 %4897 }
0x249c   :  { %6427 = vpow2.f32 %v4924_v27  ;;  %v4916_v22 = vadd.f32 %v4898_v4, %v7558_v57 }
0x249d   :  { %6429 = vpow2.f32 %v4922_v35  ;;  %v4928_v59 = vmul.f32 1.442695, %v4917_v46 }
0x249e   :  { %v4926_v0 = vmul.f32 1.442695, %v4916_v22  ;;  %v4907_v40 = vpop.xlane.xlu1 %4906 }
0x249f   :  { %v4919_v38 = vadd.f32 %v4907_v40, %v7558_v57  ;;  %v4904_v16 = vpop.xlane.xlu0 %4903 }
0x24a0   :  { %6431 = vpow2.f32 %v4926_v0  ;;  %v4918_v26 = vadd.f32 %v4904_v16, %v7558_v57 }
0x24a1   :  { %6433 = vpow2.f32 %v4928_v59  ;;  %v4932_v6 = vmul.f32 1.442695, %v4919_v38 }
0x24a2   :  { %v4930_v31 = vmul.f32 1.442695, %v4918_v26  ;;  %v4913_v9 = vpop.xlane.xlu1 %4912 }
0x24a3   :  { %v4921_v56 = vadd.f32 %v4913_v9, %v7558_v57  ;;  %v4910_v2 = vpop.xlane.xlu0 %4909 }
0x24a4   :  { %6435 = vpow2.f32 %v4930_v31  ;;  %v4920_v47 = vadd.f32 %v4910_v2, %v7558_v57 }
0x24a5   :  { %6437 = vpow2.f32 %v4932_v6  ;;  %v4936_v34 = vmul.f32 1.442695, %v4921_v56 }
0x24a6   :  { %v6428_v51 = vpop.eup %6427  ;;  %v4934_v17 = vmul.f32 1.442695, %v4920_v47 }
0x24a7   :  { %v6430_v62 = vpop.eup %6429  ;;  %6439 = vpow2.f32 %v4936_v34  ;;  %v4953_v37 = vrot.slane %v6428_v51, %v7050_v5 }
0x24a8   :  { %6441 = vpow2.f32 %v4934_v17  ;;  %v4949_v48 = vrot.slane %v6430_v62, %v7050_v5 }
0x24aa   :  { %v6432_v8 = vpop.eup %6431  ;;  %v4978_v14 = vsel %vm776_vm2, %v4953_v37, %v4949_v48 }
0x24ab   :  { %v6434_v29 = vpop.eup %6433  ;;  %v4957_v25 = vrot.slane %v6432_v8, %v7050_v5 }
0x24ac   :  { %v4961_v1 = vrot.slane %v6434_v29, %v7050_v5 }
0x24ad   :  { %v4979_v12 = vsel %vm778_vm3, %v4957_v25, %v4978_v14 }
0x24ae   :  { %v6436_v54 = vpop.eup %6435  ;;  %v4980_v36 = vsel %vm780_vm4, %v4961_v1, %v4979_v12  ;;  %v8846_v12 = vld [vmem:[#allocation14_spill] sm:$0xff] }
0x24af   :  { %v6438_v45 = vpop.eup %6437  ;;  %v4965_v43 = vrot.slane %v6436_v54, %v7050_v5 }
0x24b0   :  { %v4969_v60 = vrot.slane %v6438_v45, %v7050_v5 }
0x24b1   :  { %v6440_v20 = vpop.eup %6439  ;;  %v4981_v35 = vsel %vm782_vm5, %v4965_v43, %v4980_v36  ;;  %v8847_v43 = vld [vmem:[#allocation8_spill] sm:$0xff] }
0x24b2   :  { %v6442_v27 = vpop.eup %6441  ;;  %v4977_v4 = vrot.slane %v6440_v20, %v7050_v5  ;;  %v4982_v22 = vsel %vm784_vm6, %v4969_v60, %v4981_v35  ;;  %v8848_v35 = vld [vmem:[#allocation32_spill] sm:$0xff] }
0x24b3   :  { %v4973_v46 = vrot.slane %v6442_v27, %v7050_v5 }
0x24b5   :  { %v4983_v59 = vsel %vm786_vm7, %v4973_v46, %v4982_v22  ;;  %v8849_v46 = vld [vmem:[#allocation20_spill] sm:$0xff] }
0x24b6   :  { %v4984_v0 = vsel %vm788_vm8, %v4977_v4, %v4983_v59 }
0x24b7   :  { %v4986_v40 = vsel %vm196_vm0, %v4984_v0, 0.0  ;;  %v8850_v0 = vld [vmem:[#allocation45_spill] sm:$0xff] }
0x24b8   :  { %4987 = vadd.xlane.f32.xlu0 %v4986_v40 }
0x2545   :  { %v4988_v38 = vpop.xlane.xlu0 %4987 }
0x2546   :  { %6443 = vrcp.f32 %v4988_v38 }
0x2550   :  { %v6444_v16 = vpop.eup %6443 }
0x2551   :  { %v4998_v26 = vrot.slane %v6444_v16, %v7585_v19  ;;  %v4994_v6 = vrot.slane %v6444_v16, %v7483_v21  ;;  %v5010_v31 = vrot.slane %v6444_v16, %v7594_v50  ;;  %v5002_v9 = vrot.slane %v6444_v16, %v7588_v30 }
0x2552   :  { %v5018_v56 = vrot.slane %v6444_v16, %v7609_v63  ;;  %v5006_v2 = vrot.slane %v6444_v16, %v7591_v44  ;;  %v5014_v14 = vrot.slane %v6444_v16, %v7602_v15 }
0x2553   :  { %v5032_v47 = vmul.f32 %v6428_v51, %v4998_v26  ;;  %v5031_v34 = vmul.f32 %v6430_v62, %v4994_v6  ;;  %v5035_v17 = vmul.f32 %v6436_v54, %v5010_v31  ;;  %v5033_v37 = vmul.f32 %v6432_v8, %v5002_v9  ;;  %v8851_v51 = vld [vmem:[#allocation26_spill] sm:$0xff] }
0x2554   :  { %v5037_v48 = vmul.f32 %v6442_v27, %v5018_v56  ;;  %v5034_v25 = vmul.f32 %v6434_v29, %v5006_v2  ;;  %v5036_v54 = vmul.f32 %v6438_v45, %v5014_v14  ;;  %v5022_v8 = vrot.slane %v6444_v16, %v7614_v3  ;;  %v8852_v6 = vld [vmem:[#allocation38_spill] sm:$0xff] }
0x2555   :  { %v5040_v1 = vmul.f32 %v5032_v47, %v8846_v12  ;;  %v5039_v36 = vmul.f32 %v5031_v34, %v8847_v43  ;;  %v5043_v60 = vmul.f32 %v5035_v17, %v8848_v35  ;;  %v5041_v4 = vmul.f32 %v5033_v37, %v8849_v46 }
0x2556   :  { %v5045_v40 = vmul.f32 %v5037_v48, %v8850_v0  ;;  %v5042_v62 = vmul.f32 %v5034_v25, %v8851_v51  ;;  %v5044_v31 = vmul.f32 %v5036_v54, %v8852_v6  ;;  %v5038_v9 = vmul.f32 %v6440_v20, %v5022_v8  ;;  %v8853_v48 = vld [vmem:[#allocation50_spill] sm:$0xff] }
0x2557   :  { %v5048_v22 = vpack.c.bf16 %v5040_v1, %v5040_v1  ;;  %v5047_v59 = vpack.c.bf16 %v5039_v36, %v5039_v36  ;;  %v5051_v38 = vpack.c.bf16 %v5043_v60, %v5043_v60  ;;  %v5049_v26 = vpack.c.bf16 %v5041_v4, %v5041_v4 }
0x2558   :  { %v5053_v47 = vpack.c.bf16 %v5045_v40, %v5045_v40  ;;  %v5050_v34 = vpack.c.bf16 %v5042_v62, %v5042_v62  ;;  %v5052_v45 = vpack.c.bf16 %v5044_v31, %v5044_v31  ;;  %v5046_v16 = vmul.f32 %v5038_v9, %v8853_v48 }
0x2559   :  { %v5064_v29 = vunpack.c.l.b16 %v5048_v22  ;;  %v5063_v27 = vunpack.c.l.b16 %v5047_v59  ;;  %v5067_v56 = vunpack.c.l.b16 %v5051_v38  ;;  %v5065_v2 = vunpack.c.l.b16 %v5049_v26 }
0x255a   :  { %v5069_v17 = vunpack.c.l.b16 %v5053_v47  ;;  %v5066_v37 = vunpack.c.l.b16 %v5050_v34  ;;  %v5068_v25 = vunpack.c.l.b16 %v5052_v45  ;;  %v5054_v14 = vpack.c.bf16 %v5046_v16, %v5046_v16  ;;  %v8547_v45 = vld [vmem:[%s8706_s12] ss:$0 sm:$0xff] }
0x255b   :  { %5075 = vperm.xlu0 %6155, %v5064_v29   ;;  %5072 = vperm.xlu1 %6154, %v5063_v27  }
0x255c   :  { %v5070_v12 = vunpack.c.l.b16 %v5054_v14 }
0x255f   :  { %5084 = vperm.xlu0 %6155, %v5067_v56   ;;  %5078 = vperm.xlu1 %6154, %v5065_v2   ;;  %v6511_v2 = vld [vmem:[%s8697_s3] sm:$0xff]  }
0x2563   :  { %5090 = vperm.xlu0 %6155, %v5069_v17   ;;  %5081 = vperm.xlu1 %6154, %v5066_v37  }
0x2567   :  { %5087 = vperm.xlu1 %6154, %v5068_v25  }
0x256b   :  { %5093 = vperm.xlu1 %6154, %v5070_v12  }
0x25da   :  { %v5073_v1 = vpop.permute.xlu1 %5072  ;;  %v5076_v20 = vpop.permute.xlu0 %5075 }
0x25db   :  { %v5102_v36 = vrot.slane %v5076_v20, %v7050_v5  ;;  %v5098_v35 = vrot.slane %v5073_v1, %v7050_v5 }
0x25dd   :  { %v5127_v22 = vsel %vm776_vm2, %v5102_v36, %v5098_v35 }
0x25de   :  { %v5079_v43 = vpop.permute.xlu1 %5078  ;;  %v5085_v46 = vpop.permute.xlu0 %5084 }
0x25df   :  { %v5106_v60 = vrot.slane %v5079_v43, %v7050_v5  ;;  %v5114_v51 = vrot.slane %v5085_v46, %v7050_v5 }
0x25e1   :  { %v5128_v0 = vsel %vm778_vm3, %v5106_v60, %v5127_v22 }
0x25e2   :  { %v5082_v4 = vpop.permute.xlu1 %5081  ;;  %v5091_v54 = vpop.permute.xlu0 %5090 }
0x25e3   :  { %v5110_v59 = vrot.slane %v5082_v4, %v7050_v5  ;;  %v5122_v38 = vrot.slane %v5091_v54, %v7050_v5 }
0x25e5   :  { %v5129_v40 = vsel %vm780_vm4, %v5110_v59, %v5128_v0 }
0x25e6   :  { %v5088_v62 = vpop.permute.xlu1 %5087  ;;  %v5130_v29 = vsel %vm782_vm5, %v5114_v51, %v5129_v40 }
0x25e7   :  { %v5118_v8 = vrot.slane %v5088_v62, %v7050_v5 }
0x25e9   :  { %v5131_v27 = vsel %vm784_vm6, %v5118_v8, %v5130_v29 }
0x25ea   :  { %v5094_v26 = vpop.permute.xlu1 %5093  ;;  %v5132_v31 = vsel %vm786_vm7, %v5122_v38, %v5131_v27 }
0x25eb   :  { %v5126_v6 = vrot.slane %v5094_v26, %v7050_v5 }
0x25ed   :  { %v5133_v9 = vsel %vm788_vm8, %v5126_v6, %v5132_v31 }
0x25ee   :  { %v5134_v56 = vpack.c.b16 %v5133_v9, %v5133_v9 }
0x25f0   :  { %6116 = vmatmul.mubr.msk.bf16.vlgmr.msra.gmra.mrb[56].mxu1 %vm196_vm0, %v5134_v56 }
0x25f1   :  { %6126 = vmatpush3.bf16.msra.mxu1 %v6511_v2  ;;  %6127 = vmatprep.mubr.msk.bf16.mxu1 %vm6515_vm1, %v8811_v58 }
0x25f2   :  { %6137 = vmatprep.subr.bf16.mxu1 %v8811_v58 }
0x26c3   :  { %v5172_v47 = vpop.f32.mrb[56].mxu1 }
0x26c4   :  { %v5173_v34 = vadd.f32 %v5172_v47, %v8430_v53  ;;  %v6117_v17 = vpop.f32.mrb[57].mxu1 }
0x26c5   :  { %v5175_v37 = vpop.f32.mrb[58].mxu1 }
0x26c6   :  { %v5178_v48 = vadd.f32 %v8547_v45, %v5173_v34  ;;  %v6118_v16 = vpop.f32.mrb[59].mxu1 }
0x26c8   :  { %6445 = vtanh.f32 %v5178_v48  ;;  %v5858_v14 = vmul.f32 -1.442695, %v5178_v48 }
0x26ca   :  { %6447 = vpow2.f32 %v5858_v14 }
0x26d2   :  { %v6446_v25 = vpop.eup %6445 }
0x26d3   :  { %5188 = vrot.lane.b32.xlu0 %v6446_v25, %s6518_s30 }
0x26d4   :  { %v6448_v12 = vpop.eup %6447 }
0x26d5   :  { %v5182_v1 = vadd.f32 1.0, %v6448_v12 }
0x26d7   :  { %6449 = vrcp.f32 %v5182_v1 }
0x26e1   :  { %v6450_v53 = vpop.eup %6449 }
0x26e2   :  { %v5186_v36 = vmul.f32 %v6450_v53, %v8403_v28  ;;  %v6513_v28 = vld [vmem:[%s8704_s11] sm:$0xff]   ;;  %s6522_s11 = smov 48  }
0x2745   :  { %v5189_v20 = vpop.permute.xlu0 %5188 }
0x2746   :  { %v5191_v43 = vmul.f32 %v6450_v53, %v5189_v20 }
0x2748   :  { %5193 = vrot.lane.b32.xlu1 %v5191_v43, %s6519_s14 }
0x27ba   :  { %v5194_v35 = vpop.permute.xlu1 %5193 }
0x27bb   :  { %v8553_v60 = vadd.f32 %v5194_v35, %v5186_v36 }
0x27bd   :  { %6451 = vtanh.f32 %v8553_v60  ;;  %v5204_v46 = vpack.c.bf16 %v8553_v60, %v8553_v60 }
0x27bf   :  { %5206 = vrot.lane.b32.xlu1 %v5204_v46, %s6520_s15 }
0x27c7   :  { %v6452_v4 = vpop.eup %6451 }
0x27c8   :  { %5199 = vrot.lane.b32.xlu0 %v6452_v4, %s6519_s14 }
0x2831   :  { %v5207_v22 = vpop.permute.xlu1 %5206 }
0x2832   :  { %6122 = vmatmul.mubr.msk.bf16.vlgmr.msra.gmra.mrb[60].mxu0 %vm1244_vm10, %v5207_v22 }
0x2833   :  { %6132 = vmatpush3.bf16.msra.mxu0 %v6513_v28  ;;  %6133 = vmatprep.mubr.msk.bf16.mxu0 %vm6515_vm1, %v8811_v58 }
0x283a   :  { %v5200_v59 = vpop.permute.xlu0 %5199 }
0x283b   :  { %v8566_v0 = vmul.f32 %v6450_v53, %v5200_v59 }
0x283d   :  { %v5203_v40 = vpack.c.bf16 %v8566_v0, %v8566_v0 }
0x283f   :  { %5252 = vrot.lane.b32.xlu0 %v5203_v40, %s6521_s16 }
0x28b1   :  { %v5253_v51 = vpop.permute.xlu0 %5252 }
0x28b2   :  { %6128 = vmatmul.mubr.msk.bf16.vlgmr.msra.gmra.mrb[60].mxu1 %vm1244_vm10, %v5253_v51  ;;  %6134 = vmatmul.mubr.msk.bf16.vlgmr.msra.gmra.mrb[64].mxu0 %vm1244_vm10, %v5253_v51 }
0x28b3   :  { %6138 = vmatpush3.bf16.msra.mxu1 %v7641_v10  ;;  %6139 = vmatprep.mubr.msk.bf16.mxu1 %vm6515_vm1, %v8811_v58 }
0x2905   :  { %v5245_v62 = vpop.f32.mrb[60].mxu0 }
0x2906   :  { %v6123_v54 = vpop.f32.mrb[61].mxu0 }
0x2907   :  { %v5248_v8 = vpop.f32.mrb[62].mxu0 }
0x2908   :  { %v6124_v29 = vpop.f32.mrb[63].mxu0 }
0x2985   :  { %v5291_v27 = vpop.f32.mrb[60].mxu1  ;;  %v8576_v38 = vpop.f32.mrb[64].mxu0 }
0x2986   :  { %v5292_v26 = vadd.f32 %v5291_v27, %v5245_v62  ;;  %v6129_v6 = vpop.f32.mrb[61].mxu1  ;;  %v6135_v31 = vpop.f32.mrb[65].mxu0 }
0x2987   :  { %v5294_v9 = vpop.f32.mrb[62].mxu1  ;;  %v5335_v56 = vpop.f32.mrb[66].mxu0 }
0x2988   :  { %v5297_v2 = vadd.f32 %v8435_v11, %v5292_v26  ;;  %v6130_v47 = vpop.f32.mrb[63].mxu1  ;;  %v6136_v34 = vpop.f32.mrb[67].mxu0 }
0x298a   :  { %v5339_v10 = vcombine.high %v5297_v2, %v5297_v2  ;;  %v5346_v17 = vrot.slane %v5297_v2, %v7478_v32 }
0x298c   :  { %v5353_v58 = vrot.slane %v5339_v10, %v7478_v32  ;;  %v5354_v37 = vcombine.high %v5346_v17, %v5346_v17  ;;  %v5362_v48 = vrot.slane %v5346_v17, %v7478_v32 }
0x298e   :  { %v5355_v16 = vcombine.high %v5353_v58, %v5353_v58  ;;  %v5369_v25 = vrot.slane %v5353_v58, %v7478_v32  ;;  %v5376_v14 = vrot.slane %v5354_v37, %v7478_v32  ;;  %v5384_v12 = vcombine.high %v5362_v48, %v5362_v48 }
0x298f   :  { %v5391_v1 = vrot.slane %v5362_v48, %v7483_v21 }
0x2990   :  { %v5383_v11 = vrot.slane %v5355_v16, %v7478_v32  ;;  %v5386_v53 = vcombine.high %v5376_v14, %v5376_v14  ;;  %v5395_v20 = vrot.slane %v5376_v14, %v7483_v21  ;;  %v5385_v43 = vcombine.high %v5369_v25, %v5369_v25 }
0x2991   :  { %v5399_v36 = vrot.slane %v5384_v12, %v7483_v21  ;;  %v5407_v35 = vrot.slane %v5369_v25, %v7483_v21  ;;  %v5428_v46 = vadd.f32 %v5391_v1, %v7497_v13 }
0x2992   :  { %v5387_v4 = vcombine.high %v5383_v11, %v5383_v11  ;;  %v5403_v22 = vrot.slane %v5386_v53, %v7483_v21  ;;  %v5411_v28 = vrot.slane %v5383_v11, %v7483_v21  ;;  %v5429_v59 = vadd.f32 %v5395_v20, %v7494_v55 }
0x2993   :  { %v5430_v40 = vadd.f32 %v5399_v36, %v7516_v42  ;;  %v5432_v32 = vadd.f32 %v5407_v35, %v7533_v39  ;;  %6453 = vtanh.f32 %v5428_v46  ;;  %v5415_v54 = vrot.slane %v5385_v43, %v7483_v21 }
0x2994   :  { %v5419_v51 = vrot.slane %v5387_v4, %v7483_v21  ;;  %v5431_v62 = vadd.f32 %v5403_v22, %v7513_v49  ;;  %v5433_v13 = vadd.f32 %v5411_v28, %v7529_v18  ;;  %6455 = vtanh.f32 %v5429_v59 }
0x2995   :  { %6457 = vtanh.f32 %v5430_v40  ;;  %v5434_v55 = vadd.f32 %v5415_v54, %v7546_v23 }
0x2996   :  { %6459 = vtanh.f32 %v5432_v32  ;;  %v5435_v8 = vadd.f32 %v5419_v51, %v7541_v24 }
0x2997   :  { %6461 = vtanh.f32 %v5431_v62 }
0x2998   :  { %6463 = vtanh.f32 %v5433_v13 }
0x2999   :  { %6465 = vtanh.f32 %v5435_v8 }
0x299a   :  { %6467 = vtanh.f32 %v5434_v55 }
0x299d   :  { %v6454_v42 = vpop.eup %6453 }
0x299e   :  { %v5444_v39 = vmul.f32 %v8463_v33, %v6454_v42  ;;  %v6456_v29 = vpop.eup %6455 }
0x299f   :  { %v6458_v49 = vpop.eup %6457  ;;  %v5445_v18 = vmul.f32 %v8463_v33, %v6456_v29 }
0x29a0   :  { %v5452_v27 = vsel %vm196_vm0, %v5444_v39, 0.0  ;;  %v6460_v26 = vpop.eup %6459  ;;  %v5446_v24 = vmul.f32 %v8463_v33, %v6458_v49 }
0x29a1   :  { %5453 = vadd.xlane.f32.xlu1 %v5452_v27  ;;  %v6462_v6 = vpop.eup %6461  ;;  %v5455_v31 = vsel %vm196_vm0, %v5445_v18, 0.0  ;;  %v5448_v10 = vmul.f32 %v8463_v33, %v6460_v26 }
0x29a2   :  { %v6464_v23 = vpop.eup %6463  ;;  %5456 = vadd.xlane.f32.xlu0 %v5455_v31  ;;  %v5447_v9 = vmul.f32 %v8463_v33, %v6462_v6  ;;  %v5458_v34 = vsel %vm196_vm0, %v5446_v24, 0.0 }
0x29a3   :  { %v5449_v2 = vmul.f32 %v8463_v33, %v6464_v23  ;;  %v6466_v47 = vpop.eup %6465  ;;  %v5464_v48 = vsel %vm196_vm0, %v5448_v10, 0.0 }
0x29a4   :  { %v5461_v56 = vsel %vm196_vm0, %v5447_v9, 0.0  ;;  %v6468_v17 = vpop.eup %6467  ;;  %v5451_v37 = vmul.f32 %v8463_v33, %v6466_v47 }
0x29a5   :  { %5462 = vadd.xlane.f32.xlu1 %v5461_v56  ;;  %v5467_v58 = vsel %vm196_vm0, %v5449_v2, 0.0  ;;  %v5450_v16 = vmul.f32 %v8463_v33, %v6468_v17 }
0x29a6   :  { %5459 = vadd.xlane.f32.xlu0 %v5458_v34  ;;  %v5473_v25 = vsel %vm196_vm0, %v5451_v37, 0.0 }
0x29a7   :  { %v5470_v14 = vsel %vm196_vm0, %v5450_v16, 0.0 }
0x29a9   :  { %5468 = vadd.xlane.f32.xlu1 %v5467_v58 }
0x29aa   :  { %5465 = vadd.xlane.f32.xlu0 %v5464_v48 }
0x29ad   :  { %5474 = vadd.xlane.f32.xlu1 %v5473_v25 }
0x29ae   :  { %5471 = vadd.xlane.f32.xlu0 %v5470_v14 }
0x2a2e   :  { %v5454_v12 = vpop.xlane.xlu1 %5453 }
0x2a2f   :  { %v5476_v1 = vadd.f32 %v5454_v12, %v7558_v57  ;;  %v5457_v11 = vpop.xlane.xlu0 %5456 }
0x2a30   :  { %v5477_v53 = vadd.f32 %v5457_v11, %v7558_v57 }
0x2a31   :  { %v5484_v20 = vmul.f32 1.442695, %v5476_v1 }
0x2a32   :  { %v5486_v43 = vmul.f32 1.442695, %v5477_v53  ;;  %v5463_v36 = vpop.xlane.xlu1 %5462 }
0x2a33   :  { %v5479_v35 = vadd.f32 %v5463_v36, %v7558_v57  ;;  %v5460_v46 = vpop.xlane.xlu0 %5459 }
0x2a34   :  { %6469 = vpow2.f32 %v5486_v43  ;;  %v5478_v33 = vadd.f32 %v5460_v46, %v7558_v57 }
0x2a35   :  { %6471 = vpow2.f32 %v5484_v20  ;;  %v5490_v4 = vmul.f32 1.442695, %v5479_v35 }
0x2a36   :  { %v5488_v22 = vmul.f32 1.442695, %v5478_v33  ;;  %v5469_v28 = vpop.xlane.xlu1 %5468 }
0x2a37   :  { %v5481_v59 = vadd.f32 %v5469_v28, %v7558_v57  ;;  %v5466_v40 = vpop.xlane.xlu0 %5465 }
0x2a38   :  { %6473 = vpow2.f32 %v5488_v22  ;;  %v5480_v32 = vadd.f32 %v5466_v40, %v7558_v57 }
0x2a39   :  { %6475 = vpow2.f32 %v5490_v4  ;;  %v5494_v51 = vmul.f32 1.442695, %v5481_v59 }
0x2a3a   :  { %v5492_v62 = vmul.f32 1.442695, %v5480_v32  ;;  %v5475_v54 = vpop.xlane.xlu1 %5474 }
0x2a3b   :  { %v5483_v13 = vadd.f32 %v5475_v54, %v7558_v57  ;;  %v5472_v8 = vpop.xlane.xlu0 %5471  ;;  %v8856_v54 = vld [vmem:[#allocation35_spill] sm:$0xff] }
0x2a3c   :  { %6477 = vpow2.f32 %v5492_v62  ;;  %v5482_v55 = vadd.f32 %v5472_v8, %v7558_v57  ;;  %v8855_v62 = vld [vmem:[#allocation11_spill] sm:$0xff] }
0x2a3d   :  { %6479 = vpow2.f32 %v5494_v51  ;;  %v5498_v42 = vmul.f32 1.442695, %v5483_v13  ;;  %v8854_v51 = vld [vmem:[#allocation15_spill] sm:$0xff] }
0x2a3e   :  { %v6470_v39 = vpop.eup %6469  ;;  %v5496_v29 = vmul.f32 1.442695, %v5482_v55  ;;  %v8857_v13 = vld [vmem:[#allocation23_spill] sm:$0xff]  ;;  %v8858_v55 = vld [vmem:[#allocation48_spill] sm:$0xff] }
0x2a3f   :  { %v6472_v49 = vpop.eup %6471  ;;  %6481 = vpow2.f32 %v5498_v42  ;;  %v5515_v27 = vrot.slane %v6470_v39, %v7050_v5  ;;  %v8859_v42 = vld [vmem:[#allocation27_spill] sm:$0xff] }
0x2a40   :  { %6483 = vpow2.f32 %v5496_v29  ;;  %v5511_v26 = vrot.slane %v6472_v49, %v7050_v5 }
0x2a42   :  { %v6474_v18 = vpop.eup %6473  ;;  %v5540_v24 = vsel %vm776_vm2, %v5515_v27, %v5511_v26 }
0x2a43   :  { %v6476_v6 = vpop.eup %6475  ;;  %v5519_v31 = vrot.slane %v6474_v18, %v7050_v5 }
0x2a44   :  { %v5523_v9 = vrot.slane %v6476_v6, %v7050_v5 }
0x2a45   :  { %v5541_v23 = vsel %vm778_vm3, %v5519_v31, %v5540_v24 }
0x2a46   :  { %v6478_v57 = vpop.eup %6477  ;;  %v5542_v47 = vsel %vm780_vm4, %v5523_v9, %v5541_v23 }
0x2a47   :  { %v6480_v56 = vpop.eup %6479  ;;  %v5527_v2 = vrot.slane %v6478_v57, %v7050_v5 }
0x2a48   :  { %v5531_v58 = vrot.slane %v6480_v56, %v7050_v5 }
0x2a49   :  { %v6482_v34 = vpop.eup %6481  ;;  %v5543_v10 = vsel %vm782_vm5, %v5527_v2, %v5542_v47 }
0x2a4a   :  { %v6484_v17 = vpop.eup %6483  ;;  %v5539_v48 = vrot.slane %v6482_v34, %v7050_v5  ;;  %v5544_v16 = vsel %vm784_vm6, %v5531_v58, %v5543_v10 }
0x2a4b   :  { %v5535_v37 = vrot.slane %v6484_v17, %v7050_v5 }
0x2a4d   :  { %v5545_v25 = vsel %vm786_vm7, %v5535_v37, %v5544_v16 }
0x2a4e   :  { %v5546_v14 = vsel %vm788_vm8, %v5539_v48, %v5545_v25 }
0x2a4f   :  { %v5548_v12 = vsel %vm196_vm0, %v5546_v14, 0.0 }
0x2a50   :  { %5549 = vadd.xlane.f32.xlu0 %v5548_v12 }
0x2add   :  { %v5550_v1 = vpop.xlane.xlu0 %5549 }
0x2ade   :  { %6485 = vrcp.f32 %v5550_v1 }
0x2ae8   :  { %v6486_v11 = vpop.eup %6485 }
0x2ae9   :  { %v5560_v53 = vrot.slane %v6486_v11, %v7585_v19  ;;  %v5556_v20 = vrot.slane %v6486_v11, %v7483_v21  ;;  %v5572_v43 = vrot.slane %v6486_v11, %v7594_v50  ;;  %v5564_v36 = vrot.slane %v6486_v11, %v7588_v30 }
0x2aea   :  { %v5580_v35 = vrot.slane %v6486_v11, %v7609_v63  ;;  %v5568_v46 = vrot.slane %v6486_v11, %v7591_v44  ;;  %v5576_v32 = vrot.slane %v6486_v11, %v7602_v15 }
0x2aeb   :  { %v5594_v33 = vmul.f32 %v6470_v39, %v5560_v53  ;;  %v5593_v4 = vmul.f32 %v6472_v49, %v5556_v20  ;;  %v5597_v22 = vmul.f32 %v6478_v57, %v5572_v43  ;;  %v5595_v28 = vmul.f32 %v6474_v18, %v5564_v36 }
0x2aec   :  { %v5599_v59 = vmul.f32 %v6484_v17, %v5580_v35  ;;  %v5596_v40 = vmul.f32 %v6476_v6, %v5568_v46  ;;  %v5598_v29 = vmul.f32 %v6480_v56, %v5576_v32  ;;  %v5584_v49 = vrot.slane %v6486_v11, %v7614_v3  ;;  %v8860_v6 = vld [vmem:[#allocation39_spill] sm:$0xff] }
0x2aed   :  { %v5602_v19 = vmul.f32 %v5594_v33, %v8854_v51  ;;  %v5601_v21 = vmul.f32 %v5593_v4, %v8855_v62  ;;  %v5605_v50 = vmul.f32 %v5597_v22, %v8856_v54  ;;  %v5603_v30 = vmul.f32 %v5595_v28, %v8857_v13  ;;  %v8861_v17 = vld [vmem:[#allocation51_spill] sm:$0xff] }
0x2aee   :  { %v5607_v44 = vmul.f32 %v5599_v59, %v8858_v55  ;;  %v5604_v39 = vmul.f32 %v5596_v40, %v8859_v42  ;;  %v5606_v31 = vmul.f32 %v5598_v29, %v8860_v6  ;;  %v5600_v24 = vmul.f32 %v6482_v34, %v5584_v49 }
0x2aef   :  { %v5610_v8 = vpack.c.bf16 %v5602_v19, %v5602_v19  ;;  %v5609_v63 = vpack.c.bf16 %v5601_v21, %v5601_v21  ;;  %v5613_v15 = vpack.c.bf16 %v5605_v50, %v5605_v50  ;;  %v5611_v26 = vpack.c.bf16 %v5603_v30, %v5603_v30 }
0x2af0   :  { %v5615_v9 = vpack.c.bf16 %v5607_v44, %v5607_v44  ;;  %v5612_v2 = vpack.c.bf16 %v5604_v39, %v5604_v39  ;;  %v5614_v56 = vpack.c.bf16 %v5606_v31, %v5606_v31  ;;  %v5608_v3 = vmul.f32 %v5600_v24, %v8861_v17  ;;  %v8863_v24 = vld [vmem:[#allocation9_spill] sm:$0xff] }
0x2af1   :  { %v5626_v27 = vunpack.c.l.b16 %v5610_v8  ;;  %v5625_v18 = vunpack.c.l.b16 %v5609_v63  ;;  %v5629_v23 = vunpack.c.l.b16 %v5613_v15  ;;  %v5627_v57 = vunpack.c.l.b16 %v5611_v26 }
0x2af2   :  { %v5631_v47 = vunpack.c.l.b16 %v5615_v9  ;;  %v5628_v10 = vunpack.c.l.b16 %v5612_v2  ;;  %v5630_v58 = vunpack.c.l.b16 %v5614_v56  ;;  %v5616_v37 = vpack.c.bf16 %v5608_v3, %v5608_v3 }
0x2af3   :  { %5637 = vperm.xlu0 %6155, %v5626_v27   ;;  %5634 = vperm.xlu1 %6154, %v5625_v18  }
0x2af4   :  { %v5632_v48 = vunpack.c.l.b16 %v5616_v37 }
0x2af7   :  { %5646 = vperm.xlu0 %6155, %v5629_v23   ;;  %5640 = vperm.xlu1 %6154, %v5627_v57  }
0x2afb   :  { %5652 = vperm.xlu0 %6155, %v5631_v47   ;;  %5643 = vperm.xlu1 %6154, %v5628_v10  }
0x2aff   :  { %5649 = vperm.xlu1 %6154, %v5630_v58  }
0x2b03   :  { %5655 = vperm.xlu1 %6154, %v5632_v48  }
0x2b72   :  { %v5635_v16 = vpop.permute.xlu1 %5634  ;;  %v5638_v34 = vpop.permute.xlu0 %5637 }
0x2b73   :  { %v5664_v14 = vrot.slane %v5638_v34, %v7050_v5  ;;  %v5660_v12 = vrot.slane %v5635_v16, %v7050_v5 }
0x2b75   :  { %v5689_v20 = vsel %vm776_vm2, %v5664_v14, %v5660_v12 }
0x2b76   :  { %v5641_v25 = vpop.permute.xlu1 %5640  ;;  %v5647_v11 = vpop.permute.xlu0 %5646 }
0x2b77   :  { %v5668_v1 = vrot.slane %v5641_v25, %v7050_v5  ;;  %v5676_v46 = vrot.slane %v5647_v11, %v7050_v5 }
0x2b79   :  { %v5690_v36 = vsel %vm778_vm3, %v5668_v1, %v5689_v20 }
0x2b7a   :  { %v5644_v53 = vpop.permute.xlu1 %5643  ;;  %v5653_v4 = vpop.permute.xlu0 %5652 }
0x2b7b   :  { %v5672_v43 = vrot.slane %v5644_v53, %v7050_v5  ;;  %v5684_v40 = vrot.slane %v5653_v4, %v7050_v5 }
0x2b7d   :  { %v5691_v35 = vsel %vm780_vm4, %v5672_v43, %v5690_v36 }
0x2b7e   :  { %v5650_v33 = vpop.permute.xlu1 %5649  ;;  %v5692_v28 = vsel %vm782_vm5, %v5676_v46, %v5691_v35 }
0x2b7f   :  { %v5680_v22 = vrot.slane %v5650_v33, %v7050_v5 }
0x2b81   :  { %v5693_v59 = vsel %vm784_vm6, %v5680_v22, %v5692_v28 }
0x2b82   :  { %v5656_v32 = vpop.permute.xlu1 %5655  ;;  %v5694_v19 = vsel %vm786_vm7, %v5684_v40, %v5693_v59 }
0x2b83   :  { %v5688_v51 = vrot.slane %v5656_v32, %v7050_v5 }
0x2b85   :  { %v5695_v62 = vsel %vm788_vm8, %v5688_v51, %v5694_v19 }
0x2b86   :  { %v5696_v21 = vpack.c.b16 %v5695_v62, %v5695_v62 }
0x2b88   :  { %6140 = vmatmul.mubr.msk.bf16.vlgmr.msra.gmra.mrb[64].mxu1 %vm196_vm0, %v5696_v21  ;;  %vm5804_vm0 = vcmask 916480  }
0x2c5b   :  { %v5734_v54 = vpop.f32.mrb[64].mxu1 }
0x2c5c   :  { %v5735_v50 = vadd.f32 %v5734_v54, %v8576_v38  ;;  %v6141_v13 = vpop.f32.mrb[65].mxu1  ;;  %v8862_v38 = vld [vmem:[#allocation52_spill] sm:$0xff] }
0x2c5d   :  { %v5737_v30 = vpop.f32.mrb[66].mxu1 }
0x2c5e   :  { %v5740_v8 = vadd.f32 %v8547_v45, %v5735_v50  ;;  %v6142_v63 = vpop.f32.mrb[67].mxu1 }
0x2c60   :  { %6487 = vtanh.f32 %v5740_v8  ;;  %v5863_v5 = vmul.f32 -1.442695, %v5740_v8 }
0x2c62   :  { %6489 = vpow2.f32 %v5863_v5 }
0x2c6a   :  { %v6488_v55 = vpop.eup %6487 }
0x2c6b   :  { %5750 = vrot.lane.b32.xlu0 %v6488_v55, %s6518_s30 }
0x2c6c   :  { %v6490_v44 = vpop.eup %6489 }
0x2c6d   :  { %v5744_v42 = vadd.f32 1.0, %v6490_v44 }
0x2c6f   :  { %6491 = vrcp.f32 %v5744_v42 }
0x2c79   :  { %v6492_v39 = vpop.eup %6491 }
0x2c7a   :  { %v5748_v45 = vmul.f32 %v6492_v39, %v8553_v60 }
0x2cdd   :  { %v5751_v29 = vpop.permute.xlu0 %5750 }
0x2cde   :  { %v5753_v49 = vmul.f32 %v6492_v39, %v5751_v29 }
0x2ce0   :  { %5755 = vrot.lane.b32.xlu1 %v5753_v49, %s6519_s14 }
0x2ce4   :  { %5766 = vrot.lane.b32.xlu1 %v8862_v38, %s6521_s16  ;;  %s6524_s16 = smov 64  }
0x2ce8   :  { %5774 = vrot.lane.b32.xlu1 %v8119_v7, %s6519_s14 }
0x2cec   :  { %5782 = vrot.lane.b32.xlu1 %v8415_v41, %s6522_s11 }
0x2d52   :  { %v5756_v27 = vpop.permute.xlu1 %5755 }
0x2d53   :  { %v5758_v18 = vadd.f32 %v5756_v27, %v5748_v45 }
0x2d55   :  { %6493 = vtanh.f32 %v5758_v18 }
0x2d56   :  { %v5767_v41 = vpop.permute.xlu1 %5766 }
0x2d5a   :  { %v5775_v31 = vpop.permute.xlu1 %5774 }
0x2d5f   :  { %v6494_v15 = vpop.eup %6493 }
0x2d60   :  { %5761 = vrot.lane.b32.xlu0 %v6494_v15, %s6519_s14 }
0x2d64   :  { %5770 = vrot.lane.b32.xlu0 %v7823_v52, %s6520_s15 }
0x2d68   :  { %5778 = vrot.lane.b32.xlu0 %v8277_v61, %s6523_s22  ;;  %v5783_v61 = vpop.permute.xlu1 %5782 }
0x2d6c   :  { %5786 = vrot.lane.b32.xlu0 %v8566_v0, %s6524_s16 }
0x2dd2   :  { %v5762_v7 = vpop.permute.xlu0 %5761 }
0x2dd3   :  { %v5764_v26 = vmul.f32 %v6492_v39, %v5762_v7 }
0x2dd5   :  { %5790 = vrot.lane.b32.xlu1 %v5764_v26, %s6518_s30 }
0x2dd6   :  { %v5771_v60 = vpop.permute.xlu0 %5770 }
0x2dd7   :  { %v5793_v6 = vsel %vm1244_vm10, %v5767_v41, %v5771_v60 }
0x2dd8   :  { %v5795_v23 = vsel %vm5794_vm11, %v5793_v6, %v8863_v24 }
0x2dd9   :  { %v5797_v57 = vsel %vm5796_vm12, %v5795_v23, %v5775_v31 }
0x2dda   :  { %v5779_v52 = vpop.permute.xlu0 %5778 }
0x2ddb   :  { %v5799_v9 = vsel %vm5798_vm13, %v5797_v57, %v5779_v52 }
0x2ddc   :  { %v5801_v2 = vsel %vm5800_vm14, %v5799_v9, %v5783_v61 }
0x2dde   :  { %v5787_v0 = vpop.permute.xlu0 %5786 }
0x2ddf   :  { %v5803_v47 = vsel %vm5802_vm15, %v5801_v2, %v5787_v0 }
0x2e47   :  { %v5791_v10 = vpop.permute.xlu1 %5790 }
0x2e48   :  { %v5805_v56 = vsel %vm5804_vm0, %v5803_v47, %v5791_v10 }
0x2e49   :  { %5806 = vst [vmem:[%s8707_s13] sm:$0xff] %v5805_v56 }

</bundles_post_ra>
